<compile_context>
chip_gen: v7x
topology: tpu7x:2x2x1
jax: 0.10.0
libtpu: 0.0.40
codegen_flags: <defaults>
</compile_context>

<pallas_src>
import functools

import jax
import jax.numpy as jnp
from jax import lax
from jax.experimental import pallas as pl
from jax.experimental.pallas import tpu as pltpu


# ----------------------------------------------------------------------------
# Fused InceptionBlock kernel
# ----------------------------------------------------------------------------
def _inception_kernel(x_ref, wstk_ref, bb_ref, w6b_ref, w6x_ref, b6_ref, o_ref,
                      *, center):
    # x_ref:    (NB, C_in, L_pad)       shared padded input slab (NB batch elems)
    # wstk_ref: (K_max, 5*C_out, C_in)  stacked, BN-folded branch weights (tap-major)
    # bb_ref:   (5*C_out, 1)            folded branch BN bias
    # w6b_ref:  (C_out, 5*C_out)        1x1 conv weight, branch part (BN-folded)
    # w6x_ref:  (C_out, C_in)           1x1 conv weight, skip/x part (BN-folded)
    # b6_ref:   (C_out, 1)              folded 1x1-conv BN bias
    # o_ref:    (NB, C_out, L)
    NB = x_ref.shape[0]
    K = wstk_ref.shape[0]
    L = o_ref.shape[2]

    # Load all (small) weights once; they stay resident across the batch loop.
    wstk = wstk_ref[...]
    bb = bb_ref[...]
    w6b = w6b_ref[...]
    w6x = w6x_ref[...]
    b6 = b6_ref[...]

    for n in range(NB):                       # NB static & small -> unrolled
        xs = x_ref[n]                         # (C_in, L_pad)
        # All 5 branch convs at once: one wide MXU matmul per kernel tap.
        acc = jnp.zeros((wstk.shape[1], L), jnp.float32)
        for t in range(K):                    # static -> unrolled matmul chain
            acc = acc + jnp.dot(wstk[t], xs[:, t:t + L],
                                preferred_element_type=jnp.float32)
        b = acc + bb
        b = b * jax.nn.sigmoid(b)             # SiLU; branch outputs stay on-chip
        # 1x1 conv over concat([branches, x]) == matmul(branches) + matmul(x).
        xc = xs[:, center:center + L]         # un-padded x (skip part of concat)
        y = (jnp.dot(w6b, b, preferred_element_type=jnp.float32)
             + jnp.dot(w6x, xc, preferred_element_type=jnp.float32)
             + b6)
        o_ref[n] = (y * jax.nn.sigmoid(y)).astype(o_ref.dtype)


def _pick_batch_block(n, max_nb=8):
    for nb in range(min(n, max_nb), 0, -1):
        if n % nb == 0:
            return nb
    return 1


def inception_block(x, branches, c6):
    """Fused InceptionBlock forward.

    x:        (N, C_in, L) f32 (PyTorch NCL layout)
    branches: list of 5 dicts {"w": (C_out, C_in, K_i), "scale": (C_out,), "bias": (C_out,)}
    c6:       dict {"w": (C_out, 5*C_out + C_in, 1), "scale": (C_out,), "bias": (C_out,)}
    """
    N, C_in, L = x.shape
    C_out = branches[0]["w"].shape[0]
    n_br = len(branches)
    ksizes = [p["w"].shape[2] for p in branches]
    k_max = max(ksizes)
    # PyTorch padding='same' (stride 1): total = K-1, left = total//2.
    left_max = (k_max - 1) // 2
    right_max = (k_max - 1) - left_max
    l_pad = L + k_max - 1

    # Pad x ONCE to the widest branch kernel (shared slab for all branches).
    x_pad = jnp.pad(x, ((0, 0), (0, 0), (left_max, right_max)))

    # Stack branch weights tap-major, centered in [0, k_max), BN scale folded in.
    w_stack = jnp.zeros((k_max, n_br * C_out, C_in), jnp.float32)
    bias_b = []
    for i, p in enumerate(branches):
        k_i = ksizes[i]
        left_i = (k_i - 1) // 2
        off = left_max - left_i
        w_i = jnp.transpose(p["w"], (2, 0, 1)) * p["scale"][None, :, None]
        w_stack = w_stack.at[off:off + k_i, i * C_out:(i + 1) * C_out, :].set(
            w_i.astype(jnp.float32))
        bias_b.append(p["bias"])
    bias_b = jnp.concatenate(bias_b).reshape(n_br * C_out, 1).astype(jnp.float32)

    # 1x1 conv: fold BN scale; split into branch part and skip(x) part.
    w6 = c6["w"][:, :, 0] * c6["scale"][:, None]           # (C_out, 5*C_out+C_in)
    w6b = w6[:, :n_br * C_out].astype(jnp.float32)
    w6x = w6[:, n_br * C_out:].astype(jnp.float32)
    bias6 = c6["bias"].reshape(C_out, 1).astype(jnp.float32)

    nb = _pick_batch_block(N)
    kernel = functools.partial(_inception_kernel, center=left_max)

    return pl.pallas_call(
        kernel,
        out_shape=jax.ShapeDtypeStruct((N, C_out, L), x.dtype),
        grid=(N // nb,),
        in_specs=[
            pl.BlockSpec((nb, C_in, l_pad), lambda b: (b, 0, 0)),
            pl.BlockSpec((k_max, n_br * C_out, C_in), lambda b: (0, 0, 0)),
            pl.BlockSpec((n_br * C_out, 1), lambda b: (0, 0)),
            pl.BlockSpec((C_out, n_br * C_out), lambda b: (0, 0)),
            pl.BlockSpec((C_out, C_in), lambda b: (0, 0)),
            pl.BlockSpec((C_out, 1), lambda b: (0, 0)),
        ],
        out_specs=pl.BlockSpec((nb, C_out, L), lambda b: (b, 0, 0)),
        compiler_params=pltpu.CompilerParams(
            dimension_semantics=("parallel",)),
    )(x_pad, w_stack, bias_b, w6b, w6x, bias6)


# ----------------------------------------------------------------------------
# Parameter construction (deterministic, shapes mirror the PyTorch module)
# ----------------------------------------------------------------------------
def fold_bn(gamma, beta, running_mean, running_var, eps=1e-5):
    scale = gamma / jnp.sqrt(running_var + eps)
    bias = beta - running_mean * scale
    return scale, bias


def make_branch_params(key, in_ch, out_ch, ksize):
    kw, kg, kb = jax.random.split(key, 3)
    w = 0.1 * jax.random.normal(kw, (out_ch, in_ch, ksize), jnp.float32)
    gamma = 1.0 + 0.1 * jax.random.normal(kg, (out_ch,), jnp.float32)
    beta = 0.1 * jax.random.normal(kb, (out_ch,), jnp.float32)
    running_mean = jnp.zeros((out_ch,), jnp.float32)
    running_var = jnp.ones((out_ch,), jnp.float32)
    scale, bias = fold_bn(gamma, beta, running_mean, running_var)
    return {"w": w, "scale": scale, "bias": bias}


def make_inception_params(key, in_channels, out_channels, k):
    ks = [k, k + 2, k + 4, k + 8, k + 16]
    keys = jax.random.split(key, 6)
    branches = [
        make_branch_params(keys[i], in_channels, out_channels, ks[i])
        for i in range(5)
    ]
    c6 = make_branch_params(
        keys[5], out_channels * 5 + in_channels, out_channels, 1
    )
    return branches, c6


# ----------------------------------------------------------------------------
# Pure-JAX reference (lax.conv) for correctness check
# ----------------------------------------------------------------------------
def ref_conv_bn_silu(x, w, scale, bias):
    K = w.shape[2]
    total = K - 1
    left = total // 2
    y = lax.conv_general_dilated(
        x, w, window_strides=(1,), padding=[(left, total - left)],
        dimension_numbers=("NCH", "OIH", "NCH"),
    )
    y = y * scale[None, :, None] + bias[None, :, None]
    return y * jax.nn.sigmoid(y)


def ref_inception_block(x, branches, c6):
    outs = [ref_conv_bn_silu(x, p["w"], p["scale"], p["bias"]) for p in branches]
    cat = jnp.concatenate(outs + [x], axis=1)
    return ref_conv_bn_silu(cat, c6["w"], c6["scale"], c6["bias"])


if __name__ == "__main__":
    # Small shapes consistent with the module: Conv1d input is (N, C, L).
    N, C_IN, C_OUT, L, K0 = 2, 4, 8, 16, 3

    key = jax.random.PRNGKey(0)
    kx, kp = jax.random.split(key)
    x = jax.random.normal(kx, (N, C_IN, L), jnp.float32)
    branches, c6 = make_inception_params(kp, C_IN, C_OUT, K0)

    out = jax.jit(inception_block)(x, branches, c6)
    out = jax.block_until_ready(out)

    ref = ref_inception_block(x, branches, c6)
    assert out.shape == (N, C_OUT, L), out.shape
    assert jnp.allclose(out, ref, atol=1e-4, rtol=1e-4), (
        float(jnp.max(jnp.abs(out - ref)))
    )
    print("KERNEL_OK")
</pallas_src>

<mosaic_0001>
module attributes {stable_mosaic.version = 11 : i64} {
  func.func @_inception_kernel(%arg0: i32, %arg1: memref<2x4x34xf32, #tpu.memory_space<vmem>>, %arg2: memref<19x40x4xf32, #tpu.memory_space<vmem>>, %arg3: memref<40x1xf32, #tpu.memory_space<vmem>>, %arg4: memref<8x40xf32, #tpu.memory_space<vmem>>, %arg5: memref<8x4xf32, #tpu.memory_space<vmem>>, %arg6: memref<8x1xf32, #tpu.memory_space<vmem>>, %arg7: memref<2x8x16xf32, #tpu.memory_space<vmem>>) attributes {dimension_semantics = [#tpu.dimension_semantics<parallel>], iteration_bounds = array<i64: 1>, scalar_prefetch = 0 : i64, scratch_operands = 0 : i64, tpu.core_type = #tpu.core_type<tc>, window_params = [{transform_indices = @transform_0, window_bounds = array<i64: 2, 4, 34>}, {pipeline_mode = #tpu.pipeline_mode<synchronous>, transform_indices = @transform_1, window_bounds = array<i64: 19, 40, 4>}, {pipeline_mode = #tpu.pipeline_mode<synchronous>, transform_indices = @transform_2, window_bounds = array<i64: 40, 1>}, {pipeline_mode = #tpu.pipeline_mode<synchronous>, transform_indices = @transform_3, window_bounds = array<i64: 8, 40>}, {pipeline_mode = #tpu.pipeline_mode<synchronous>, transform_indices = @transform_4, window_bounds = array<i64: 8, 4>}, {pipeline_mode = #tpu.pipeline_mode<synchronous>, transform_indices = @transform_5, window_bounds = array<i64: 8, 1>}, {transform_indices = @transform_6, window_bounds = array<i64: 2, 8, 16>}]} {
    %c0 = arith.constant 0 : index
    %c0_0 = arith.constant 0 : index
    %c0_1 = arith.constant 0 : index
    %0 = vector.load %arg2[%c0, %c0_0, %c0_1] : memref<19x40x4xf32, #tpu.memory_space<vmem>>, vector<19x40x4xf32>
    %c0_2 = arith.constant 0 : index
    %c0_3 = arith.constant 0 : index
    %1 = vector.load %arg3[%c0_2, %c0_3] : memref<40x1xf32, #tpu.memory_space<vmem>>, vector<40x1xf32>
    %c0_4 = arith.constant 0 : index
    %c0_5 = arith.constant 0 : index
    %2 = vector.load %arg4[%c0_4, %c0_5] : memref<8x40xf32, #tpu.memory_space<vmem>>, vector<8x40xf32>
    %c0_6 = arith.constant 0 : index
    %c0_7 = arith.constant 0 : index
    %3 = vector.load %arg5[%c0_6, %c0_7] : memref<8x4xf32, #tpu.memory_space<vmem>>, vector<8x4xf32>
    %c0_8 = arith.constant 0 : index
    %c0_9 = arith.constant 0 : index
    %4 = vector.load %arg6[%c0_8, %c0_9] : memref<8x1xf32, #tpu.memory_space<vmem>>, vector<8x1xf32>
    %c0_10 = arith.constant 0 : index
    %c0_11 = arith.constant 0 : index
    %c0_12 = arith.constant 0 : index
    %5 = vector.load %arg1[%c0_10, %c0_11, %c0_12] : memref<2x4x34xf32, #tpu.memory_space<vmem>>, vector<1x4x34xf32>
    %6 = vector.shape_cast %5 : vector<1x4x34xf32> to vector<4x34xf32>
    %cst = arith.constant 0.000000e+00 : f32
    %7 = vector.broadcast %cst : f32 to vector<40x16xf32>
    %8 = vector.extract_strided_slice %0 {offsets = [0, 0, 0], sizes = [1, 40, 4], strides = [1, 1, 1]} : vector<19x40x4xf32> to vector<1x40x4xf32>
    %9 = vector.shape_cast %8 : vector<1x40x4xf32> to vector<40x4xf32>
    %10 = vector.extract_strided_slice %6 {offsets = [0, 0], sizes = [4, 16], strides = [1, 1]} : vector<4x34xf32> to vector<4x16xf32>
    %cst_13 = arith.constant dense<0.000000e+00> : vector<40x16xf32>
    %11 = tpu.matmul %9, %10, %cst_13 {dimension_numbers = #tpu.dot_dimension_numbers<[1], [0], [0], [1], [0, 0, 1, 1], [], []>} : vector<40x4xf32>, vector<4x16xf32>, vector<40x16xf32> -> vector<40x16xf32>
    %12 = arith.addf %7, %11 : vector<40x16xf32>
    %13 = vector.extract_strided_slice %0 {offsets = [1, 0, 0], sizes = [1, 40, 4], strides = [1, 1, 1]} : vector<19x40x4xf32> to vector<1x40x4xf32>
    %14 = vector.shape_cast %13 : vector<1x40x4xf32> to vector<40x4xf32>
    %15 = vector.extract_strided_slice %6 {offsets = [0, 1], sizes = [4, 16], strides = [1, 1]} : vector<4x34xf32> to vector<4x16xf32>
    %cst_14 = arith.constant dense<0.000000e+00> : vector<40x16xf32>
    %16 = tpu.matmul %14, %15, %cst_14 {dimension_numbers = #tpu.dot_dimension_numbers<[1], [0], [0], [1], [0, 0, 1, 1], [], []>} : vector<40x4xf32>, vector<4x16xf32>, vector<40x16xf32> -> vector<40x16xf32>
    %17 = arith.addf %12, %16 : vector<40x16xf32>
    %18 = vector.extract_strided_slice %0 {offsets = [2, 0, 0], sizes = [1, 40, 4], strides = [1, 1, 1]} : vector<19x40x4xf32> to vector<1x40x4xf32>
    %19 = vector.shape_cast %18 : vector<1x40x4xf32> to vector<40x4xf32>
    %20 = vector.extract_strided_slice %6 {offsets = [0, 2], sizes = [4, 16], strides = [1, 1]} : vector<4x34xf32> to vector<4x16xf32>
    %cst_15 = arith.constant dense<0.000000e+00> : vector<40x16xf32>
    %21 = tpu.matmul %19, %20, %cst_15 {dimension_numbers = #tpu.dot_dimension_numbers<[1], [0], [0], [1], [0, 0, 1, 1], [], []>} : vector<40x4xf32>, vector<4x16xf32>, vector<40x16xf32> -> vector<40x16xf32>
    %22 = arith.addf %17, %21 : vector<40x16xf32>
    %23 = vector.extract_strided_slice %0 {offsets = [3, 0, 0], sizes = [1, 40, 4], strides = [1, 1, 1]} : vector<19x40x4xf32> to vector<1x40x4xf32>
    %24 = vector.shape_cast %23 : vector<1x40x4xf32> to vector<40x4xf32>
    %25 = vector.extract_strided_slice %6 {offsets = [0, 3], sizes = [4, 16], strides = [1, 1]} : vector<4x34xf32> to vector<4x16xf32>
    %cst_16 = arith.constant dense<0.000000e+00> : vector<40x16xf32>
    %26 = tpu.matmul %24, %25, %cst_16 {dimension_numbers = #tpu.dot_dimension_numbers<[1], [0], [0], [1], [0, 0, 1, 1], [], []>} : vector<40x4xf32>, vector<4x16xf32>, vector<40x16xf32> -> vector<40x16xf32>
    %27 = arith.addf %22, %26 : vector<40x16xf32>
    %28 = vector.extract_strided_slice %0 {offsets = [4, 0, 0], sizes = [1, 40, 4], strides = [1, 1, 1]} : vector<19x40x4xf32> to vector<1x40x4xf32>
    %29 = vector.shape_cast %28 : vector<1x40x4xf32> to vector<40x4xf32>
    %30 = vector.extract_strided_slice %6 {offsets = [0, 4], sizes = [4, 16], strides = [1, 1]} : vector<4x34xf32> to vector<4x16xf32>
    %cst_17 = arith.constant dense<0.000000e+00> : vector<40x16xf32>
    %31 = tpu.matmul %29, %30, %cst_17 {dimension_numbers = #tpu.dot_dimension_numbers<[1], [0], [0], [1], [0, 0, 1, 1], [], []>} : vector<40x4xf32>, vector<4x16xf32>, vector<40x16xf32> -> vector<40x16xf32>
    %32 = arith.addf %27, %31 : vector<40x16xf32>
    %33 = vector.extract_strided_slice %0 {offsets = [5, 0, 0], sizes = [1, 40, 4], strides = [1, 1, 1]} : vector<19x40x4xf32> to vector<1x40x4xf32>
    %34 = vector.shape_cast %33 : vector<1x40x4xf32> to vector<40x4xf32>
    %35 = vector.extract_strided_slice %6 {offsets = [0, 5], sizes = [4, 16], strides = [1, 1]} : vector<4x34xf32> to vector<4x16xf32>
    %cst_18 = arith.constant dense<0.000000e+00> : vector<40x16xf32>
    %36 = tpu.matmul %34, %35, %cst_18 {dimension_numbers = #tpu.dot_dimension_numbers<[1], [0], [0], [1], [0, 0, 1, 1], [], []>} : vector<40x4xf32>, vector<4x16xf32>, vector<40x16xf32> -> vector<40x16xf32>
    %37 = arith.addf %32, %36 : vector<40x16xf32>
    %38 = vector.extract_strided_slice %0 {offsets = [6, 0, 0], sizes = [1, 40, 4], strides = [1, 1, 1]} : vector<19x40x4xf32> to vector<1x40x4xf32>
    %39 = vector.shape_cast %38 : vector<1x40x4xf32> to vector<40x4xf32>
    %40 = vector.extract_strided_slice %6 {offsets = [0, 6], sizes = [4, 16], strides = [1, 1]} : vector<4x34xf32> to vector<4x16xf32>
    %cst_19 = arith.constant dense<0.000000e+00> : vector<40x16xf32>
    %41 = tpu.matmul %39, %40, %cst_19 {dimension_numbers = #tpu.dot_dimension_numbers<[1], [0], [0], [1], [0, 0, 1, 1], [], []>} : vector<40x4xf32>, vector<4x16xf32>, vector<40x16xf32> -> vector<40x16xf32>
    %42 = arith.addf %37, %41 : vector<40x16xf32>
    %43 = vector.extract_strided_slice %0 {offsets = [7, 0, 0], sizes = [1, 40, 4], strides = [1, 1, 1]} : vector<19x40x4xf32> to vector<1x40x4xf32>
    %44 = vector.shape_cast %43 : vector<1x40x4xf32> to vector<40x4xf32>
    %45 = vector.extract_strided_slice %6 {offsets = [0, 7], sizes = [4, 16], strides = [1, 1]} : vector<4x34xf32> to vector<4x16xf32>
    %cst_20 = arith.constant dense<0.000000e+00> : vector<40x16xf32>
    %46 = tpu.matmul %44, %45, %cst_20 {dimension_numbers = #tpu.dot_dimension_numbers<[1], [0], [0], [1], [0, 0, 1, 1], [], []>} : vector<40x4xf32>, vector<4x16xf32>, vector<40x16xf32> -> vector<40x16xf32>
    %47 = arith.addf %42, %46 : vector<40x16xf32>
    %48 = vector.extract_strided_slice %0 {offsets = [8, 0, 0], sizes = [1, 40, 4], strides = [1, 1, 1]} : vector<19x40x4xf32> to vector<1x40x4xf32>
    %49 = vector.shape_cast %48 : vector<1x40x4xf32> to vector<40x4xf32>
    %50 = vector.extract_strided_slice %6 {offsets = [0, 8], sizes = [4, 16], strides = [1, 1]} : vector<4x34xf32> to vector<4x16xf32>
    %cst_21 = arith.constant dense<0.000000e+00> : vector<40x16xf32>
    %51 = tpu.matmul %49, %50, %cst_21 {dimension_numbers = #tpu.dot_dimension_numbers<[1], [0], [0], [1], [0, 0, 1, 1], [], []>} : vector<40x4xf32>, vector<4x16xf32>, vector<40x16xf32> -> vector<40x16xf32>
    %52 = arith.addf %47, %51 : vector<40x16xf32>
    %53 = vector.extract_strided_slice %0 {offsets = [9, 0, 0], sizes = [1, 40, 4], strides = [1, 1, 1]} : vector<19x40x4xf32> to vector<1x40x4xf32>
    %54 = vector.shape_cast %53 : vector<1x40x4xf32> to vector<40x4xf32>
    %55 = vector.extract_strided_slice %6 {offsets = [0, 9], sizes = [4, 16], strides = [1, 1]} : vector<4x34xf32> to vector<4x16xf32>
    %cst_22 = arith.constant dense<0.000000e+00> : vector<40x16xf32>
    %56 = tpu.matmul %54, %55, %cst_22 {dimension_numbers = #tpu.dot_dimension_numbers<[1], [0], [0], [1], [0, 0, 1, 1], [], []>} : vector<40x4xf32>, vector<4x16xf32>, vector<40x16xf32> -> vector<40x16xf32>
    %57 = arith.addf %52, %56 : vector<40x16xf32>
    %58 = vector.extract_strided_slice %0 {offsets = [10, 0, 0], sizes = [1, 40, 4], strides = [1, 1, 1]} : vector<19x40x4xf32> to vector<1x40x4xf32>
    %59 = vector.shape_cast %58 : vector<1x40x4xf32> to vector<40x4xf32>
    %60 = vector.extract_strided_slice %6 {offsets = [0, 10], sizes = [4, 16], strides = [1, 1]} : vector<4x34xf32> to vector<4x16xf32>
    %cst_23 = arith.constant dense<0.000000e+00> : vector<40x16xf32>
    %61 = tpu.matmul %59, %60, %cst_23 {dimension_numbers = #tpu.dot_dimension_numbers<[1], [0], [0], [1], [0, 0, 1, 1], [], []>} : vector<40x4xf32>, vector<4x16xf32>, vector<40x16xf32> -> vector<40x16xf32>
    %62 = arith.addf %57, %61 : vector<40x16xf32>
    %63 = vector.extract_strided_slice %0 {offsets = [11, 0, 0], sizes = [1, 40, 4], strides = [1, 1, 1]} : vector<19x40x4xf32> to vector<1x40x4xf32>
    %64 = vector.shape_cast %63 : vector<1x40x4xf32> to vector<40x4xf32>
    %65 = vector.extract_strided_slice %6 {offsets = [0, 11], sizes = [4, 16], strides = [1, 1]} : vector<4x34xf32> to vector<4x16xf32>
    %cst_24 = arith.constant dense<0.000000e+00> : vector<40x16xf32>
    %66 = tpu.matmul %64, %65, %cst_24 {dimension_numbers = #tpu.dot_dimension_numbers<[1], [0], [0], [1], [0, 0, 1, 1], [], []>} : vector<40x4xf32>, vector<4x16xf32>, vector<40x16xf32> -> vector<40x16xf32>
    %67 = arith.addf %62, %66 : vector<40x16xf32>
    %68 = vector.extract_strided_slice %0 {offsets = [12, 0, 0], sizes = [1, 40, 4], strides = [1, 1, 1]} : vector<19x40x4xf32> to vector<1x40x4xf32>
    %69 = vector.shape_cast %68 : vector<1x40x4xf32> to vector<40x4xf32>
    %70 = vector.extract_strided_slice %6 {offsets = [0, 12], sizes = [4, 16], strides = [1, 1]} : vector<4x34xf32> to vector<4x16xf32>
    %cst_25 = arith.constant dense<0.000000e+00> : vector<40x16xf32>
    %71 = tpu.matmul %69, %70, %cst_25 {dimension_numbers = #tpu.dot_dimension_numbers<[1], [0], [0], [1], [0, 0, 1, 1], [], []>} : vector<40x4xf32>, vector<4x16xf32>, vector<40x16xf32> -> vector<40x16xf32>
    %72 = arith.addf %67, %71 : vector<40x16xf32>
    %73 = vector.extract_strided_slice %0 {offsets = [13, 0, 0], sizes = [1, 40, 4], strides = [1, 1, 1]} : vector<19x40x4xf32> to vector<1x40x4xf32>
    %74 = vector.shape_cast %73 : vector<1x40x4xf32> to vector<40x4xf32>
    %75 = vector.extract_strided_slice %6 {offsets = [0, 13], sizes = [4, 16], strides = [1, 1]} : vector<4x34xf32> to vector<4x16xf32>
    %cst_26 = arith.constant dense<0.000000e+00> : vector<40x16xf32>
    %76 = tpu.matmul %74, %75, %cst_26 {dimension_numbers = #tpu.dot_dimension_numbers<[1], [0], [0], [1], [0, 0, 1, 1], [], []>} : vector<40x4xf32>, vector<4x16xf32>, vector<40x16xf32> -> vector<40x16xf32>
    %77 = arith.addf %72, %76 : vector<40x16xf32>
    %78 = vector.extract_strided_slice %0 {offsets = [14, 0, 0], sizes = [1, 40, 4], strides = [1, 1, 1]} : vector<19x40x4xf32> to vector<1x40x4xf32>
    %79 = vector.shape_cast %78 : vector<1x40x4xf32> to vector<40x4xf32>
    %80 = vector.extract_strided_slice %6 {offsets = [0, 14], sizes = [4, 16], strides = [1, 1]} : vector<4x34xf32> to vector<4x16xf32>
    %cst_27 = arith.constant dense<0.000000e+00> : vector<40x16xf32>
    %81 = tpu.matmul %79, %80, %cst_27 {dimension_numbers = #tpu.dot_dimension_numbers<[1], [0], [0], [1], [0, 0, 1, 1], [], []>} : vector<40x4xf32>, vector<4x16xf32>, vector<40x16xf32> -> vector<40x16xf32>
    %82 = arith.addf %77, %81 : vector<40x16xf32>
    %83 = vector.extract_strided_slice %0 {offsets = [15, 0, 0], sizes = [1, 40, 4], strides = [1, 1, 1]} : vector<19x40x4xf32> to vector<1x40x4xf32>
    %84 = vector.shape_cast %83 : vector<1x40x4xf32> to vector<40x4xf32>
    %85 = vector.extract_strided_slice %6 {offsets = [0, 15], sizes = [4, 16], strides = [1, 1]} : vector<4x34xf32> to vector<4x16xf32>
    %cst_28 = arith.constant dense<0.000000e+00> : vector<40x16xf32>
    %86 = tpu.matmul %84, %85, %cst_28 {dimension_numbers = #tpu.dot_dimension_numbers<[1], [0], [0], [1], [0, 0, 1, 1], [], []>} : vector<40x4xf32>, vector<4x16xf32>, vector<40x16xf32> -> vector<40x16xf32>
    %87 = arith.addf %82, %86 : vector<40x16xf32>
    %88 = vector.extract_strided_slice %0 {offsets = [16, 0, 0], sizes = [1, 40, 4], strides = [1, 1, 1]} : vector<19x40x4xf32> to vector<1x40x4xf32>
    %89 = vector.shape_cast %88 : vector<1x40x4xf32> to vector<40x4xf32>
    %90 = vector.extract_strided_slice %6 {offsets = [0, 16], sizes = [4, 16], strides = [1, 1]} : vector<4x34xf32> to vector<4x16xf32>
    %cst_29 = arith.constant dense<0.000000e+00> : vector<40x16xf32>
    %91 = tpu.matmul %89, %90, %cst_29 {dimension_numbers = #tpu.dot_dimension_numbers<[1], [0], [0], [1], [0, 0, 1, 1], [], []>} : vector<40x4xf32>, vector<4x16xf32>, vector<40x16xf32> -> vector<40x16xf32>
    %92 = arith.addf %87, %91 : vector<40x16xf32>
    %93 = vector.extract_strided_slice %0 {offsets = [17, 0, 0], sizes = [1, 40, 4], strides = [1, 1, 1]} : vector<19x40x4xf32> to vector<1x40x4xf32>
    %94 = vector.shape_cast %93 : vector<1x40x4xf32> to vector<40x4xf32>
    %95 = vector.extract_strided_slice %6 {offsets = [0, 17], sizes = [4, 16], strides = [1, 1]} : vector<4x34xf32> to vector<4x16xf32>
    %cst_30 = arith.constant dense<0.000000e+00> : vector<40x16xf32>
    %96 = tpu.matmul %94, %95, %cst_30 {dimension_numbers = #tpu.dot_dimension_numbers<[1], [0], [0], [1], [0, 0, 1, 1], [], []>} : vector<40x4xf32>, vector<4x16xf32>, vector<40x16xf32> -> vector<40x16xf32>
    %97 = arith.addf %92, %96 : vector<40x16xf32>
    %98 = vector.extract_strided_slice %0 {offsets = [18, 0, 0], sizes = [1, 40, 4], strides = [1, 1, 1]} : vector<19x40x4xf32> to vector<1x40x4xf32>
    %99 = vector.shape_cast %98 : vector<1x40x4xf32> to vector<40x4xf32>
    %100 = vector.extract_strided_slice %6 {offsets = [0, 18], sizes = [4, 16], strides = [1, 1]} : vector<4x34xf32> to vector<4x16xf32>
    %cst_31 = arith.constant dense<0.000000e+00> : vector<40x16xf32>
    %101 = tpu.matmul %99, %100, %cst_31 {dimension_numbers = #tpu.dot_dimension_numbers<[1], [0], [0], [1], [0, 0, 1, 1], [], []>} : vector<40x4xf32>, vector<4x16xf32>, vector<40x16xf32> -> vector<40x16xf32>
    %102 = arith.addf %97, %101 : vector<40x16xf32>
    %103 = vector.broadcast %1 : vector<40x1xf32> to vector<40x16xf32>
    %104 = arith.addf %102, %103 : vector<40x16xf32>
    %105 = arith.negf %104 : vector<40x16xf32>
    %106 = math.exp %105 : vector<40x16xf32>
    %cst_32 = arith.constant 1.000000e+00 : f32
    %107 = vector.broadcast %cst_32 : f32 to vector<40x16xf32>
    %108 = arith.addf %107, %106 : vector<40x16xf32>
    %109 = arith.divf %107, %108 : vector<40x16xf32>
    %110 = arith.mulf %104, %109 : vector<40x16xf32>
    %111 = vector.extract_strided_slice %6 {offsets = [0, 9], sizes = [4, 16], strides = [1, 1]} : vector<4x34xf32> to vector<4x16xf32>
    %cst_33 = arith.constant dense<0.000000e+00> : vector<8x16xf32>
    %112 = tpu.matmul %2, %110, %cst_33 {dimension_numbers = #tpu.dot_dimension_numbers<[1], [0], [0], [1], [0, 0, 1, 1], [], []>} : vector<8x40xf32>, vector<40x16xf32>, vector<8x16xf32> -> vector<8x16xf32>
    %cst_34 = arith.constant dense<0.000000e+00> : vector<8x16xf32>
    %113 = tpu.matmul %3, %111, %cst_34 {dimension_numbers = #tpu.dot_dimension_numbers<[1], [0], [0], [1], [0, 0, 1, 1], [], []>} : vector<8x4xf32>, vector<4x16xf32>, vector<8x16xf32> -> vector<8x16xf32>
    %114 = arith.addf %112, %113 : vector<8x16xf32>
    %115 = vector.broadcast %4 : vector<8x1xf32> to vector<8x16xf32>
    %116 = arith.addf %114, %115 : vector<8x16xf32>
    %117 = arith.negf %116 : vector<8x16xf32>
    %118 = math.exp %117 : vector<8x16xf32>
    %cst_35 = arith.constant 1.000000e+00 : f32
    %119 = vector.broadcast %cst_35 : f32 to vector<8x16xf32>
    %120 = arith.addf %119, %118 : vector<8x16xf32>
    %121 = arith.divf %119, %120 : vector<8x16xf32>
    %122 = arith.mulf %116, %121 : vector<8x16xf32>
    %c0_36 = arith.constant 0 : index
    %c0_37 = arith.constant 0 : index
    %c0_38 = arith.constant 0 : index
    %123 = vector.load %arg7[%c0_36, %c0_37, %c0_38] : memref<2x8x16xf32, #tpu.memory_space<vmem>>, vector<1x8x16xf32>
    %124 = vector.shape_cast %123 : vector<1x8x16xf32> to vector<8x16xf32>
    %125 = vector.shape_cast %122 : vector<8x16xf32> to vector<1x8x16xf32>
    tpu.vector_store %arg7[%c0_36, %c0_37, %c0_38], %125 {strides = array<i32>} : memref<2x8x16xf32, #tpu.memory_space<vmem>>, vector<1x8x16xf32>,
    %c1 = arith.constant 1 : index
    %c0_39 = arith.constant 0 : index
    %c0_40 = arith.constant 0 : index
    %126 = vector.load %arg1[%c1, %c0_39, %c0_40] : memref<2x4x34xf32, #tpu.memory_space<vmem>>, vector<1x4x34xf32>
    %127 = vector.shape_cast %126 : vector<1x4x34xf32> to vector<4x34xf32>
    %cst_41 = arith.constant 0.000000e+00 : f32
    %128 = vector.broadcast %cst_41 : f32 to vector<40x16xf32>
    %129 = vector.extract_strided_slice %0 {offsets = [0, 0, 0], sizes = [1, 40, 4], strides = [1, 1, 1]} : vector<19x40x4xf32> to vector<1x40x4xf32>
    %130 = vector.shape_cast %129 : vector<1x40x4xf32> to vector<40x4xf32>
    %131 = vector.extract_strided_slice %127 {offsets = [0, 0], sizes = [4, 16], strides = [1, 1]} : vector<4x34xf32> to vector<4x16xf32>
    %cst_42 = arith.constant dense<0.000000e+00> : vector<40x16xf32>
    %132 = tpu.matmul %130, %131, %cst_42 {dimension_numbers = #tpu.dot_dimension_numbers<[1], [0], [0], [1], [0, 0, 1, 1], [], []>} : vector<40x4xf32>, vector<4x16xf32>, vector<40x16xf32> -> vector<40x16xf32>
    %133 = arith.addf %128, %132 : vector<40x16xf32>
    %134 = vector.extract_strided_slice %0 {offsets = [1, 0, 0], sizes = [1, 40, 4], strides = [1, 1, 1]} : vector<19x40x4xf32> to vector<1x40x4xf32>
    %135 = vector.shape_cast %134 : vector<1x40x4xf32> to vector<40x4xf32>
    %136 = vector.extract_strided_slice %127 {offsets = [0, 1], sizes = [4, 16], strides = [1, 1]} : vector<4x34xf32> to vector<4x16xf32>
    %cst_43 = arith.constant dense<0.000000e+00> : vector<40x16xf32>
    %137 = tpu.matmul %135, %136, %cst_43 {dimension_numbers = #tpu.dot_dimension_numbers<[1], [0], [0], [1], [0, 0, 1, 1], [], []>} : vector<40x4xf32>, vector<4x16xf32>, vector<40x16xf32> -> vector<40x16xf32>
    %138 = arith.addf %133, %137 : vector<40x16xf32>
    %139 = vector.extract_strided_slice %0 {offsets = [2, 0, 0], sizes = [1, 40, 4], strides = [1, 1, 1]} : vector<19x40x4xf32> to vector<1x40x4xf32>
    %140 = vector.shape_cast %139 : vector<1x40x4xf32> to vector<40x4xf32>
    %141 = vector.extract_strided_slice %127 {offsets = [0, 2], sizes = [4, 16], strides = [1, 1]} : vector<4x34xf32> to vector<4x16xf32>
    %cst_44 = arith.constant dense<0.000000e+00> : vector<40x16xf32>
    %142 = tpu.matmul %140, %141, %cst_44 {dimension_numbers = #tpu.dot_dimension_numbers<[1], [0], [0], [1], [0, 0, 1, 1], [], []>} : vector<40x4xf32>, vector<4x16xf32>, vector<40x16xf32> -> vector<40x16xf32>
    %143 = arith.addf %138, %142 : vector<40x16xf32>
    %144 = vector.extract_strided_slice %0 {offsets = [3, 0, 0], sizes = [1, 40, 4], strides = [1, 1, 1]} : vector<19x40x4xf32> to vector<1x40x4xf32>
    %145 = vector.shape_cast %144 : vector<1x40x4xf32> to vector<40x4xf32>
    %146 = vector.extract_strided_slice %127 {offsets = [0, 3], sizes = [4, 16], strides = [1, 1]} : vector<4x34xf32> to vector<4x16xf32>
    %cst_45 = arith.constant dense<0.000000e+00> : vector<40x16xf32>
    %147 = tpu.matmul %145, %146, %cst_45 {dimension_numbers = #tpu.dot_dimension_numbers<[1], [0], [0], [1], [0, 0, 1, 1], [], []>} : vector<40x4xf32>, vector<4x16xf32>, vector<40x16xf32> -> vector<40x16xf32>
    %148 = arith.addf %143, %147 : vector<40x16xf32>
    %149 = vector.extract_strided_slice %0 {offsets = [4, 0, 0], sizes = [1, 40, 4], strides = [1, 1, 1]} : vector<19x40x4xf32> to vector<1x40x4xf32>
    %150 = vector.shape_cast %149 : vector<1x40x4xf32> to vector<40x4xf32>
    %151 = vector.extract_strided_slice %127 {offsets = [0, 4], sizes = [4, 16], strides = [1, 1]} : vector<4x34xf32> to vector<4x16xf32>
    %cst_46 = arith.constant dense<0.000000e+00> : vector<40x16xf32>
    %152 = tpu.matmul %150, %151, %cst_46 {dimension_numbers = #tpu.dot_dimension_numbers<[1], [0], [0], [1], [0, 0, 1, 1], [], []>} : vector<40x4xf32>, vector<4x16xf32>, vector<40x16xf32> -> vector<40x16xf32>
    %153 = arith.addf %148, %152 : vector<40x16xf32>
    %154 = vector.extract_strided_slice %0 {offsets = [5, 0, 0], sizes = [1, 40, 4], strides = [1, 1, 1]} : vector<19x40x4xf32> to vector<1x40x4xf32>
    %155 = vector.shape_cast %154 : vector<1x40x4xf32> to vector<40x4xf32>
    %156 = vector.extract_strided_slice %127 {offsets = [0, 5], sizes = [4, 16], strides = [1, 1]} : vector<4x34xf32> to vector<4x16xf32>
    %cst_47 = arith.constant dense<0.000000e+00> : vector<40x16xf32>
    %157 = tpu.matmul %155, %156, %cst_47 {dimension_numbers = #tpu.dot_dimension_numbers<[1], [0], [0], [1], [0, 0, 1, 1], [], []>} : vector<40x4xf32>, vector<4x16xf32>, vector<40x16xf32> -> vector<40x16xf32>
    %158 = arith.addf %153, %157 : vector<40x16xf32>
    %159 = vector.extract_strided_slice %0 {offsets = [6, 0, 0], sizes = [1, 40, 4], strides = [1, 1, 1]} : vector<19x40x4xf32> to vector<1x40x4xf32>
    %160 = vector.shape_cast %159 : vector<1x40x4xf32> to vector<40x4xf32>
    %161 = vector.extract_strided_slice %127 {offsets = [0, 6], sizes = [4, 16], strides = [1, 1]} : vector<4x34xf32> to vector<4x16xf32>
    %cst_48 = arith.constant dense<0.000000e+00> : vector<40x16xf32>
    %162 = tpu.matmul %160, %161, %cst_48 {dimension_numbers = #tpu.dot_dimension_numbers<[1], [0], [0], [1], [0, 0, 1, 1], [], []>} : vector<40x4xf32>, vector<4x16xf32>, vector<40x16xf32> -> vector<40x16xf32>
    %163 = arith.addf %158, %162 : vector<40x16xf32>
    %164 = vector.extract_strided_slice %0 {offsets = [7, 0, 0], sizes = [1, 40, 4], strides = [1, 1, 1]} : vector<19x40x4xf32> to vector<1x40x4xf32>
    %165 = vector.shape_cast %164 : vector<1x40x4xf32> to vector<40x4xf32>
    %166 = vector.extract_strided_slice %127 {offsets = [0, 7], sizes = [4, 16], strides = [1, 1]} : vector<4x34xf32> to vector<4x16xf32>
    %cst_49 = arith.constant dense<0.000000e+00> : vector<40x16xf32>
    %167 = tpu.matmul %165, %166, %cst_49 {dimension_numbers = #tpu.dot_dimension_numbers<[1], [0], [0], [1], [0, 0, 1, 1], [], []>} : vector<40x4xf32>, vector<4x16xf32>, vector<40x16xf32> -> vector<40x16xf32>
    %168 = arith.addf %163, %167 : vector<40x16xf32>
    %169 = vector.extract_strided_slice %0 {offsets = [8, 0, 0], sizes = [1, 40, 4], strides = [1, 1, 1]} : vector<19x40x4xf32> to vector<1x40x4xf32>
    %170 = vector.shape_cast %169 : vector<1x40x4xf32> to vector<40x4xf32>
    %171 = vector.extract_strided_slice %127 {offsets = [0, 8], sizes = [4, 16], strides = [1, 1]} : vector<4x34xf32> to vector<4x16xf32>
    %cst_50 = arith.constant dense<0.000000e+00> : vector<40x16xf32>
    %172 = tpu.matmul %170, %171, %cst_50 {dimension_numbers = #tpu.dot_dimension_numbers<[1], [0], [0], [1], [0, 0, 1, 1], [], []>} : vector<40x4xf32>, vector<4x16xf32>, vector<40x16xf32> -> vector<40x16xf32>
    %173 = arith.addf %168, %172 : vector<40x16xf32>
    %174 = vector.extract_strided_slice %0 {offsets = [9, 0, 0], sizes = [1, 40, 4], strides = [1, 1, 1]} : vector<19x40x4xf32> to vector<1x40x4xf32>
    %175 = vector.shape_cast %174 : vector<1x40x4xf32> to vector<40x4xf32>
    %176 = vector.extract_strided_slice %127 {offsets = [0, 9], sizes = [4, 16], strides = [1, 1]} : vector<4x34xf32> to vector<4x16xf32>
    %cst_51 = arith.constant dense<0.000000e+00> : vector<40x16xf32>
    %177 = tpu.matmul %175, %176, %cst_51 {dimension_numbers = #tpu.dot_dimension_numbers<[1], [0], [0], [1], [0, 0, 1, 1], [], []>} : vector<40x4xf32>, vector<4x16xf32>, vector<40x16xf32> -> vector<40x16xf32>
    %178 = arith.addf %173, %177 : vector<40x16xf32>
    %179 = vector.extract_strided_slice %0 {offsets = [10, 0, 0], sizes = [1, 40, 4], strides = [1, 1, 1]} : vector<19x40x4xf32> to vector<1x40x4xf32>
    %180 = vector.shape_cast %179 : vector<1x40x4xf32> to vector<40x4xf32>
    %181 = vector.extract_strided_slice %127 {offsets = [0, 10], sizes = [4, 16], strides = [1, 1]} : vector<4x34xf32> to vector<4x16xf32>
    %cst_52 = arith.constant dense<0.000000e+00> : vector<40x16xf32>
    %182 = tpu.matmul %180, %181, %cst_52 {dimension_numbers = #tpu.dot_dimension_numbers<[1], [0], [0], [1], [0, 0, 1, 1], [], []>} : vector<40x4xf32>, vector<4x16xf32>, vector<40x16xf32> -> vector<40x16xf32>
    %183 = arith.addf %178, %182 : vector<40x16xf32>
    %184 = vector.extract_strided_slice %0 {offsets = [11, 0, 0], sizes = [1, 40, 4], strides = [1, 1, 1]} : vector<19x40x4xf32> to vector<1x40x4xf32>
    %185 = vector.shape_cast %184 : vector<1x40x4xf32> to vector<40x4xf32>
    %186 = vector.extract_strided_slice %127 {offsets = [0, 11], sizes = [4, 16], strides = [1, 1]} : vector<4x34xf32> to vector<4x16xf32>
    %cst_53 = arith.constant dense<0.000000e+00> : vector<40x16xf32>
    %187 = tpu.matmul %185, %186, %cst_53 {dimension_numbers = #tpu.dot_dimension_numbers<[1], [0], [0], [1], [0, 0, 1, 1], [], []>} : vector<40x4xf32>, vector<4x16xf32>, vector<40x16xf32> -> vector<40x16xf32>
    %188 = arith.addf %183, %187 : vector<40x16xf32>
    %189 = vector.extract_strided_slice %0 {offsets = [12, 0, 0], sizes = [1, 40, 4], strides = [1, 1, 1]} : vector<19x40x4xf32> to vector<1x40x4xf32>
    %190 = vector.shape_cast %189 : vector<1x40x4xf32> to vector<40x4xf32>
    %191 = vector.extract_strided_slice %127 {offsets = [0, 12], sizes = [4, 16], strides = [1, 1]} : vector<4x34xf32> to vector<4x16xf32>
    %cst_54 = arith.constant dense<0.000000e+00> : vector<40x16xf32>
    %192 = tpu.matmul %190, %191, %cst_54 {dimension_numbers = #tpu.dot_dimension_numbers<[1], [0], [0], [1], [0, 0, 1, 1], [], []>} : vector<40x4xf32>, vector<4x16xf32>, vector<40x16xf32> -> vector<40x16xf32>
    %193 = arith.addf %188, %192 : vector<40x16xf32>
    %194 = vector.extract_strided_slice %0 {offsets = [13, 0, 0], sizes = [1, 40, 4], strides = [1, 1, 1]} : vector<19x40x4xf32> to vector<1x40x4xf32>
    %195 = vector.shape_cast %194 : vector<1x40x4xf32> to vector<40x4xf32>
    %196 = vector.extract_strided_slice %127 {offsets = [0, 13], sizes = [4, 16], strides = [1, 1]} : vector<4x34xf32> to vector<4x16xf32>
    %cst_55 = arith.constant dense<0.000000e+00> : vector<40x16xf32>
    %197 = tpu.matmul %195, %196, %cst_55 {dimension_numbers = #tpu.dot_dimension_numbers<[1], [0], [0], [1], [0, 0, 1, 1], [], []>} : vector<40x4xf32>, vector<4x16xf32>, vector<40x16xf32> -> vector<40x16xf32>
    %198 = arith.addf %193, %197 : vector<40x16xf32>
    %199 = vector.extract_strided_slice %0 {offsets = [14, 0, 0], sizes = [1, 40, 4], strides = [1, 1, 1]} : vector<19x40x4xf32> to vector<1x40x4xf32>
    %200 = vector.shape_cast %199 : vector<1x40x4xf32> to vector<40x4xf32>
    %201 = vector.extract_strided_slice %127 {offsets = [0, 14], sizes = [4, 16], strides = [1, 1]} : vector<4x34xf32> to vector<4x16xf32>
    %cst_56 = arith.constant dense<0.000000e+00> : vector<40x16xf32>
    %202 = tpu.matmul %200, %201, %cst_56 {dimension_numbers = #tpu.dot_dimension_numbers<[1], [0], [0], [1], [0, 0, 1, 1], [], []>} : vector<40x4xf32>, vector<4x16xf32>, vector<40x16xf32> -> vector<40x16xf32>
    %203 = arith.addf %198, %202 : vector<40x16xf32>
    %204 = vector.extract_strided_slice %0 {offsets = [15, 0, 0], sizes = [1, 40, 4], strides = [1, 1, 1]} : vector<19x40x4xf32> to vector<1x40x4xf32>
    %205 = vector.shape_cast %204 : vector<1x40x4xf32> to vector<40x4xf32>
    %206 = vector.extract_strided_slice %127 {offsets = [0, 15], sizes = [4, 16], strides = [1, 1]} : vector<4x34xf32> to vector<4x16xf32>
    %cst_57 = arith.constant dense<0.000000e+00> : vector<40x16xf32>
    %207 = tpu.matmul %205, %206, %cst_57 {dimension_numbers = #tpu.dot_dimension_numbers<[1], [0], [0], [1], [0, 0, 1, 1], [], []>} : vector<40x4xf32>, vector<4x16xf32>, vector<40x16xf32> -> vector<40x16xf32>
    %208 = arith.addf %203, %207 : vector<40x16xf32>
    %209 = vector.extract_strided_slice %0 {offsets = [16, 0, 0], sizes = [1, 40, 4], strides = [1, 1, 1]} : vector<19x40x4xf32> to vector<1x40x4xf32>
    %210 = vector.shape_cast %209 : vector<1x40x4xf32> to vector<40x4xf32>
    %211 = vector.extract_strided_slice %127 {offsets = [0, 16], sizes = [4, 16], strides = [1, 1]} : vector<4x34xf32> to vector<4x16xf32>
    %cst_58 = arith.constant dense<0.000000e+00> : vector<40x16xf32>
    %212 = tpu.matmul %210, %211, %cst_58 {dimension_numbers = #tpu.dot_dimension_numbers<[1], [0], [0], [1], [0, 0, 1, 1], [], []>} : vector<40x4xf32>, vector<4x16xf32>, vector<40x16xf32> -> vector<40x16xf32>
    %213 = arith.addf %208, %212 : vector<40x16xf32>
    %214 = vector.extract_strided_slice %0 {offsets = [17, 0, 0], sizes = [1, 40, 4], strides = [1, 1, 1]} : vector<19x40x4xf32> to vector<1x40x4xf32>
    %215 = vector.shape_cast %214 : vector<1x40x4xf32> to vector<40x4xf32>
    %216 = vector.extract_strided_slice %127 {offsets = [0, 17], sizes = [4, 16], strides = [1, 1]} : vector<4x34xf32> to vector<4x16xf32>
    %cst_59 = arith.constant dense<0.000000e+00> : vector<40x16xf32>
    %217 = tpu.matmul %215, %216, %cst_59 {dimension_numbers = #tpu.dot_dimension_numbers<[1], [0], [0], [1], [0, 0, 1, 1], [], []>} : vector<40x4xf32>, vector<4x16xf32>, vector<40x16xf32> -> vector<40x16xf32>
    %218 = arith.addf %213, %217 : vector<40x16xf32>
    %219 = vector.extract_strided_slice %0 {offsets = [18, 0, 0], sizes = [1, 40, 4], strides = [1, 1, 1]} : vector<19x40x4xf32> to vector<1x40x4xf32>
    %220 = vector.shape_cast %219 : vector<1x40x4xf32> to vector<40x4xf32>
    %221 = vector.extract_strided_slice %127 {offsets = [0, 18], sizes = [4, 16], strides = [1, 1]} : vector<4x34xf32> to vector<4x16xf32>
    %cst_60 = arith.constant dense<0.000000e+00> : vector<40x16xf32>
    %222 = tpu.matmul %220, %221, %cst_60 {dimension_numbers = #tpu.dot_dimension_numbers<[1], [0], [0], [1], [0, 0, 1, 1], [], []>} : vector<40x4xf32>, vector<4x16xf32>, vector<40x16xf32> -> vector<40x16xf32>
    %223 = arith.addf %218, %222 : vector<40x16xf32>
    %224 = vector.broadcast %1 : vector<40x1xf32> to vector<40x16xf32>
    %225 = arith.addf %223, %224 : vector<40x16xf32>
    %226 = arith.negf %225 : vector<40x16xf32>
    %227 = math.exp %226 : vector<40x16xf32>
    %cst_61 = arith.constant 1.000000e+00 : f32
    %228 = vector.broadcast %cst_61 : f32 to vector<40x16xf32>
    %229 = arith.addf %228, %227 : vector<40x16xf32>
    %230 = arith.divf %228, %229 : vector<40x16xf32>
    %231 = arith.mulf %225, %230 : vector<40x16xf32>
    %232 = vector.extract_strided_slice %127 {offsets = [0, 9], sizes = [4, 16], strides = [1, 1]} : vector<4x34xf32> to vector<4x16xf32>
    %cst_62 = arith.constant dense<0.000000e+00> : vector<8x16xf32>
    %233 = tpu.matmul %2, %231, %cst_62 {dimension_numbers = #tpu.dot_dimension_numbers<[1], [0], [0], [1], [0, 0, 1, 1], [], []>} : vector<8x40xf32>, vector<40x16xf32>, vector<8x16xf32> -> vector<8x16xf32>
    %cst_63 = arith.constant dense<0.000000e+00> : vector<8x16xf32>
    %234 = tpu.matmul %3, %232, %cst_63 {dimension_numbers = #tpu.dot_dimension_numbers<[1], [0], [0], [1], [0, 0, 1, 1], [], []>} : vector<8x4xf32>, vector<4x16xf32>, vector<8x16xf32> -> vector<8x16xf32>
    %235 = arith.addf %233, %234 : vector<8x16xf32>
    %236 = vector.broadcast %4 : vector<8x1xf32> to vector<8x16xf32>
    %237 = arith.addf %235, %236 : vector<8x16xf32>
    %238 = arith.negf %237 : vector<8x16xf32>
    %239 = math.exp %238 : vector<8x16xf32>
    %cst_64 = arith.constant 1.000000e+00 : f32
    %240 = vector.broadcast %cst_64 : f32 to vector<8x16xf32>
    %241 = arith.addf %240, %239 : vector<8x16xf32>
    %242 = arith.divf %240, %241 : vector<8x16xf32>
    %243 = arith.mulf %237, %242 : vector<8x16xf32>
    %c1_65 = arith.constant 1 : index
    %c0_66 = arith.constant 0 : index
    %c0_67 = arith.constant 0 : index
    %244 = vector.load %arg7[%c1_65, %c0_66, %c0_67] : memref<2x8x16xf32, #tpu.memory_space<vmem>>, vector<1x8x16xf32>
    %245 = vector.shape_cast %244 : vector<1x8x16xf32> to vector<8x16xf32>
    %246 = vector.shape_cast %243 : vector<8x16xf32> to vector<1x8x16xf32>
    tpu.vector_store %arg7[%c1_65, %c0_66, %c0_67], %246 {strides = array<i32>} : memref<2x8x16xf32, #tpu.memory_space<vmem>>, vector<1x8x16xf32>,
    return
  }
  func.func @transform_0(%arg0: i32) -> (i32, i32, i32) {
    %c0_i32 = arith.constant 0 : i32
    %c0_i32_0 = arith.constant 0 : i32
    %c0_i32_1 = arith.constant 0 : i32
    return %arg0, %c0_i32, %c0_i32_0 : i32, i32, i32
  }
  func.func @transform_1(%arg0: i32) -> (i32, i32, i32) {
    %c0_i32 = arith.constant 0 : i32
    %c0_i32_0 = arith.constant 0 : i32
    %c0_i32_1 = arith.constant 0 : i32
    %c0_i32_2 = arith.constant 0 : i32
    return %c0_i32, %c0_i32_0, %c0_i32_1 : i32, i32, i32
  }
  func.func @transform_2(%arg0: i32) -> (i32, i32) {
    %c0_i32 = arith.constant 0 : i32
    %c0_i32_0 = arith.constant 0 : i32
    %c0_i32_1 = arith.constant 0 : i32
    return %c0_i32, %c0_i32_0 : i32, i32
  }
  func.func @transform_3(%arg0: i32) -> (i32, i32) {
    %c0_i32 = arith.constant 0 : i32
    %c0_i32_0 = arith.constant 0 : i32
    %c0_i32_1 = arith.constant 0 : i32
    return %c0_i32, %c0_i32_0 : i32, i32
  }
  func.func @transform_4(%arg0: i32) -> (i32, i32) {
    %c0_i32 = arith.constant 0 : i32
    %c0_i32_0 = arith.constant 0 : i32
    %c0_i32_1 = arith.constant 0 : i32
    return %c0_i32, %c0_i32_0 : i32, i32
  }
  func.func @transform_5(%arg0: i32) -> (i32, i32) {
    %c0_i32 = arith.constant 0 : i32
    %c0_i32_0 = arith.constant 0 : i32
    %c0_i32_1 = arith.constant 0 : i32
    return %c0_i32, %c0_i32_0 : i32, i32
  }
  func.func @transform_6(%arg0: i32) -> (i32, i32, i32) {
    %c0_i32 = arith.constant 0 : i32
    %c0_i32_0 = arith.constant 0 : i32
    %c0_i32_1 = arith.constant 0 : i32
    return %arg0, %c0_i32, %c0_i32_0 : i32, i32, i32
  }
}

</mosaic_0001>

<bundles_post_ra>
// kernel: inception_block.1
= control target key start
LH: loop header
LB: loop body
LE: loop exit
PB: predicated region body
PF: predicated region fallthrough
CT: control target
= control target key end

     0   :  { %vm147_vm0 = vcmask 1043456   ;;  %s5924_s23 = smov 125   ;;  %s5925_s24 = smov 127   ;;  %vm131_vm1 = vcmask 31744   ;;  %v7574_v2 = vmov 0.0   ;;  %vm5927_vm2 = vmmov 0   ;;  %s7567_s0 = inlined_call_operand.vmem [shape: f32[2,4,34], index: 0, kind: input, shape index: {}]   ;;  %s7568_s1 = inlined_call_operand.vmem [shape: f32[19,40,4], index: 1, kind: input, shape index: {}]   ;;  %s7569_s2 = inlined_call_operand.vmem [shape: f32[40,1], index: 2, kind: input, shape index: {}]   ;;  %s7570_s3 = inlined_call_operand.vmem [shape: f32[8,40], index: 3, kind: input, shape index: {}]   ;;  %s7571_s4 = inlined_call_operand.vmem [shape: f32[8,4], index: 4, kind: input, shape index: {}]   ;;  %s7572_s5 = inlined_call_operand.vmem [shape: f32[8,1], index: 5, kind: input, shape index: {}]   ;;  %s7573_s6 = inlined_call_operand.hbm [shape: f32[2,8,16], index: 6, kind: output, shape index: {}]  }
   0x1   :  { %v127_v0 = vld [vmem:[%s7567_s0] sm:$0xf]  ;;  %5098 = vmatprep.subr.mxu1 %v7574_v2  ;;  %5100 = vmatprep.mubr.msk.f32.mxu1 %vm5927_vm2, %v7574_v2  ;;  %s5928_s27 = smov 126   ;;  %s5929_s28 = smov 124   ;;  %v6007_v3 = vld [vmem:[%s7568_s1 + $0x8] sm:$0xff] }
   0x2   :  { %461 = vrot.lane.b32.xlu1 %v127_v0, %s5924_s23  ;;  %129 = vrot.lane.b32.xlu0 %v127_v0, %s5925_s24  ;;  %v5992_v1 = vld [vmem:[%s7568_s1] sm:$0xff] }
   0x3   :  { %5099 = vmatpush3.msk.msra.mxu1 %vm147_vm0, %v127_v0  ;;  %5081 = vmatprep.subr.mxu0 %v7574_v2 }
   0x4   :  { %5101 = vmatmul.mubr.msk.f32.vlgmr.msra.gmra.mrb[0].mxu1 %vm131_vm1, %v5992_v1  ;;  %5132 = vmatprep.subr.mxu1 %v7574_v2 }
   0x5   :  { %5103 = vmatprep.mubr.msk.f32.mxu1 %vm5927_vm2, %v7574_v2  ;;  %5083 = vmatprep.mubr.msk.f32.mxu0 %vm5927_vm2, %v7574_v2 }
   0x6   :  { %347 = vrot.lane.b32.xlu0 %v127_v0, %s5928_s27  ;;  %575 = vrot.lane.b32.xlu1 %v127_v0, %s5929_s28 }
   0x7   :  { %11 = vsyncpa [#allocation3], 0  ;;  %s5930_s7 = smov 123   ;;  %s5931_s8 = smov 122   ;;  %v6020_v4 = vld [vmem:[%s7568_s1 + $0x10] sm:$0xff]  ;;  %v6031_v5 = vld [vmem:[%s7568_s1 + $0x18] sm:$0xff] }
   0x8   :  { %5104 = vmatmul.mubr.msk.f32.gmra.mrb[2].mxu1 %vm131_vm1, %v6007_v3  ;;  %s5932_s11 = smov 121   ;;  %s5933_s12 = smov 120   ;;  %v6042_v6 = vld [vmem:[%s7568_s1 + $0x20] sm:$0xff]  ;;  %v29_v7 = vld [vmem:[%s7568_s1 + $0x28] sm:$0xff]  ;;  %v6064_v8 = vld [vmem:[%s7568_s1 + $0x78] sm:$0xff]  ;;  %vm2423_vm3 = vcmask 326656  }
   0x9   :  { %5106 = vmatprep.mubr.msk.f32.mxu1 %vm5927_vm2, %v7574_v2  ;;  %s5934_s15 = smov 119   ;;  %s5935_s16 = smov 118   ;;  %v30_v11 = vld [vmem:[%s7568_s1 + $0x30] sm:$0xff]  ;;  %v6080_v12 = vld [vmem:[%s7568_s1 + $0x80] sm:$0xff]  ;;  %v31_v14 = vld [vmem:[%s7568_s1 + $0x38] sm:$0xff]  ;;  %vm2510_vm4 = vcmask 130048  }
   0xa   :  { %689 = vrot.lane.b32.xlu0 %v127_v0, %s5930_s7  ;;  %803 = vrot.lane.b32.xlu1 %v127_v0, %s5931_s8  ;;  %s5936_s19 = smov 117   ;;  %s5937_s20 = smov 116   ;;  %v6099_v15 = vld [vmem:[%s7568_s1 + $0x88] sm:$0xff]  ;;  %v32_v17 = vld [vmem:[%s7568_s1 + $0x40] sm:$0xff] }
   0xb   :  { %s5938_s21 = smov 115   ;;  %s5939_s22 = smov 114   ;;  %v6116_v18 = vld [vmem:[%s7568_s1 + $0x90] sm:$0xff]  ;;  %v33_v19 = vld [vmem:[%s7568_s1 + $0x48] sm:$0xff]  ;;  %v6132_v20 = vld [vmem:[%s7568_s1 + $0x98] sm:$0xff] }
   0xc   :  { %5107 = vmatmul.mubr.msk.f32.gmra.mrb[4].mxu1 %vm131_vm1, %v6020_v4  ;;  %s5940_s25 = smov 113   ;;  %s5941_s26 = smov 112   ;;  %v34_v21 = vld [vmem:[%s7568_s1 + $0x50] sm:$0xff]  ;;  %v6147_v22 = vld [vmem:[%s7568_s1 + $0xc8] sm:$0xff]  ;;  %v35_v25 = vld [vmem:[%s7568_s1 + $0x58] sm:$0xff] }
   0xd   :  { %5109 = vmatprep.mubr.msk.f32.mxu1 %vm5927_vm2, %v7574_v2  ;;  %s5942_s29 = smov 111   ;;  %s5943_s30 = smov 110   ;;  %v6161_v26 = vld [vmem:[%s7568_s1 + $0xd0] sm:$0xff]  ;;  %v36_v27 = vld [vmem:[%s7568_s1 + $0x60] sm:$0xff]  ;;  %v6181_v28 = vld [vmem:[%s7568_s1 + $0xd8] sm:$0xff] }
   0xe   :  { %917 = vrot.lane.b32.xlu0 %v127_v0, %s5932_s11  ;;  %1031 = vrot.lane.b32.xlu1 %v127_v0, %s5933_s12  ;;  %v37_v29 = vld [vmem:[%s7568_s1 + $0x68] sm:$0xff]  ;;  %v6196_v30 = vld [vmem:[%s7568_s1 + $0xe0] sm:$0xff] }
   0xf   :  { %v38_v31 = vld [vmem:[%s7568_s1 + $0x70] sm:$0xff]  ;;  %v6211_v32 = vld [vmem:[%s7568_s1 + $0xe8] sm:$0xff]  ;;  %v44_v33 = vld [vmem:[%s7568_s1 + $0xa0] sm:$0xff] }
  0x10   :  { %5110 = vmatmul.mubr.msk.f32.gmra.mrb[6].mxu1 %vm131_vm1, %v6031_v5  ;;  %v6226_v34 = vld [vmem:[%s7568_s1 + $0x118] sm:$0xff]  ;;  %v45_v37 = vld [vmem:[%s7568_s1 + $0xa8] sm:$0xff]  ;;  %v6242_v38 = vld [vmem:[%s7568_s1 + $0x120] sm:$0xff] }
  0x11   :  { %5112 = vmatprep.mubr.msk.f32.mxu1 %vm5927_vm2, %v7574_v2  ;;  %v46_v39 = vld [vmem:[%s7568_s1 + $0xb0] sm:$0xff]  ;;  %v6263_v40 = vld [vmem:[%s7568_s1 + $0x128] sm:$0xff]  ;;  %v47_v41 = vld [vmem:[%s7568_s1 + $0xb8] sm:$0xff] }
  0x12   :  { %1145 = vrot.lane.b32.xlu0 %v127_v0, %s5934_s15  ;;  %1259 = vrot.lane.b32.xlu1 %v127_v0, %s5935_s16  ;;  %v6278_v42 = vld [vmem:[%s7568_s1 + $0x130] sm:$0xff]  ;;  %v48_v43 = vld [vmem:[%s7568_s1 + $0xc0] sm:$0xff] }
  0x13   :  { %v6293_v44 = vld [vmem:[%s7568_s1 + $0x138] sm:$0xff]  ;;  %v54_v45 = vld [vmem:[%s7568_s1 + $0xf0] sm:$0xff]  ;;  %v6308_v46 = vld [vmem:[%s7568_s1 + $0x168] sm:$0xff] }
  0x14   :  { %5113 = vmatmul.mubr.msk.f32.gmra.mrb[8].mxu1 %vm131_vm1, %v6042_v6  ;;  %v55_v49 = vld [vmem:[%s7568_s1 + $0xf8] sm:$0xff]  ;;  %v6322_v50 = vld [vmem:[%s7568_s1 + $0x170] sm:$0xff]  ;;  %v56_v51 = vld [vmem:[%s7568_s1 + $0x100] sm:$0xff] }
  0x15   :  { %5134 = vmatprep.mubr.msk.f32.mxu1 %vm5927_vm2, %v7574_v2  ;;  %v6342_v52 = vld [vmem:[%s7568_s1 + $0x178] sm:$0xff]  ;;  %v57_v53 = vld [vmem:[%s7568_s1 + $0x108] sm:$0xff]  ;;  %v6357_v54 = vld [vmem:[%s7568_s1 + $0x180] sm:$0xff] }
  0x16   :  { %1373 = vrot.lane.b32.xlu0 %v127_v0, %s5936_s19  ;;  %1487 = vrot.lane.b32.xlu1 %v127_v0, %s5937_s20  ;;  %v58_v55 = vld [vmem:[%s7568_s1 + $0x110] sm:$0xff]  ;;  %v6372_v56 = vld [vmem:[%s7568_s1 + $0x188] sm:$0xff] }
  0x17   :  { %v64_v57 = vld [vmem:[%s7568_s1 + $0x140] sm:$0xff]  ;;  %v6387_v58 = vld [vmem:[%s7568_s1 + $0x1b8] sm:$0xff]  ;;  %v65_v61 = vld [vmem:[%s7568_s1 + $0x148] sm:$0xff] }
  0x18   :  { %v6401_v62 = vld [vmem:[%s7568_s1 + $0x1c0] sm:$0xff]  ;;  %v66_v63 = vld [vmem:[%s7568_s1 + $0x150] sm:$0xff] }
  0x1a   :  { %1601 = vrot.lane.b32.xlu0 %v127_v0, %s5938_s21  ;;  %1715 = vrot.lane.b32.xlu1 %v127_v0, %s5939_s22 }
  0x1e   :  { %1829 = vrot.lane.b32.xlu0 %v127_v0, %s5940_s25  ;;  %1943 = vrot.lane.b32.xlu1 %v127_v0, %s5941_s26 }
  0x22   :  { %2057 = vrot.lane.b32.xlu0 %v127_v0, %s5942_s29  ;;  %2171 = vrot.lane.b32.xlu1 %v127_v0, %s5943_s30  ;;  %v6421_v0 = vld [vmem:[%s7568_s1 + $0x1c8] sm:$0xff] }
  0x74   :  { %v462_v9 = vpop.permute.xlu1 %461  ;;  %v130_v10 = vpop.permute.xlu0 %129 }
  0x75   :  { %5082 = vmatpush3.msk.msra.mxu0 %vm147_vm0, %v130_v10  ;;  %5133 = vmatpush3.msk.msra.mxu1 %vm147_vm0, %v462_v9  ;;  %v6436_v9 = vld [vmem:[%s7568_s1 + $0x1d0] sm:$0xff]  ;;  %v68_v10 = vld [vmem:[%s7568_s1 + $0x160] sm:$0xff] }
  0x76   :  { %5084 = vmatmul.mubr.msk.f32.vlgmr.msra.gmra.mrb[0].mxu0 %vm131_vm1, %v29_v7  ;;  %5135 = vmatmul.mubr.msk.f32.vlgmr.msra.gmra.mrb[10].mxu1 %vm131_vm1, %v6064_v8  ;;  %v67_v7 = vld [vmem:[%s7568_s1 + $0x158] sm:$0xff] }
  0x77   :  { %5115 = vmatprep.subr.mxu0 %v7574_v2  ;;  %5086 = vmatprep.mubr.msk.f32.mxu0 %vm5927_vm2, %v7574_v2 }
  0x78   :  { %v348_v13 = vpop.permute.xlu0 %347  ;;  %5137 = vmatprep.mubr.msk.f32.mxu1 %vm5927_vm2, %v7574_v2  ;;  %5166 = vmatprep.subr.mxu1 %v7574_v2  ;;  %v576_v23 = vpop.permute.xlu1 %575 }
  0x79   :  { %5116 = vmatpush3.msk.msra.mxu0 %vm147_vm0, %v348_v13  ;;  %v74_v13 = vld [vmem:[%s7568_s1 + $0x190] sm:$0xff] }
  0x7a   :  { %5087 = vmatmul.mubr.msk.f32.gmra.mrb[2].mxu0 %vm131_vm1, %v30_v11  ;;  %5138 = vmatmul.mubr.msk.f32.gmra.mrb[12].mxu1 %vm131_vm1, %v6080_v12  ;;  %v6451_v11 = vld [vmem:[%s7568_s1 + $0x1d8] sm:$0xff] }
  0x7b   :  { %5089 = vmatprep.mubr.msk.f32.mxu0 %vm5927_vm2, %v7574_v2  ;;  %5140 = vmatprep.mubr.msk.f32.mxu1 %vm5927_vm2, %v7574_v2 }
  0x7c   :  { %v690_v16 = vpop.permute.xlu0 %689  ;;  %5149 = vmatprep.subr.mxu0 %v7574_v2  ;;  %v804_v35 = vpop.permute.xlu1 %803 }
  0x7d   :  { %5167 = vmatpush3.msk.msra.mxu1 %vm147_vm0, %v690_v16 }
  0x7e   :  { %5090 = vmatmul.mubr.msk.f32.gmra.mrb[4].mxu0 %vm131_vm1, %v31_v14  ;;  %5141 = vmatmul.mubr.msk.f32.gmra.mrb[14].mxu1 %vm131_vm1, %v6099_v15  ;;  %v6466_v14 = vld [vmem:[%s7568_s1 + $0x208] sm:$0xff] }
  0x7f   :  { %5092 = vmatprep.mubr.msk.f32.mxu0 %vm5927_vm2, %v7574_v2  ;;  %5143 = vmatprep.mubr.msk.f32.mxu1 %vm5927_vm2, %v7574_v2 }
  0x80   :  { %5200 = vmatprep.subr.mxu1 %v7574_v2  ;;  %v918_v24 = vpop.permute.xlu0 %917  ;;  %v1032_v47 = vpop.permute.xlu1 %1031 }
  0x82   :  { %5093 = vmatmul.mubr.msk.f32.gmra.mrb[6].mxu0 %vm131_vm1, %v32_v17  ;;  %5144 = vmatmul.mubr.msk.f32.gmra.mrb[16].mxu1 %vm131_vm1, %v6116_v18 }
  0x83   :  { %5095 = vmatprep.mubr.msk.f32.mxu0 %vm5927_vm2, %v7574_v2  ;;  %5146 = vmatprep.mubr.msk.f32.mxu1 %vm5927_vm2, %v7574_v2 }
  0x84   :  { %v6228_v36 = vpop.permute.xlu0 %1145  ;;  %v1260_v59 = vpop.permute.xlu1 %1259 }
  0x86   :  { %5096 = vmatmul.mubr.msk.f32.gmra.mrb[8].mxu0 %vm131_vm1, %v33_v19  ;;  %5147 = vmatmul.mubr.msk.f32.gmra.mrb[18].mxu1 %vm131_vm1, %v6132_v20 }
  0x87   :  { %5117 = vmatprep.mubr.msk.f32.mxu0 %vm5927_vm2, %v7574_v2  ;;  %5168 = vmatprep.mubr.msk.f32.mxu1 %vm5927_vm2, %v7574_v2 }
  0x88   :  { %v1374_v48 = vpop.permute.xlu0 %1373  ;;  %v1488_v16 = vpop.permute.xlu1 %1487 }
  0x8a   :  { %5118 = vmatmul.mubr.msk.f32.vlgmr.msra.gmra.mrb[10].mxu0 %vm131_vm1, %v34_v21  ;;  %5169 = vmatmul.mubr.msk.f32.vlgmr.msra.gmra.mrb[20].mxu1 %vm131_vm1, %v6147_v22 }
  0x8b   :  { %5120 = vmatprep.mubr.msk.f32.mxu0 %vm5927_vm2, %v7574_v2  ;;  %5150 = vmatpush3.msk.msra.mxu0 %vm147_vm0, %v576_v23  ;;  %v75_v23 = vld [vmem:[%s7568_s1 + $0x198] sm:$0xff] }
  0x8c   :  { %5171 = vmatprep.mubr.msk.f32.mxu1 %vm5927_vm2, %v7574_v2  ;;  %5201 = vmatpush3.msk.msra.mxu1 %vm147_vm0, %v918_v24  ;;  %v1602_v60 = vpop.permute.xlu0 %1601  ;;  %v6482_v24 = vld [vmem:[%s7568_s1 + $0x210] sm:$0xff] }
  0x8d   :  { %5183 = vmatprep.subr.mxu0 %v7574_v2  ;;  %5234 = vmatprep.subr.mxu1 %v7574_v2 }
  0x8e   :  { %5121 = vmatmul.mubr.msk.f32.gmra.mrb[12].mxu0 %vm131_vm1, %v35_v25  ;;  %5172 = vmatmul.mubr.msk.f32.gmra.mrb[22].mxu1 %vm131_vm1, %v6161_v26 }
  0x8f   :  { %5123 = vmatprep.mubr.msk.f32.mxu0 %vm5927_vm2, %v7574_v2  ;;  %5174 = vmatprep.mubr.msk.f32.mxu1 %vm5927_vm2, %v7574_v2 }
  0x90   :  { %v1830_v19 = vpop.permute.xlu0 %1829 }
  0x92   :  { %5124 = vmatmul.mubr.msk.f32.gmra.mrb[14].mxu0 %vm131_vm1, %v36_v27  ;;  %5175 = vmatmul.mubr.msk.f32.gmra.mrb[24].mxu1 %vm131_vm1, %v6181_v28 }
  0x93   :  { %5126 = vmatprep.mubr.msk.f32.mxu0 %vm5927_vm2, %v7574_v2  ;;  %5177 = vmatprep.mubr.msk.f32.mxu1 %vm5927_vm2, %v7574_v2 }
  0x96   :  { %5127 = vmatmul.mubr.msk.f32.gmra.mrb[16].mxu0 %vm131_vm1, %v37_v29  ;;  %5178 = vmatmul.mubr.msk.f32.gmra.mrb[26].mxu1 %vm131_vm1, %v6196_v30  ;;  %v119_v29 = vld [vmem:[%s7569_s2] sm:$0xff] }
  0x97   :  { %5129 = vmatprep.mubr.msk.f32.mxu0 %vm5927_vm2, %v7574_v2  ;;  %5180 = vmatprep.mubr.msk.f32.mxu1 %vm5927_vm2, %v7574_v2 }
  0x9a   :  { %5130 = vmatmul.mubr.msk.f32.gmra.mrb[18].mxu0 %vm131_vm1, %v38_v31  ;;  %5181 = vmatmul.mubr.msk.f32.gmra.mrb[28].mxu1 %vm131_vm1, %v6211_v32  ;;  %v76_v31 = vld [vmem:[%s7568_s1 + $0x1a0] sm:$0xff] }
  0x9b   :  { %5151 = vmatprep.mubr.msk.f32.mxu0 %vm5927_vm2, %v7574_v2  ;;  %5202 = vmatprep.mubr.msk.f32.mxu1 %vm5927_vm2, %v7574_v2 }
  0x9e   :  { %5152 = vmatmul.mubr.msk.f32.vlgmr.msra.gmra.mrb[20].mxu0 %vm131_vm1, %v44_v33  ;;  %5203 = vmatmul.mubr.msk.f32.vlgmr.msra.gmra.mrb[30].mxu1 %vm131_vm1, %v6226_v34  ;;  %v6507_v33 = vld [vmem:[%s7568_s1 + $0x218] sm:$0xff] }
  0x9f   :  { %5154 = vmatprep.mubr.msk.f32.mxu0 %vm5927_vm2, %v7574_v2  ;;  %5184 = vmatpush3.msk.msra.mxu0 %vm147_vm0, %v804_v35 }
  0xa0   :  { %5205 = vmatprep.mubr.msk.f32.mxu1 %vm5927_vm2, %v7574_v2  ;;  %5235 = vmatpush3.msk.msra.mxu1 %vm147_vm0, %v6228_v36 }
  0xa1   :  { %5217 = vmatprep.subr.mxu0 %v7574_v2  ;;  %5268 = vmatprep.subr.mxu1 %v7574_v2 }
  0xa2   :  { %5155 = vmatmul.mubr.msk.f32.gmra.mrb[22].mxu0 %vm131_vm1, %v45_v37  ;;  %5206 = vmatmul.mubr.msk.f32.gmra.mrb[32].mxu1 %vm131_vm1, %v6242_v38  ;;  %v5944_v37 = vmov 0  }
  0xa3   :  { %5157 = vmatprep.mubr.msk.f32.mxu0 %vm5927_vm2, %v7574_v2  ;;  %5208 = vmatprep.mubr.msk.f32.mxu1 %vm5927_vm2, %v7574_v2 }
  0xa4   :  { %5800 = vset.pattern.permute.xlu0 %v5944_v37  ;;  %5801 = vset.pattern.permute.xlu1 %v5944_v37  ;;  %v120_v37 = vld [vmem:[%s7569_s2 + $0x8] sm:$0xff] }
  0xa5   :  { %2287 = vperm.xlu0 %5800, %v119_v29   ;;  %v94_v29 = vld [vmem:[%s7568_s1 + $0x230] sm:$0xff]  ;;  %2292 = vperm.xlu1 %5801, %v120_v37  }
  0xa6   :  { %5158 = vmatmul.mubr.msk.f32.gmra.mrb[24].mxu0 %vm131_vm1, %v46_v39  ;;  %5209 = vmatmul.mubr.msk.f32.gmra.mrb[34].mxu1 %vm131_vm1, %v6263_v40  ;;  %v106_v37 = vld [vmem:[%s7568_s1 + $0x290] sm:$0xff] }
  0xa7   :  { %5160 = vmatprep.mubr.msk.f32.mxu0 %vm5927_vm2, %v7574_v2  ;;  %5211 = vmatprep.mubr.msk.f32.mxu1 %vm5927_vm2, %v7574_v2 }
  0xaa   :  { %5161 = vmatmul.mubr.msk.f32.gmra.mrb[26].mxu0 %vm131_vm1, %v47_v41  ;;  %5212 = vmatmul.mubr.msk.f32.gmra.mrb[36].mxu1 %vm131_vm1, %v6278_v42  ;;  %v122_v41 = vld [vmem:[%s7569_s2 + $0x18] sm:$0xff] }
  0xab   :  { %5163 = vmatprep.mubr.msk.f32.mxu0 %vm5927_vm2, %v7574_v2  ;;  %5214 = vmatprep.mubr.msk.f32.mxu1 %vm5927_vm2, %v7574_v2 }
  0xac   :  { %2302 = vperm.xlu0 %5800, %v122_v41   ;;  %v95_v41 = vld [vmem:[%s7568_s1 + $0x238] sm:$0xff] }
  0xae   :  { %5164 = vmatmul.mubr.msk.f32.gmra.mrb[28].mxu0 %vm131_vm1, %v48_v43  ;;  %5215 = vmatmul.mubr.msk.f32.gmra.mrb[38].mxu1 %vm131_vm1, %v6293_v44  ;;  %v77_v43 = vld [vmem:[%s7568_s1 + $0x1a8] sm:$0xff] }
  0xaf   :  { %5185 = vmatprep.mubr.msk.f32.mxu0 %vm5927_vm2, %v7574_v2  ;;  %5236 = vmatprep.mubr.msk.f32.mxu1 %vm5927_vm2, %v7574_v2 }
  0xb2   :  { %5186 = vmatmul.mubr.msk.f32.vlgmr.msra.gmra.mrb[30].mxu0 %vm131_vm1, %v54_v45  ;;  %5237 = vmatmul.mubr.msk.f32.vlgmr.msra.gmra.mrb[40].mxu1 %vm131_vm1, %v6308_v46  ;;  %v6527_v45 = vld [vmem:[%s7568_s1 + $0x220] sm:$0xff] }
  0xb3   :  { %5188 = vmatprep.mubr.msk.f32.mxu0 %vm5927_vm2, %v7574_v2  ;;  %5218 = vmatpush3.msk.msra.mxu0 %vm147_vm0, %v1032_v47 }
  0xb4   :  { %5239 = vmatprep.mubr.msk.f32.mxu1 %vm5927_vm2, %v7574_v2  ;;  %5269 = vmatpush3.msk.msra.mxu1 %vm147_vm0, %v1374_v48 }
  0xb5   :  { %5251 = vmatprep.subr.mxu0 %v7574_v2  ;;  %5302 = vmatprep.subr.mxu1 %v7574_v2 }
  0xb6   :  { %5189 = vmatmul.mubr.msk.f32.gmra.mrb[32].mxu0 %vm131_vm1, %v55_v49  ;;  %5240 = vmatmul.mubr.msk.f32.gmra.mrb[42].mxu1 %vm131_vm1, %v6322_v50  ;;  %v6537_v49 = vld [vmem:[%s7567_s0 + $0x4] sm:$0xf] }
  0xb7   :  { %5191 = vmatprep.mubr.msk.f32.mxu0 %vm5927_vm2, %v7574_v2  ;;  %5242 = vmatprep.mubr.msk.f32.mxu1 %vm5927_vm2, %v7574_v2 }
  0xb8   :  { %2515 = vrot.lane.b32.xlu0 %v6537_v49, %s5925_s24 }
  0xba   :  { %5192 = vmatmul.mubr.msk.f32.gmra.mrb[34].mxu0 %vm131_vm1, %v56_v51  ;;  %5243 = vmatmul.mubr.msk.f32.gmra.mrb[44].mxu1 %vm131_vm1, %v6342_v52  ;;  %v78_v51 = vld [vmem:[%s7568_s1 + $0x1b0] sm:$0xff] }
  0xbb   :  { %5194 = vmatprep.mubr.msk.f32.mxu0 %vm5927_vm2, %v7574_v2  ;;  %5245 = vmatprep.mubr.msk.f32.mxu1 %vm5927_vm2, %v7574_v2 }
  0xbc   :  { %2800 = vrot.lane.b32.xlu0 %v6537_v49, %s5924_s23 }
  0xbe   :  { %5195 = vmatmul.mubr.msk.f32.gmra.mrb[36].mxu0 %vm131_vm1, %v57_v53  ;;  %5246 = vmatmul.mubr.msk.f32.gmra.mrb[46].mxu1 %vm131_vm1, %v6357_v54  ;;  %v6549_v53 = vld [vmem:[%s7568_s1 + $0x228] sm:$0xff] }
  0xbf   :  { %5197 = vmatprep.mubr.msk.f32.mxu0 %vm5927_vm2, %v7574_v2  ;;  %5248 = vmatprep.mubr.msk.f32.mxu1 %vm5927_vm2, %v7574_v2 }
  0xc0   :  { %2998 = vrot.lane.b32.xlu0 %v6537_v49, %s5930_s7 }
  0xc2   :  { %5198 = vmatmul.mubr.msk.f32.gmra.mrb[38].mxu0 %vm131_vm1, %v58_v55  ;;  %5249 = vmatmul.mubr.msk.f32.gmra.mrb[48].mxu1 %vm131_vm1, %v6372_v56 }
  0xc3   :  { %5219 = vmatprep.mubr.msk.f32.mxu0 %vm5927_vm2, %v7574_v2  ;;  %5270 = vmatprep.mubr.msk.f32.mxu1 %vm5927_vm2, %v7574_v2 }
  0xc4   :  { %3196 = vrot.lane.b32.xlu0 %v6537_v49, %s5932_s11 }
  0xc6   :  { %5220 = vmatmul.mubr.msk.f32.vlgmr.msra.gmra.mrb[40].mxu0 %vm131_vm1, %v64_v57  ;;  %5271 = vmatmul.mubr.msk.f32.vlgmr.msra.gmra.mrb[50].mxu1 %vm131_vm1, %v6387_v58 }
  0xc7   :  { %5222 = vmatprep.mubr.msk.f32.mxu0 %vm5927_vm2, %v7574_v2  ;;  %5252 = vmatpush3.msk.msra.mxu0 %vm147_vm0, %v1260_v59  ;;  %v84_v59 = vld [vmem:[%s7568_s1 + $0x1e0] sm:$0xff] }
  0xc8   :  { %5273 = vmatprep.mubr.msk.f32.mxu1 %vm5927_vm2, %v7574_v2  ;;  %5303 = vmatpush3.msk.msra.mxu1 %vm147_vm0, %v1602_v60  ;;  %v6568_v60 = vld [vmem:[%s7568_s1 + $0x258] sm:$0xff] }
  0xc9   :  { %5285 = vmatprep.subr.mxu0 %v7574_v2  ;;  %5336 = vmatprep.subr.mxu1 %v7574_v2 }
  0xca   :  { %5223 = vmatmul.mubr.msk.f32.gmra.mrb[42].mxu0 %vm131_vm1, %v65_v61  ;;  %5274 = vmatmul.mubr.msk.f32.gmra.mrb[52].mxu1 %vm131_vm1, %v6401_v62  ;;  %v1716_v61 = vpop.permute.xlu1 %1715 }
  0xcb   :  { %5225 = vmatprep.mubr.msk.f32.mxu0 %vm5927_vm2, %v7574_v2  ;;  %5276 = vmatprep.mubr.msk.f32.mxu1 %vm5927_vm2, %v7574_v2 }
  0xcc   :  { %3394 = vrot.lane.b32.xlu0 %v6537_v49, %s5934_s15 }
  0xce   :  { %5226 = vmatmul.mubr.msk.f32.gmra.mrb[44].mxu0 %vm131_vm1, %v66_v63  ;;  %5277 = vmatmul.mubr.msk.f32.gmra.mrb[54].mxu1 %vm131_vm1, %v6421_v0  ;;  %v2058_v63 = vpop.permute.xlu0 %2057 }
  0xcf   :  { %5228 = vmatprep.mubr.msk.f32.mxu0 %vm5927_vm2, %v7574_v2  ;;  %5279 = vmatprep.mubr.msk.f32.mxu1 %vm5927_vm2, %v7574_v2 }
  0xd0   :  { %3592 = vrot.lane.b32.xlu0 %v6537_v49, %s5936_s19 }
  0xd2   :  { %5229 = vmatmul.mubr.msk.f32.gmra.mrb[46].mxu0 %vm131_vm1, %v67_v7  ;;  %5280 = vmatmul.mubr.msk.f32.gmra.mrb[56].mxu1 %vm131_vm1, %v6436_v9  ;;  %v85_v7 = vld [vmem:[%s7568_s1 + $0x1e8] sm:$0xff] }
  0xd3   :  { %5231 = vmatprep.mubr.msk.f32.mxu0 %vm5927_vm2, %v7574_v2  ;;  %5282 = vmatprep.mubr.msk.f32.mxu1 %vm5927_vm2, %v7574_v2 }
  0xd4   :  { %3790 = vrot.lane.b32.xlu0 %v6537_v49, %s5938_s21 }
  0xd6   :  { %5232 = vmatmul.mubr.msk.f32.gmra.mrb[48].mxu0 %vm131_vm1, %v68_v10  ;;  %5283 = vmatmul.mubr.msk.f32.gmra.mrb[58].mxu1 %vm131_vm1, %v6451_v11  ;;  %v6584_v10 = vld [vmem:[%s7568_s1 + $0x260] sm:$0xff] }
  0xd7   :  { %5253 = vmatprep.mubr.msk.f32.mxu0 %vm5927_vm2, %v7574_v2  ;;  %5304 = vmatprep.mubr.msk.f32.mxu1 %vm5927_vm2, %v7574_v2  ;;  %v6468_v17 = vpop.f32.mrb[0].mxu1 }
  0xd8   :  { %v5102_v21 = vpop.f32.mrb[1].mxu1  ;;  %3988 = vrot.lane.b32.xlu0 %v6537_v49, %s5940_s25 }
  0xd9   :  { %v6621_v21 = vld [vmem:[%s7568_s1 + $0x270] sm:$0xff] }
  0xda   :  { %5254 = vmatmul.mubr.msk.f32.vlgmr.msra.gmra.mrb[50].mxu0 %vm131_vm1, %v74_v13  ;;  %5305 = vmatmul.mubr.msk.f32.vlgmr.msra.gmra.mrb[60].mxu1 %vm131_vm1, %v6466_v14  ;;  %v86_v13 = vld [vmem:[%s7568_s1 + $0x1f0] sm:$0xff] }
  0xdb   :  { %5256 = vmatprep.mubr.msk.f32.mxu0 %vm5927_vm2, %v7574_v2  ;;  %5286 = vmatpush3.msk.msra.mxu0 %vm147_vm0, %v1488_v16  ;;  %v6487_v25 = vpop.f32.mrb[2].mxu1  ;;  %v6604_v16 = vld [vmem:[%s7568_s1 + $0x268] sm:$0xff] }
  0xdc   :  { %5307 = vmatprep.mubr.msk.f32.mxu1 %vm5927_vm2, %v7574_v2  ;;  %5337 = vmatpush3.msk.msra.mxu1 %vm147_vm0, %v1830_v19  ;;  %v5105_v27 = vpop.f32.mrb[3].mxu1  ;;  %v87_v19 = vld [vmem:[%s7568_s1 + $0x1f8] sm:$0xff] }
  0xdd   :  { %5319 = vmatprep.subr.mxu0 %v7574_v2  ;;  %5370 = vmatprep.subr.mxu1 %v7574_v2  ;;  %v6638_v27 = vld [vmem:[%s7568_s1 + $0x278] sm:$0xff] }
  0xde   :  { %5257 = vmatmul.mubr.msk.f32.gmra.mrb[52].mxu0 %vm131_vm1, %v75_v23  ;;  %5308 = vmatmul.mubr.msk.f32.gmra.mrb[62].mxu1 %vm131_vm1, %v6482_v24  ;;  %v88_v23 = vld [vmem:[%s7568_s1 + $0x200] sm:$0xff]  ;;  %7583 = vst [vmem:[#allocation5_spill] sm:$0xff] %v6638_v27 }
  0xdf   :  { %5259 = vmatprep.mubr.msk.f32.mxu0 %vm5927_vm2, %v7574_v2  ;;  %5310 = vmatprep.mubr.msk.f32.mxu1 %vm5927_vm2, %v7574_v2  ;;  %v6509_v35 = vpop.f32.mrb[4].mxu1 }
  0xe0   :  { %v5108_v39 = vpop.f32.mrb[5].mxu1  ;;  %4186 = vrot.lane.b32.xlu0 %v6537_v49, %s5942_s29 }
  0xe1   :  { %v1944_v39 = vpop.permute.xlu1 %1943 }
  0xe2   :  { %5260 = vmatmul.mubr.msk.f32.gmra.mrb[54].mxu0 %vm131_vm1, %v76_v31  ;;  %5311 = vmatmul.mubr.msk.f32.gmra.mrb[64].mxu1 %vm131_vm1, %v6507_v33  ;;  %v6655_v31 = vld [vmem:[%s7568_s1 + $0x2a8] sm:$0xff] }
  0xe3   :  { %5262 = vmatprep.mubr.msk.f32.mxu0 %vm5927_vm2, %v7574_v2  ;;  %5313 = vmatprep.mubr.msk.f32.mxu1 %vm5927_vm2, %v7574_v2  ;;  %v6529_v47 = vpop.f32.mrb[6].mxu1  ;;  %7584 = vst [vmem:[#allocation6_spill] sm:$0xff] %v6655_v31 }
  0xe4   :  { %v5111_v48 = vpop.f32.mrb[7].mxu1 }
  0xe5   :  { %v96_v48 = vld [vmem:[%s7568_s1 + $0x240] sm:$0xff] }
  0xe6   :  { %5263 = vmatmul.mubr.msk.f32.gmra.mrb[56].mxu0 %vm131_vm1, %v77_v43  ;;  %5314 = vmatmul.mubr.msk.f32.gmra.mrb[66].mxu1 %vm131_vm1, %v6527_v45  ;;  %v6675_v43 = vld [vmem:[%s7568_s1 + $0x2b0] sm:$0xff] }
  0xe7   :  { %5265 = vmatprep.mubr.msk.f32.mxu0 %vm5927_vm2, %v7574_v2  ;;  %5316 = vmatprep.mubr.msk.f32.mxu1 %vm5927_vm2, %v7574_v2  ;;  %v6551_v55 = vpop.f32.mrb[8].mxu1  ;;  %7585 = vst [vmem:[#allocation7_spill] sm:$0xff] %v6675_v43 }
  0xe8   :  { %v5114_v57 = vpop.f32.mrb[9].mxu1 }
  0xe9   :  { %v123_v57 = vld [vmem:[%s7569_s2 + $0x20] sm:$0xff] }
  0xea   :  { %5266 = vmatmul.mubr.msk.f32.gmra.mrb[58].mxu0 %vm131_vm1, %v78_v51  ;;  %5317 = vmatmul.mubr.msk.f32.gmra.mrb[68].mxu1 %vm131_vm1, %v6549_v53  ;;  %v6699_v51 = vld [vmem:[%s7568_s1 + $0x2b8] sm:$0xff] }
  0xeb   :  { %5287 = vmatprep.mubr.msk.f32.mxu0 %vm5927_vm2, %v7574_v2  ;;  %5338 = vmatprep.mubr.msk.f32.mxu1 %vm5927_vm2, %v7574_v2  ;;  %7586 = vst [vmem:[#allocation8_spill] sm:$0xff] %v6699_v51 }
  0xee   :  { %5288 = vmatmul.mubr.msk.f32.vlgmr.msra.gmra.mrb[60].mxu0 %vm131_vm1, %v84_v59  ;;  %5339 = vmatmul.mubr.msk.f32.vlgmr.msra.gmra.mrb[70].mxu1 %vm131_vm1, %v6568_v60  ;;  %v97_v59 = vld [vmem:[%s7568_s1 + $0x248] sm:$0xff] }
  0xef   :  { %5290 = vmatprep.mubr.msk.f32.mxu0 %vm5927_vm2, %v7574_v2  ;;  %5320 = vmatpush3.msk.msra.mxu0 %vm147_vm0, %v1716_v61  ;;  %v6719_v61 = vld [vmem:[%s7568_s1 + $0x2c0] sm:$0xff] }
  0xf0   :  { %5341 = vmatprep.mubr.msk.f32.mxu1 %vm5927_vm2, %v7574_v2  ;;  %5371 = vmatpush3.msk.msra.mxu1 %vm147_vm0, %v2058_v63  ;;  %7587 = vst [vmem:[#allocation9_spill] sm:$0xff] %v6719_v61  ;;  %v126_v63 = vld [vmem:[%s7572_s5] sm:$0xff] }
  0xf1   :  { %5404 = vmatprep.subr.mxu1 %v7574_v2  ;;  %5353 = vmatprep.subr.mxu0 %v7574_v2 }
  0xf2   :  { %5291 = vmatmul.mubr.msk.f32.gmra.mrb[62].mxu0 %vm131_vm1, %v85_v7  ;;  %5342 = vmatmul.mubr.msk.f32.gmra.mrb[72].mxu1 %vm131_vm1, %v6584_v10  ;;  %v98_v7 = vld [vmem:[%s7568_s1 + $0x250] sm:$0xff] }
  0xf3   :  { %5293 = vmatprep.mubr.msk.f32.mxu0 %vm5927_vm2, %v7574_v2  ;;  %5344 = vmatprep.mubr.msk.f32.mxu1 %vm5927_vm2, %v7574_v2 }
  0xf4   :  { %2499 = vperm.xlu0 %5800, %v126_v63   ;;  %v118_v63 = vld [vmem:[%s7568_s1 + $0x2f0] sm:$0xff] }
  0xf6   :  { %5294 = vmatmul.mubr.msk.f32.gmra.mrb[64].mxu0 %vm131_vm1, %v86_v13  ;;  %5345 = vmatmul.mubr.msk.f32.gmra.mrb[74].mxu1 %vm131_vm1, %v6604_v16  ;;  %v6739_v13 = vld [vmem:[%s7568_s1 + $0x2c8] sm:$0xff] }
  0xf7   :  { %5296 = vmatprep.mubr.msk.f32.mxu0 %vm5927_vm2, %v7574_v2  ;;  %5347 = vmatprep.mubr.msk.f32.mxu1 %vm5927_vm2, %v7574_v2  ;;  %7588 = vst [vmem:[#allocation10_spill] sm:$0xff] %v6739_v13 }
  0xfa   :  { %5297 = vmatmul.mubr.msk.f32.gmra.mrb[66].mxu0 %vm131_vm1, %v87_v19  ;;  %5348 = vmatmul.mubr.msk.f32.gmra.mrb[76].mxu1 %vm131_vm1, %v6621_v21  ;;  %v104_v19 = vld [vmem:[%s7568_s1 + $0x280] sm:$0xff] }
  0xfb   :  { %5299 = vmatprep.mubr.msk.f32.mxu0 %vm5927_vm2, %v7574_v2  ;;  %5350 = vmatprep.mubr.msk.f32.mxu1 %vm5927_vm2, %v7574_v2 }
  0xfe   :  { %5300 = vmatmul.mubr.msk.f32.gmra.mrb[68].mxu0 %vm131_vm1, %v88_v23  ;;  %5351 = vmatmul.mubr.msk.f32.gmra.mrb[78].mxu1 %vm131_vm1, %v6638_v27  ;;  %v2172_v23 = vpop.permute.xlu1 %2171 }
  0xff   :  { %5321 = vmatprep.mubr.msk.f32.mxu0 %vm5927_vm2, %v7574_v2  ;;  %5372 = vmatprep.mubr.msk.f32.mxu1 %vm5927_vm2, %v7574_v2 }
 0x102   :  { %5322 = vmatmul.mubr.msk.f32.vlgmr.msra.gmra.mrb[70].mxu0 %vm131_vm1, %v94_v29  ;;  %5373 = vmatmul.mubr.msk.f32.vlgmr.msra.gmra.mrb[80].mxu1 %vm131_vm1, %v6655_v31  ;;  %v105_v29 = vld [vmem:[%s7568_s1 + $0x288] sm:$0xff] }
 0x103   :  { %5405 = vmatpush3.msk.msra.mxu1 %vm147_vm0, %v6228_v36  ;;  %5324 = vmatprep.mubr.msk.f32.mxu0 %vm5927_vm2, %v7574_v2  ;;  %v121_v36 = vld [vmem:[%s7569_s2 + $0x10] sm:$0xff] }
 0x104   :  { %5354 = vmatpush3.msk.msra.mxu0 %vm147_vm0, %v1944_v39  ;;  %5375 = vmatprep.mubr.msk.f32.mxu1 %vm5927_vm2, %v7574_v2  ;;  %v107_v39 = vld [vmem:[%s7568_s1 + $0x298] sm:$0xff] }
 0x105   :  { %5387 = vmatprep.subr.mxu0 %v7574_v2  ;;  %2297 = vperm.xlu1 %5801, %v121_v36   ;;  %v114_v36 = vld [vmem:[%s7568_s1 + $0x2d0] sm:$0xff] }
 0x106   :  { %5325 = vmatmul.mubr.msk.f32.gmra.mrb[72].mxu0 %vm131_vm1, %v95_v41  ;;  %5376 = vmatmul.mubr.msk.f32.gmra.mrb[82].mxu1 %vm131_vm1, %v6675_v43  ;;  %v108_v41 = vld [vmem:[%s7568_s1 + $0x2a0] sm:$0xff] }
 0x107   :  { %5327 = vmatprep.mubr.msk.f32.mxu0 %vm5927_vm2, %v7574_v2  ;;  %5378 = vmatprep.mubr.msk.f32.mxu1 %vm5927_vm2, %v7574_v2 }
 0x109   :  { %2307 = vperm.xlu1 %5801, %v123_v57   ;;  %v116_v57 = vld [vmem:[%s7568_s1 + $0x2e0] sm:$0xff] }
 0x10a   :  { %5328 = vmatmul.mubr.msk.f32.gmra.mrb[74].mxu0 %vm131_vm1, %v96_v48  ;;  %5379 = vmatmul.mubr.msk.f32.gmra.mrb[84].mxu1 %vm131_vm1, %v6699_v51  ;;  %v115_v48 = vld [vmem:[%s7568_s1 + $0x2d8] sm:$0xff] }
 0x10b   :  { %5330 = vmatprep.mubr.msk.f32.mxu0 %vm5927_vm2, %v7574_v2  ;;  %5381 = vmatprep.mubr.msk.f32.mxu1 %vm5927_vm2, %v7574_v2 }
 0x10d   :  { %2701 = vrot.lane.b32.xlu1 %v6537_v49, %s5928_s27 }
 0x10e   :  { %5331 = vmatmul.mubr.msk.f32.gmra.mrb[76].mxu0 %vm131_vm1, %v97_v59  ;;  %5382 = vmatmul.mubr.msk.f32.gmra.mrb[86].mxu1 %vm131_vm1, %v6719_v61  ;;  %v117_v59 = vld [vmem:[%s7568_s1 + $0x2e8] sm:$0xff] }
 0x10f   :  { %5333 = vmatprep.mubr.msk.f32.mxu0 %vm5927_vm2, %v7574_v2  ;;  %5384 = vmatprep.mubr.msk.f32.mxu1 %vm5927_vm2, %v7574_v2 }
 0x111   :  { %2899 = vrot.lane.b32.xlu1 %v6537_v49, %s5929_s28 }
 0x112   :  { %5334 = vmatmul.mubr.msk.f32.gmra.mrb[78].mxu0 %vm131_vm1, %v98_v7  ;;  %5385 = vmatmul.mubr.msk.f32.gmra.mrb[88].mxu1 %vm131_vm1, %v6739_v13 }
 0x113   :  { %5355 = vmatprep.mubr.msk.f32.mxu0 %vm5927_vm2, %v7574_v2  ;;  %5406 = vmatprep.mubr.msk.f32.mxu1 %vm5927_vm2, %v7574_v2 }
 0x115   :  { %3097 = vrot.lane.b32.xlu1 %v6537_v49, %s5931_s8 }
 0x116   :  { %5356 = vmatmul.mubr.msk.f32.vlgmr.msra.gmra.mrb[80].mxu0 %vm131_vm1, %v104_v19 }
 0x117   :  { %5358 = vmatprep.mubr.msk.f32.mxu0 %vm5927_vm2, %v7574_v2  ;;  %5388 = vmatpush3.msk.msra.mxu0 %vm147_vm0, %v2172_v23 }
 0x118   :  { %5439 = vmatprep.subr.mxu0 %v7574_v2 }
 0x119   :  { %3295 = vrot.lane.b32.xlu1 %v6537_v49, %s5933_s12 }
 0x11a   :  { %5359 = vmatmul.mubr.msk.f32.gmra.mrb[82].mxu0 %vm131_vm1, %v105_v29 }
 0x11b   :  { %5361 = vmatprep.mubr.msk.f32.mxu0 %vm5927_vm2, %v7574_v2 }
 0x11d   :  { %3493 = vrot.lane.b32.xlu1 %v6537_v49, %s5935_s16 }
 0x11e   :  { %5362 = vmatmul.mubr.msk.f32.gmra.mrb[84].mxu0 %vm131_vm1, %v106_v37 }
 0x11f   :  { %5364 = vmatprep.mubr.msk.f32.mxu0 %vm5927_vm2, %v7574_v2 }
 0x121   :  { %3691 = vrot.lane.b32.xlu1 %v6537_v49, %s5937_s20 }
 0x122   :  { %5365 = vmatmul.mubr.msk.f32.gmra.mrb[86].mxu0 %vm131_vm1, %v107_v39 }
 0x123   :  { %5367 = vmatprep.mubr.msk.f32.mxu0 %vm5927_vm2, %v7574_v2 }
 0x125   :  { %3889 = vrot.lane.b32.xlu1 %v6537_v49, %s5939_s22 }
 0x126   :  { %5368 = vmatmul.mubr.msk.f32.gmra.mrb[88].mxu0 %vm131_vm1, %v108_v41 }
 0x127   :  { %5389 = vmatprep.mubr.msk.f32.mxu0 %vm5927_vm2, %v7574_v2 }
 0x129   :  { %4087 = vrot.lane.b32.xlu1 %v6537_v49, %s5941_s26 }
 0x12a   :  { %5390 = vmatmul.mubr.msk.f32.vlgmr.msra.gmra.mrb[90].mxu0 %vm131_vm1, %v114_v36 }
 0x12b   :  { %5392 = vmatprep.mubr.msk.f32.mxu0 %vm5927_vm2, %v7574_v2  ;;  %5440 = vmatpush3.msk.msra.mxu0 %vm147_vm0, %v6537_v49 }
 0x12c   :  { %5473 = vmatprep.subr.mxu0 %v7574_v2 }
 0x12d   :  { %4285 = vrot.lane.b32.xlu1 %v6537_v49, %s5943_s30 }
 0x12e   :  { %5393 = vmatmul.mubr.msk.f32.gmra.mrb[92].mxu0 %vm131_vm1, %v115_v48 }
 0x12f   :  { %5395 = vmatprep.mubr.msk.f32.mxu0 %vm5927_vm2, %v7574_v2 }
 0x132   :  { %5396 = vmatmul.mubr.msk.f32.gmra.mrb[94].mxu0 %vm131_vm1, %v116_v57 }
 0x133   :  { %5398 = vmatprep.mubr.msk.f32.mxu0 %vm5927_vm2, %v7574_v2 }
 0x136   :  { %5399 = vmatmul.mubr.msk.f32.gmra.mrb[96].mxu0 %vm131_vm1, %v117_v59 }
 0x137   :  { %5401 = vmatprep.mubr.msk.f32.mxu0 %vm5927_vm2, %v7574_v2 }
 0x13a   :  { %5402 = vmatmul.mubr.msk.f32.gmra.mrb[98].mxu0 %vm131_vm1, %v118_v63 }
 0x13b   :  { %5441 = vmatprep.mubr.msk.f32.mxu0 %vm5927_vm2, %v7574_v2 }
 0x13e   :  { %5442 = vmatmul.mubr.msk.f32.vlgmr.msra.gmra.mrb[100].mxu0 %vm131_vm1, %v5992_v1 }
 0x13f   :  { %5444 = vmatprep.mubr.msk.f32.mxu0 %vm5927_vm2, %v7574_v2 }
 0x142   :  { %5445 = vmatmul.mubr.msk.f32.gmra.mrb[102].mxu0 %vm131_vm1, %v6007_v3 }
 0x143   :  { %5447 = vmatprep.mubr.msk.f32.mxu0 %vm5927_vm2, %v7574_v2 }
 0x146   :  { %5448 = vmatmul.mubr.msk.f32.gmra.mrb[104].mxu0 %vm131_vm1, %v6020_v4 }
 0x147   :  { %5450 = vmatprep.mubr.msk.f32.mxu0 %vm5927_vm2, %v7574_v2 }
 0x149   :  { %v216_v49 = vpop.f32.mrb[0].mxu0  ;;  %v546_v7 = vpop.f32.mrb[10].mxu1 }
 0x14a   :  { %v5085_v19 = vpop.f32.mrb[1].mxu0  ;;  %v324_v1 = vadd.f32 %v6468_v17, %v216_v49  ;;  %v5136_v23 = vpop.f32.mrb[11].mxu1  ;;  %5451 = vmatmul.mubr.msk.f32.gmra.mrb[106].mxu0 %vm131_vm1, %v6031_v5 }
 0x14b   :  { %5453 = vmatprep.mubr.msk.f32.mxu0 %vm5927_vm2, %v7574_v2 }
 0x14d   :  { %v221_v3 = vpop.f32.mrb[2].mxu0  ;;  %v551_v29 = vpop.f32.mrb[12].mxu1 }
 0x14e   :  { %v5088_v37 = vpop.f32.mrb[3].mxu0  ;;  %v329_v4 = vadd.f32 %v6487_v25, %v221_v3  ;;  %v5139_v39 = vpop.f32.mrb[13].mxu1  ;;  %5454 = vmatmul.mubr.msk.f32.gmra.mrb[108].mxu0 %vm131_vm1, %v6042_v6 }
 0x14f   :  { %5475 = vmatprep.mubr.msk.f32.mxu0 %vm5927_vm2, %v7574_v2 }
 0x151   :  { %v226_v17 = vpop.f32.mrb[4].mxu0  ;;  %v556_v41 = vpop.f32.mrb[14].mxu1 }
 0x152   :  { %v5091_v36 = vpop.f32.mrb[5].mxu0  ;;  %v334_v5 = vadd.f32 %v6509_v35, %v226_v17  ;;  %v5142_v48 = vpop.f32.mrb[15].mxu1 }
 0x153   :  { %v6856_v35 = vpop.permute.xlu0 %2287 }
 0x154   :  { %7589 = vst [vmem:[#allocation11_spill] sm:$0xff] %v6856_v35 }
 0x155   :  { %v231_v57 = vpop.f32.mrb[6].mxu0  ;;  %v561_v59 = vpop.f32.mrb[16].mxu1 }
 0x156   :  { %v5094_v63 = vpop.f32.mrb[7].mxu0  ;;  %v339_v49 = vadd.f32 %v6529_v47, %v231_v57  ;;  %v5145_v19 = vpop.f32.mrb[17].mxu1 }
 0x157   :  { %v6858_v19 = vpop.permute.xlu0 %2302 }
 0x159   :  { %v236_v25 = vpop.f32.mrb[8].mxu0  ;;  %v566_v23 = vpop.f32.mrb[18].mxu1 }
 0x15a   :  { %v5097_v3 = vpop.f32.mrb[9].mxu0  ;;  %v344_v6 = vadd.f32 %v6551_v55, %v236_v25  ;;  %v5148_v37 = vpop.f32.mrb[19].mxu1 }
 0x15d   :  { %v432_v39 = vpop.f32.mrb[10].mxu0  ;;  %v774_v2 = vpop.f32.mrb[20].mxu1 }
 0x15e   :  { %v456_v13 = vadd.f32 %v432_v39, %v324_v1  ;;  %v5119_v61 = vpop.f32.mrb[11].mxu0  ;;  %v5170_v36 = vpop.f32.mrb[21].mxu1 }
 0x15f   :  { %v6860_v1 = vpop.permute.xlu0 %2515 }
 0x160   :  { %v570_v51 = vadd.f32 %v546_v7, %v456_v13 }
 0x161   :  { %v437_v17 = vpop.f32.mrb[12].mxu0  ;;  %v779_v48 = vpop.f32.mrb[22].mxu1 }
 0x162   :  { %v457_v63 = vadd.f32 %v437_v17, %v329_v4  ;;  %v5122_v43 = vpop.f32.mrb[13].mxu0  ;;  %v5173_v47 = vpop.f32.mrb[23].mxu1 }
 0x163   :  { %v2801_v4 = vpop.permute.xlu0 %2800 }
 0x164   :  { %v571_v57 = vadd.f32 %v551_v29, %v457_v63  ;;  %5474 = vmatpush3.msk.msra.mxu0 %vm147_vm0, %v2801_v4 }
 0x165   :  { %v442_v3 = vpop.f32.mrb[14].mxu0  ;;  %v784_v31 = vpop.f32.mrb[24].mxu1  ;;  %5476 = vmatmul.mubr.msk.f32.vlgmr.msra.gmra.mrb[110].mxu0 %vm131_vm1, %v6064_v8 }
 0x166   :  { %v458_v55 = vadd.f32 %v442_v3, %v334_v5  ;;  %v5125_v25 = vpop.f32.mrb[15].mxu0  ;;  %v5176_v37 = vpop.f32.mrb[25].mxu1 }
 0x168   :  { %v572_v27 = vadd.f32 %v556_v41, %v458_v55  ;;  %v7590_v41 = vmov 0.0  }
 0x169   :  { %v447_v61 = vpop.f32.mrb[16].mxu0  ;;  %v789_v13 = vpop.f32.mrb[26].mxu1  ;;  %5507 = vmatprep.subr.mxu0 %v7590_v41  ;;  %5478 = vmatprep.mubr.msk.f32.mxu0 %vm5927_vm2, %v7590_v41 }
 0x16a   :  { %v459_v7 = vadd.f32 %v447_v61, %v339_v49  ;;  %v5128_v39 = vpop.f32.mrb[17].mxu0  ;;  %v5179_v36 = vpop.f32.mrb[27].mxu1  ;;  %5479 = vmatmul.mubr.msk.f32.gmra.mrb[112].mxu0 %vm131_vm1, %v6080_v12 }
 0x16b   :  { %v2999_v49 = vpop.permute.xlu0 %2998  ;;  %5481 = vmatprep.mubr.msk.f32.mxu0 %vm5927_vm2, %v7590_v41 }
 0x16c   :  { %v573_v35 = vadd.f32 %v561_v59, %v459_v7  ;;  %5508 = vmatpush3.msk.msra.mxu0 %vm147_vm0, %v2999_v49 }
 0x16d   :  { %v452_v43 = vpop.f32.mrb[18].mxu0  ;;  %v794_v17 = vpop.f32.mrb[28].mxu1  ;;  %5541 = vmatprep.subr.mxu0 %v7590_v41 }
 0x16e   :  { %v460_v29 = vadd.f32 %v452_v43, %v344_v6  ;;  %v5131_v63 = vpop.f32.mrb[19].mxu0  ;;  %v5182_v47 = vpop.f32.mrb[29].mxu1  ;;  %5482 = vmatmul.mubr.msk.f32.gmra.mrb[114].mxu0 %vm131_vm1, %v6099_v15 }
 0x16f   :  { %5484 = vmatprep.mubr.msk.f32.mxu0 %vm5927_vm2, %v7590_v41 }
 0x170   :  { %v574_v5 = vadd.f32 %v566_v23, %v460_v29 }
 0x171   :  { %v660_v3 = vpop.f32.mrb[20].mxu0  ;;  %v1002_v59 = vpop.f32.mrb[30].mxu1 }
 0x172   :  { %v684_v55 = vadd.f32 %v660_v3, %v570_v51  ;;  %v5153_v25 = vpop.f32.mrb[21].mxu0  ;;  %v5204_v37 = vpop.f32.mrb[31].mxu1  ;;  %5485 = vmatmul.mubr.msk.f32.gmra.mrb[116].mxu0 %vm131_vm1, %v6116_v18 }
 0x173   :  { %5487 = vmatprep.mubr.msk.f32.mxu0 %vm5927_vm2, %v7590_v41 }
 0x174   :  { %v798_v8 = vadd.f32 %v774_v2, %v684_v55 }
 0x175   :  { %v665_v6 = vpop.f32.mrb[22].mxu0  ;;  %v1007_v61 = vpop.f32.mrb[32].mxu1 }
 0x176   :  { %v685_v23 = vadd.f32 %v665_v6, %v571_v57  ;;  %v5156_v7 = vpop.f32.mrb[23].mxu0  ;;  %v5207_v39 = vpop.f32.mrb[33].mxu1  ;;  %5488 = vmatmul.mubr.msk.f32.gmra.mrb[118].mxu0 %vm131_vm1, %v6132_v20 }
 0x177   :  { %5509 = vmatprep.mubr.msk.f32.mxu0 %vm5927_vm2, %v7590_v41 }
 0x178   :  { %v799_v51 = vadd.f32 %v779_v48, %v685_v23  ;;  %v3197_v48 = vpop.permute.xlu0 %3196 }
 0x179   :  { %v670_v36 = vpop.f32.mrb[24].mxu0  ;;  %v1012_v12 = vpop.f32.mrb[34].mxu1 }
 0x17a   :  { %v686_v4 = vadd.f32 %v670_v36, %v572_v27  ;;  %v5159_v43 = vpop.f32.mrb[25].mxu0  ;;  %v5210_v29 = vpop.f32.mrb[35].mxu1  ;;  %5510 = vmatmul.mubr.msk.f32.vlgmr.msra.gmra.mrb[120].mxu0 %vm131_vm1, %v6147_v22 }
 0x17b   :  { %5512 = vmatprep.mubr.msk.f32.mxu0 %vm5927_vm2, %v7590_v41  ;;  %5542 = vmatpush3.msk.msra.mxu0 %vm147_vm0, %v3197_v48 }
 0x17c   :  { %v800_v2 = vadd.f32 %v784_v31, %v686_v4  ;;  %5575 = vmatprep.subr.mxu0 %v7590_v41 }
 0x17d   :  { %v675_v57 = vpop.f32.mrb[26].mxu0  ;;  %v1017_v63 = vpop.f32.mrb[36].mxu1 }
 0x17e   :  { %v687_v47 = vadd.f32 %v675_v57, %v573_v35  ;;  %v5162_v15 = vpop.f32.mrb[27].mxu0  ;;  %v5213_v49 = vpop.f32.mrb[37].mxu1  ;;  %5513 = vmatmul.mubr.msk.f32.gmra.mrb[122].mxu0 %vm131_vm1, %v6161_v26 }
 0x17f   :  { %5515 = vmatprep.mubr.msk.f32.mxu0 %vm5927_vm2, %v7590_v41 }
 0x180   :  { %v801_v27 = vadd.f32 %v789_v13, %v687_v47 }
 0x181   :  { %v680_v3 = vpop.f32.mrb[28].mxu0  ;;  %v1022_v55 = vpop.f32.mrb[38].mxu1 }
 0x182   :  { %v688_v18 = vadd.f32 %v680_v3, %v574_v5  ;;  %v5165_v25 = vpop.f32.mrb[29].mxu0  ;;  %v5216_v37 = vpop.f32.mrb[39].mxu1  ;;  %5516 = vmatmul.mubr.msk.f32.gmra.mrb[124].mxu0 %vm131_vm1, %v6181_v28 }
 0x183   :  { %5518 = vmatprep.mubr.msk.f32.mxu0 %vm5927_vm2, %v7590_v41 }
 0x184   :  { %v802_v31 = vadd.f32 %v794_v17, %v688_v18 }
 0x185   :  { %v888_v20 = vpop.f32.mrb[30].mxu0  ;;  %v1230_v35 = vpop.f32.mrb[40].mxu1 }
 0x186   :  { %v912_v13 = vadd.f32 %v888_v20, %v798_v8  ;;  %v5187_v6 = vpop.f32.mrb[31].mxu0  ;;  %v5238_v23 = vpop.f32.mrb[41].mxu1  ;;  %5519 = vmatmul.mubr.msk.f32.gmra.mrb[126].mxu0 %vm131_vm1, %v6196_v30 }
 0x187   :  { %5521 = vmatprep.mubr.msk.f32.mxu0 %vm5927_vm2, %v7590_v41 }
 0x188   :  { %v1026_v22 = vadd.f32 %v1002_v59, %v912_v13 }
 0x189   :  { %v893_v5 = vpop.f32.mrb[32].mxu0  ;;  %v1235_v7 = vpop.f32.mrb[42].mxu1 }
 0x18a   :  { %v913_v39 = vadd.f32 %v893_v5, %v799_v51  ;;  %v5190_v36 = vpop.f32.mrb[33].mxu0  ;;  %v5241_v4 = vpop.f32.mrb[43].mxu1  ;;  %5522 = vmatmul.mubr.msk.f32.gmra.mrb[128].mxu0 %vm131_vm1, %v6211_v32 }
 0x18b   :  { %5543 = vmatprep.mubr.msk.f32.mxu0 %vm5927_vm2, %v7590_v41 }
 0x18c   :  { %v1027_v17 = vadd.f32 %v1007_v61, %v913_v39 }
 0x18d   :  { %v898_v8 = vpop.f32.mrb[34].mxu0  ;;  %v1240_v43 = vpop.f32.mrb[44].mxu1 }
 0x18e   :  { %v914_v29 = vadd.f32 %v898_v8, %v800_v2  ;;  %v5193_v26 = vpop.f32.mrb[35].mxu0  ;;  %v5244_v57 = vpop.f32.mrb[45].mxu1  ;;  %5544 = vmatmul.mubr.msk.f32.vlgmr.msra.gmra.mrb[130].mxu0 %vm131_vm1, %v6226_v34 }
 0x18f   :  { %v6908_v2 = vpop.permute.xlu0 %3394  ;;  %5546 = vmatprep.mubr.msk.f32.mxu0 %vm5927_vm2, %v7590_v41 }
 0x190   :  { %v1028_v59 = vadd.f32 %v1012_v12, %v914_v29  ;;  %5576 = vmatpush3.msk.msra.mxu0 %vm147_vm0, %v6908_v2 }
 0x191   :  { %v903_v51 = vpop.f32.mrb[36].mxu0  ;;  %v1245_v47 = vpop.f32.mrb[46].mxu1  ;;  %5609 = vmatprep.subr.mxu0 %v7590_v41 }
 0x192   :  { %v915_v15 = vadd.f32 %v903_v51, %v801_v27  ;;  %v5196_v28 = vpop.f32.mrb[37].mxu0  ;;  %v5247_v49 = vpop.f32.mrb[47].mxu1  ;;  %5547 = vmatmul.mubr.msk.f32.gmra.mrb[132].mxu0 %vm131_vm1, %v6242_v38 }
 0x193   :  { %5549 = vmatprep.mubr.msk.f32.mxu0 %vm5927_vm2, %v7590_v41  ;;  %v3593_v57 = vpop.permute.xlu0 %3592 }
 0x194   :  { %v1029_v61 = vadd.f32 %v1017_v63, %v915_v15 }
 0x195   :  { %v908_v48 = vpop.f32.mrb[38].mxu0  ;;  %v1250_v30 = vpop.f32.mrb[48].mxu1 }
 0x196   :  { %v916_v3 = vadd.f32 %v908_v48, %v802_v31  ;;  %v5199_v18 = vpop.f32.mrb[39].mxu0  ;;  %v5250_v25 = vpop.f32.mrb[49].mxu1  ;;  %5550 = vmatmul.mubr.msk.f32.gmra.mrb[134].mxu0 %vm131_vm1, %v6263_v40  ;;  %v6933_v40 = vld [vmem:[%s7571_s4] sm:$0xff] }
 0x197   :  { %5552 = vmatprep.mubr.msk.f32.mxu0 %vm5927_vm2, %v7590_v41  ;;  %5407 = vmatmul.mubr.msk.f32.vlgmr.msra.gmra.mrb[90].mxu1 %vm131_vm1, %v6933_v40 }
 0x198   :  { %v1030_v32 = vadd.f32 %v1022_v55, %v916_v3  ;;  %5419 = vmatprep.mubr.msk.f32.mxu1 %vm5927_vm2, %v7590_v41 }
 0x199   :  { %v1116_v12 = vpop.f32.mrb[40].mxu0  ;;  %v1458_v63 = vpop.f32.mrb[50].mxu1 }
 0x19a   :  { %v1140_v27 = vadd.f32 %v1116_v12, %v1026_v22  ;;  %v5221_v37 = vpop.f32.mrb[41].mxu0  ;;  %v5272_v20 = vpop.f32.mrb[51].mxu1  ;;  %5553 = vmatmul.mubr.msk.f32.gmra.mrb[136].mxu0 %vm131_vm1, %v6278_v42 }
 0x19b   :  { %5555 = vmatprep.mubr.msk.f32.mxu0 %vm5927_vm2, %v7590_v41 }
 0x19c   :  { %v1254_v34 = vadd.f32 %v1230_v35, %v1140_v27 }
 0x19d   :  { %v1121_v31 = vpop.f32.mrb[42].mxu0  ;;  %v1463_v13 = vpop.f32.mrb[52].mxu1 }
 0x19e   :  { %v1141_v6 = vadd.f32 %v1121_v31, %v1027_v17  ;;  %v5224_v23 = vpop.f32.mrb[43].mxu0  ;;  %v5275_v5 = vpop.f32.mrb[53].mxu1  ;;  %v5945_v17 = vmov 0.0|0.0   ;;  %5556 = vmatmul.mubr.msk.f32.gmra.mrb[138].mxu0 %vm131_vm1, %v6293_v44 }
 0x19f   :  { %5763 = vmatprep.subr.bf16.mxu1 %v5945_v17  ;;  %5577 = vmatprep.mubr.msk.f32.mxu0 %vm5927_vm2, %v7590_v41 }
 0x1a0   :  { %v1255_v55 = vadd.f32 %v1235_v7, %v1141_v6 }
 0x1a1   :  { %v1126_v22 = vpop.f32.mrb[44].mxu0  ;;  %v1468_v39 = vpop.f32.mrb[54].mxu1 }
 0x1a2   :  { %v1142_v36 = vadd.f32 %v1126_v22, %v1028_v59  ;;  %v5227_v38 = vpop.f32.mrb[45].mxu0  ;;  %v5278_v4 = vpop.f32.mrb[55].mxu1  ;;  %5578 = vmatmul.mubr.msk.f32.vlgmr.msra.gmra.mrb[140].mxu0 %vm131_vm1, %v6308_v46 }
 0x1a3   :  { %5580 = vmatprep.mubr.msk.f32.mxu0 %vm5927_vm2, %v7590_v41  ;;  %5610 = vmatpush3.msk.msra.mxu0 %vm147_vm0, %v3593_v57 }
 0x1a4   :  { %v1256_v35 = vadd.f32 %v1240_v43, %v1142_v36  ;;  %5643 = vmatprep.subr.mxu0 %v7590_v41  ;;  %v3791_v36 = vpop.permute.xlu0 %3790 }
 0x1a5   :  { %v1131_v7 = vpop.f32.mrb[46].mxu0  ;;  %v1473_v8 = vpop.f32.mrb[56].mxu1 }
 0x1a6   :  { %v1143_v29 = vadd.f32 %v1131_v7, %v1029_v61  ;;  %v5230_v26 = vpop.f32.mrb[47].mxu0  ;;  %v5281_v42 = vpop.f32.mrb[57].mxu1  ;;  %5581 = vmatmul.mubr.msk.f32.gmra.mrb[142].mxu0 %vm131_vm1, %v6322_v50 }
 0x1a7   :  { %5583 = vmatprep.mubr.msk.f32.mxu0 %vm5927_vm2, %v7590_v41 }
 0x1a8   :  { %v1257_v43 = vadd.f32 %v1245_v47, %v1143_v29 }
 0x1a9   :  { %v1136_v59 = vpop.f32.mrb[48].mxu0  ;;  %v1478_v51 = vpop.f32.mrb[58].mxu1 }
 0x1aa   :  { %v1144_v15 = vadd.f32 %v1136_v59, %v1030_v32  ;;  %v5233_v28 = vpop.f32.mrb[49].mxu0  ;;  %v5284_v49 = vpop.f32.mrb[59].mxu1  ;;  %5584 = vmatmul.mubr.msk.f32.gmra.mrb[144].mxu0 %vm131_vm1, %v6342_v52 }
 0x1ab   :  { %5586 = vmatprep.mubr.msk.f32.mxu0 %vm5927_vm2, %v7590_v41 }
 0x1ac   :  { %v1258_v61 = vadd.f32 %v1250_v30, %v1144_v15 }
 0x1ad   :  { %v1344_v44 = vpop.f32.mrb[50].mxu0  ;;  %v1686_v48 = vpop.f32.mrb[60].mxu1 }
 0x1ae   :  { %v1368_v47 = vadd.f32 %v1344_v44, %v1254_v34  ;;  %v5255_v3 = vpop.f32.mrb[51].mxu0  ;;  %v5306_v18 = vpop.f32.mrb[61].mxu1  ;;  %5587 = vmatmul.mubr.msk.f32.gmra.mrb[146].mxu0 %vm131_vm1, %v6357_v54 }
 0x1af   :  { %5589 = vmatprep.mubr.msk.f32.mxu0 %vm5927_vm2, %v7590_v41 }
 0x1b0   :  { %v1482_v46 = vadd.f32 %v1458_v63, %v1368_v47 }
 0x1b1   :  { %v1349_v25 = vpop.f32.mrb[52].mxu0  ;;  %v1691_v32 = vpop.f32.mrb[62].mxu1 }
 0x1b2   :  { %v1369_v12 = vadd.f32 %v1349_v25, %v1255_v55  ;;  %v5258_v27 = vpop.f32.mrb[53].mxu0  ;;  %v5309_v37 = vpop.f32.mrb[63].mxu1  ;;  %5590 = vmatmul.mubr.msk.f32.gmra.mrb[148].mxu0 %vm131_vm1, %v6372_v56 }
 0x1b3   :  { %5611 = vmatprep.mubr.msk.f32.mxu0 %vm5927_vm2, %v7590_v41 }
 0x1b4   :  { %v1483_v30 = vadd.f32 %v1463_v13, %v1369_v12  ;;  %v3989_v12 = vpop.permute.xlu0 %3988 }
 0x1b5   :  { %v1354_v20 = vpop.f32.mrb[54].mxu0  ;;  %v1696_v34 = vpop.f32.mrb[64].mxu1 }
 0x1b6   :  { %v1370_v31 = vadd.f32 %v1354_v20, %v1256_v35  ;;  %v5261_v50 = vpop.f32.mrb[55].mxu0  ;;  %v5312_v6 = vpop.f32.mrb[65].mxu1  ;;  %5612 = vmatmul.mubr.msk.f32.vlgmr.msra.gmra.mrb[150].mxu0 %vm131_vm1, %v6387_v58 }
 0x1b7   :  { %5614 = vmatprep.mubr.msk.f32.mxu0 %vm5927_vm2, %v7590_v41  ;;  %5644 = vmatpush3.msk.msra.mxu0 %vm147_vm0, %v3791_v36 }
 0x1b8   :  { %v1484_v63 = vadd.f32 %v1468_v39, %v1370_v31  ;;  %5677 = vmatprep.subr.mxu0 %v7590_v41 }
 0x1b9   :  { %v1359_v23 = vpop.f32.mrb[56].mxu0  ;;  %v1701_v5 = vpop.f32.mrb[66].mxu1 }
 0x1ba   :  { %v1371_v55 = vadd.f32 %v1359_v23, %v1257_v43  ;;  %v5264_v52 = vpop.f32.mrb[57].mxu0  ;;  %v5315_v22 = vpop.f32.mrb[67].mxu1  ;;  %5615 = vmatmul.mubr.msk.f32.gmra.mrb[152].mxu0 %vm131_vm1, %v6401_v62 }
 0x1bb   :  { %5617 = vmatprep.mubr.msk.f32.mxu0 %vm5927_vm2, %v7590_v41 }
 0x1bc   :  { %v1485_v13 = vadd.f32 %v1473_v8, %v1371_v55 }
 0x1bd   :  { %v1364_v38 = vpop.f32.mrb[58].mxu0  ;;  %v1706_v4 = vpop.f32.mrb[68].mxu1 }
 0x1be   :  { %v1372_v54 = vadd.f32 %v1364_v38, %v1258_v61  ;;  %v5267_v35 = vpop.f32.mrb[59].mxu0  ;;  %v5318_v7 = vpop.f32.mrb[69].mxu1  ;;  %5618 = vmatmul.mubr.msk.f32.gmra.mrb[154].mxu0 %vm131_vm1, %v6421_v0 }
 0x1bf   :  { %5620 = vmatprep.mubr.msk.f32.mxu0 %vm5927_vm2, %v7590_v41 }
 0x1c0   :  { %v1486_v39 = vadd.f32 %v1478_v51, %v1372_v54 }
 0x1c1   :  { %v1572_v56 = vpop.f32.mrb[60].mxu0  ;;  %v1914_v29 = vpop.f32.mrb[70].mxu1 }
 0x1c2   :  { %v1596_v8 = vadd.f32 %v1572_v56, %v1482_v46  ;;  %v5289_v26 = vpop.f32.mrb[61].mxu0  ;;  %v5340_v42 = vpop.f32.mrb[71].mxu1  ;;  %5621 = vmatmul.mubr.msk.f32.gmra.mrb[156].mxu0 %vm131_vm1, %v6436_v9 }
 0x1c3   :  { %5623 = vmatprep.mubr.msk.f32.mxu0 %vm5927_vm2, %v7590_v41  ;;  %v4187_v26 = vpop.permute.xlu0 %4186 }
 0x1c4   :  { %v1710_v58 = vadd.f32 %v1686_v48, %v1596_v8 }
 0x1c5   :  { %v1577_v43 = vpop.f32.mrb[62].mxu0  ;;  %v1919_v57 = vpop.f32.mrb[72].mxu1 }
 0x1c6   :  { %v1597_v59 = vadd.f32 %v1577_v43, %v1483_v30  ;;  %v5292_v15 = vpop.f32.mrb[63].mxu0  ;;  %v5343_v28 = vpop.f32.mrb[73].mxu1  ;;  %5624 = vmatmul.mubr.msk.f32.gmra.mrb[158].mxu0 %vm131_vm1, %v6451_v11 }
 0x1c7   :  { %5645 = vmatprep.mubr.msk.f32.mxu0 %vm5927_vm2, %v7590_v41 }
 0x1c8   :  { %v1711_v51 = vadd.f32 %v1691_v32, %v1597_v59 }
 0x1c9   :  { %v1582_v49 = vpop.f32.mrb[64].mxu0  ;;  %v1924_v61 = vpop.f32.mrb[74].mxu1 }
 0x1ca   :  { %v1598_v44 = vadd.f32 %v1582_v49, %v1484_v63  ;;  %v5295_v62 = vpop.f32.mrb[65].mxu0  ;;  %v5346_v47 = vpop.f32.mrb[75].mxu1  ;;  %5646 = vmatmul.mubr.msk.f32.vlgmr.msra.gmra.mrb[160].mxu0 %vm131_vm1, %v6466_v14 }
 0x1cb   :  { %5648 = vmatprep.mubr.msk.f32.mxu0 %vm5927_vm2, %v7590_v41  ;;  %5678 = vmatpush3.msk.msra.mxu0 %vm147_vm0, %v3989_v12 }
 0x1cc   :  { %v1712_v48 = vadd.f32 %v1696_v34, %v1598_v44  ;;  %5711 = vmatprep.subr.mxu0 %v7590_v41 }
 0x1cd   :  { %v1587_v3 = vpop.f32.mrb[66].mxu0  ;;  %v1929_v18 = vpop.f32.mrb[76].mxu1 }
 0x1ce   :  { %v1599_v46 = vadd.f32 %v1587_v3, %v1485_v13  ;;  %v5298_v0 = vpop.f32.mrb[67].mxu0  ;;  %v5349_v25 = vpop.f32.mrb[77].mxu1  ;;  %5649 = vmatmul.mubr.msk.f32.gmra.mrb[162].mxu0 %vm131_vm1, %v6482_v24 }
 0x1cf   :  { %5651 = vmatprep.mubr.msk.f32.mxu0 %vm5927_vm2, %v7590_v41  ;;  %v7591_v0 = vld [vmem:[#allocation5_spill] sm:$0xff] }
 0x1d0   :  { %v1713_v32 = vadd.f32 %v1701_v5, %v1599_v46 }
 0x1d1   :  { %v1592_v27 = vpop.f32.mrb[68].mxu0  ;;  %v1934_v37 = vpop.f32.mrb[78].mxu1 }
 0x1d2   :  { %v1600_v9 = vadd.f32 %v1592_v27, %v1486_v39  ;;  %v5301_v30 = vpop.f32.mrb[69].mxu0  ;;  %v5352_v20 = vpop.f32.mrb[79].mxu1  ;;  %5652 = vmatmul.mubr.msk.f32.gmra.mrb[164].mxu0 %vm131_vm1, %v6507_v33  ;;  %v7592_v27 = vld [vmem:[#allocation6_spill] sm:$0xff] }
 0x1d3   :  { %5654 = vmatprep.mubr.msk.f32.mxu0 %vm5927_vm2, %v7590_v41  ;;  %v7593_v20 = vld [vmem:[#allocation7_spill] sm:$0xff] }
 0x1d4   :  { %v1714_v34 = vadd.f32 %v1706_v4, %v1600_v9 }
 0x1d5   :  { %v1800_v11 = vpop.f32.mrb[70].mxu0  ;;  %v2142_v31 = vpop.f32.mrb[80].mxu1 }
 0x1d6   :  { %v1824_v50 = vadd.f32 %v1800_v11, %v1710_v58  ;;  %v5323_v6 = vpop.f32.mrb[71].mxu0  ;;  %v5374_v63 = vpop.f32.mrb[81].mxu1  ;;  %5655 = vmatmul.mubr.msk.f32.gmra.mrb[166].mxu0 %vm131_vm1, %v6527_v45 }
 0x1d7   :  { %5657 = vmatprep.mubr.msk.f32.mxu0 %vm5927_vm2, %v7590_v41 }
 0x1d8   :  { %v1938_v14 = vadd.f32 %v1914_v29, %v1824_v50 }
 0x1d9   :  { %v1805_v23 = vpop.f32.mrb[72].mxu0  ;;  %v2147_v5 = vpop.f32.mrb[82].mxu1 }
 0x1da   :  { %v1825_v55 = vadd.f32 %v1805_v23, %v1711_v51  ;;  %v5326_v52 = vpop.f32.mrb[73].mxu0  ;;  %v5377_v22 = vpop.f32.mrb[83].mxu1  ;;  %5658 = vmatmul.mubr.msk.f32.gmra.mrb[168].mxu0 %vm131_vm1, %v6549_v53 }
 0x1db   :  { %5679 = vmatprep.mubr.msk.f32.mxu0 %vm5927_vm2, %v7590_v41 }
 0x1dc   :  { %v1939_v13 = vadd.f32 %v1919_v57, %v1825_v55 }
 0x1dd   :  { %v1810_v36 = vpop.f32.mrb[74].mxu0  ;;  %v2152_v38 = vpop.f32.mrb[84].mxu1 }
 0x1de   :  { %v1826_v4 = vadd.f32 %v1810_v36, %v1712_v48  ;;  %v5329_v24 = vpop.f32.mrb[75].mxu0  ;;  %v5380_v54 = vpop.f32.mrb[85].mxu1  ;;  %5680 = vmatmul.mubr.msk.f32.vlgmr.msra.gmra.mrb[170].mxu0 %vm131_vm1, %v6568_v60 }
 0x1df   :  { %5682 = vmatprep.mubr.msk.f32.mxu0 %vm5927_vm2, %v7590_v41  ;;  %5712 = vmatpush3.msk.msra.mxu0 %vm147_vm0, %v4187_v26 }
 0x1e0   :  { %v1940_v35 = vadd.f32 %v1924_v61, %v1826_v4  ;;  %5745 = vmatprep.subr.mxu0 %v7590_v41 }
 0x1e1   :  { %v1815_v7 = vpop.f32.mrb[76].mxu0  ;;  %v2157_v39 = vpop.f32.mrb[86].mxu1 }
 0x1e2   :  { %v1827_v56 = vadd.f32 %v1815_v7, %v1713_v32  ;;  %v5332_v33 = vpop.f32.mrb[77].mxu0  ;;  %v5383_v29 = vpop.f32.mrb[87].mxu1  ;;  %5683 = vmatmul.mubr.msk.f32.gmra.mrb[172].mxu0 %vm131_vm1, %v6584_v10  ;;  %v7597_v7 = vld [vmem:[#allocation10_spill] sm:$0xff] }
 0x1e3   :  { %5685 = vmatprep.mubr.msk.f32.mxu0 %vm5927_vm2, %v7590_v41 }
 0x1e4   :  { %v1941_v8 = vadd.f32 %v1929_v18, %v1827_v56 }
 0x1e5   :  { %v1820_v42 = vpop.f32.mrb[78].mxu0  ;;  %v2162_v58 = vpop.f32.mrb[88].mxu1 }
 0x1e6   :  { %v1828_v45 = vadd.f32 %v1820_v42, %v1714_v34  ;;  %v5335_v43 = vpop.f32.mrb[79].mxu0  ;;  %v5386_v57 = vpop.f32.mrb[89].mxu1  ;;  %5686 = vmatmul.mubr.msk.f32.gmra.mrb[174].mxu0 %vm131_vm1, %v6604_v16  ;;  %v7594_v34 = vld [vmem:[#allocation11_spill] sm:$0xff] }
 0x1e7   :  { %5688 = vmatprep.mubr.msk.f32.mxu0 %vm5927_vm2, %v7590_v41 }
 0x1e8   :  { %v1942_v59 = vadd.f32 %v1934_v37, %v1828_v45 }
 0x1e9   :  { %v2028_v53 = vpop.f32.mrb[80].mxu0 }
 0x1ea   :  { %v2052_v15 = vadd.f32 %v2028_v53, %v1938_v14  ;;  %v5357_v28 = vpop.f32.mrb[81].mxu0  ;;  %5689 = vmatmul.mubr.msk.f32.gmra.mrb[176].mxu0 %vm131_vm1, %v6621_v21  ;;  %v7595_v14 = vld [vmem:[#allocation8_spill] sm:$0xff] }
 0x1eb   :  { %5691 = vmatprep.mubr.msk.f32.mxu0 %vm5927_vm2, %v7590_v41 }
 0x1ec   :  { %v2166_v51 = vadd.f32 %v2142_v31, %v2052_v15  ;;  %v7043_v31 = vpop.permute.xlu1 %2292 }
 0x1ed   :  { %v2033_v49 = vpop.f32.mrb[82].mxu0 }
 0x1ee   :  { %v2053_v60 = vadd.f32 %v2033_v49, %v1939_v13  ;;  %v5360_v61 = vpop.f32.mrb[83].mxu0  ;;  %5692 = vmatmul.mubr.msk.f32.gmra.mrb[178].mxu0 %vm131_vm1, %v7591_v0  ;;  %v7596_v13 = vld [vmem:[#allocation9_spill] sm:$0xff] }
 0x1ef   :  { %5713 = vmatprep.mubr.msk.f32.mxu0 %vm5927_vm2, %v7590_v41 }
 0x1f0   :  { %v2167_v44 = vadd.f32 %v2147_v5, %v2053_v60  ;;  %v7052_v36 = vpop.permute.xlu1 %2297 }
 0x1f1   :  { %v2038_v62 = vpop.f32.mrb[84].mxu0 }
 0x1f2   :  { %v2054_v47 = vadd.f32 %v2038_v62, %v1940_v35  ;;  %v5363_v48 = vpop.f32.mrb[85].mxu0  ;;  %5714 = vmatmul.mubr.msk.f32.vlgmr.msra.gmra.mrb[180].mxu0 %vm131_vm1, %v7592_v27  ;;  %v5852_v27 = vld [vmem:[%s7568_s1 + $0x38] sm:$0xff] }
 0x1f3   :  { %5746 = vmatpush3.msk.msra.mxu0 %vm147_vm0, %v6908_v2  ;;  %5716 = vmatprep.mubr.msk.f32.mxu0 %vm5927_vm2, %v7590_v41 }
 0x1f4   :  { %v2168_v10 = vadd.f32 %v2152_v38, %v2054_v47  ;;  %5769 = vmatprep.subr.bf16.mxu0 %v5945_v17 }
 0x1f5   :  { %v2043_v3 = vpop.f32.mrb[86].mxu0 }
 0x1f6   :  { %v2055_v18 = vadd.f32 %v2043_v3, %v1941_v8  ;;  %v5366_v46 = vpop.f32.mrb[87].mxu0  ;;  %5717 = vmatmul.mubr.msk.f32.gmra.mrb[182].mxu0 %vm131_vm1, %v7593_v20  ;;  %v5856_v20 = vld [vmem:[%s7568_s1 + $0x58] sm:$0xff] }
 0x1f7   :  { %5719 = vmatprep.mubr.msk.f32.mxu0 %vm5927_vm2, %v7590_v41 }
 0x1f8   :  { %v2169_v16 = vadd.f32 %v2157_v39, %v2055_v18 }
 0x1f9   :  { %v2048_v25 = vpop.f32.mrb[88].mxu0 }
 0x1fa   :  { %v2056_v32 = vadd.f32 %v2048_v25, %v1942_v59  ;;  %v5369_v12 = vpop.f32.mrb[89].mxu0  ;;  %5720 = vmatmul.mubr.msk.f32.gmra.mrb[184].mxu0 %vm131_vm1, %v7595_v14  ;;  %v7074_v25 = vld [vmem:[%s7570_s3] sm:$0xff]  ;;  %v5861_v14 = vld [vmem:[%s7568_s1 + $0xa8] sm:$0xff] }
 0x1fb   :  { %5722 = vmatprep.mubr.msk.f32.mxu0 %vm5927_vm2, %v7590_v41  ;;  %v5850_v12 = vld [vmem:[%s7568_s1 + $0x28] sm:$0xff] }
 0x1fc   :  { %v2170_v21 = vadd.f32 %v2162_v58, %v2056_v32  ;;  %v7064_v58 = vpop.permute.xlu1 %2307 }
 0x1fd   :  { %v2256_v37 = vpop.f32.mrb[90].mxu0 }
 0x1fe   :  { %v2280_v9 = vadd.f32 %v2256_v37, %v2166_v51  ;;  %v5391_v30 = vpop.f32.mrb[91].mxu0  ;;  %5723 = vmatmul.mubr.msk.f32.gmra.mrb[186].mxu0 %vm131_vm1, %v7596_v13  ;;  %v5854_v37 = vld [vmem:[%s7568_s1 + $0x48] sm:$0xff]  ;;  %v5866_v13 = vld [vmem:[%s7568_s1 + $0xf8] sm:$0xff] }
 0x1ff   :  { %5725 = vmatprep.mubr.msk.f32.mxu0 %vm5927_vm2, %v7590_v41  ;;  %v5855_v30 = vld [vmem:[%s7568_s1 + $0x50] sm:$0xff] }
 0x200   :  { %v2310_v11 = vadd.f32 %v7594_v34, %v2280_v9  ;;  %v2702_v32 = vpop.permute.xlu1 %2701 }
 0x201   :  { %v2261_v2 = vpop.f32.mrb[92].mxu0 }
 0x202   :  { %v4704_v50 = vmul.f32 -1.442695, %v2310_v11  ;;  %v2281_v6 = vadd.f32 %v2261_v2, %v2167_v44  ;;  %v5394_v63 = vpop.f32.mrb[93].mxu0  ;;  %5726 = vmatmul.mubr.msk.f32.gmra.mrb[188].mxu0 %vm131_vm1, %v7597_v7  ;;  %v5858_v2 = vld [vmem:[%s7568_s1 + $0x68] sm:$0xff] }
 0x203   :  { %5747 = vmatprep.mubr.msk.f32.mxu0 %vm5927_vm2, %v7590_v41  ;;  %v5860_v63 = vld [vmem:[%s7568_s1 + $0xa0] sm:$0xff] }
 0x204   :  { %5802 = vpow2.f32 %v4704_v50  ;;  %v2311_v23 = vadd.f32 %v7043_v31, %v2281_v6  ;;  %v2900_v9 = vpop.permute.xlu1 %2899  ;;  %v5859_v50 = vld [vmem:[%s7568_s1 + $0x70] sm:$0xff] }
 0x205   :  { %v2266_v5 = vpop.f32.mrb[94].mxu0 }
 0x206   :  { %v4705_v55 = vmul.f32 -1.442695, %v2311_v23  ;;  %v2282_v52 = vadd.f32 %v2266_v5, %v2168_v10  ;;  %v5397_v22 = vpop.f32.mrb[95].mxu0  ;;  %5748 = vmatmul.mubr.msk.f32.vlgmr.msra.gmra.mrb[190].mxu0 %vm131_vm1, %v6933_v40  ;;  %v5863_v5 = vld [vmem:[%s7568_s1 + $0xb8] sm:$0xff] }
 0x207   :  { %5760 = vmatprep.mubr.msk.f32.mxu0 %vm5927_vm2, %v7590_v41  ;;  %v5865_v22 = vld [vmem:[%s7568_s1 + $0xf0] sm:$0xff] }
 0x208   :  { %5804 = vpow2.f32 %v4705_v55  ;;  %v2312_v38 = vadd.f32 %v7052_v36, %v2282_v52  ;;  %v3098_v6 = vpop.permute.xlu1 %3097  ;;  %v5864_v55 = vld [vmem:[%s7568_s1 + $0xc0] sm:$0xff] }
 0x209   :  { %v2271_v4 = vpop.f32.mrb[96].mxu0 }
 0x20a   :  { %v4706_v24 = vmul.f32 -1.442695, %v2312_v38  ;;  %v2283_v54 = vadd.f32 %v2271_v4, %v2169_v16  ;;  %v5400_v35 = vpop.f32.mrb[97].mxu0 }
 0x20b   :  { %v5869_v35 = vld [vmem:[%s7568_s1 + $0x110] sm:$0xff] }
 0x20c   :  { %5806 = vpow2.f32 %v4706_v24  ;;  %v2313_v39 = vadd.f32 %v6858_v19, %v2283_v54  ;;  %v3296_v52 = vpop.permute.xlu1 %3295  ;;  %v5868_v54 = vld [vmem:[%s7568_s1 + $0x108] sm:$0xff] }
 0x20d   :  { %v2276_v56 = vpop.f32.mrb[98].mxu0 }
 0x20e   :  { %v5803_v33 = vpop.eup %5802  ;;  %v4707_v29 = vmul.f32 -1.442695, %v2313_v39  ;;  %v2284_v8 = vadd.f32 %v2276_v56, %v2170_v21  ;;  %v5403_v26 = vpop.f32.mrb[99].mxu0  ;;  %v5853_v21 = vld [vmem:[%s7568_s1 + $0x40] sm:$0xff]  ;;  %v5871_v56 = vld [vmem:[%s7568_s1 + $0x148] sm:$0xff] }
 0x20f   :  { %v2330_v42 = vadd.f32 1.0, %v5803_v33 }
 0x210   :  { %5808 = vpow2.f32 %v4707_v29  ;;  %v2314_v45 = vadd.f32 %v7064_v58, %v2284_v8  ;;  %v3494_v7 = vpop.permute.xlu1 %3493  ;;  %v5872_v8 = vld [vmem:[%s7568_s1 + $0x150] sm:$0xff] }
 0x211   :  { %5810 = vrcp.f32 %v2330_v42  ;;  %v7226_v33 = vpop.f32.mrb[100].mxu0 }
 0x212   :  { %v5805_v43 = vpop.eup %5804  ;;  %v4708_v57 = vmul.f32 -1.442695, %v2314_v45  ;;  %v5443_v29 = vpop.f32.mrb[101].mxu0 }
 0x213   :  { %v2331_v59 = vadd.f32 1.0, %v5805_v43 }
 0x214   :  { %5812 = vpow2.f32 %v4708_v57 }
 0x215   :  { %5814 = vrcp.f32 %v2331_v59  ;;  %v7234_v26 = vpop.f32.mrb[102].mxu0  ;;  %v5874_v59 = vld [vmem:[%s7568_s1 + $0x160] sm:$0xff] }
 0x216   :  { %v5807_v53 = vpop.eup %5806  ;;  %v5446_v42 = vpop.f32.mrb[103].mxu0 }
 0x217   :  { %v2332_v15 = vadd.f32 1.0, %v5807_v53 }
 0x219   :  { %5816 = vrcp.f32 %v2332_v15  ;;  %v7242_v43 = vpop.f32.mrb[104].mxu0 }
 0x21a   :  { %v5809_v28 = vpop.eup %5808  ;;  %v5449_v57 = vpop.f32.mrb[105].mxu0 }
 0x21b   :  { %v2333_v40 = vadd.f32 1.0, %v5809_v28  ;;  %v5811_v51 = vpop.eup %5810  ;;  %v3692_v28 = vpop.permute.xlu1 %3691 }
 0x21c   :  { %v2345_v44 = vmul.f32 %v5811_v51, %v2310_v11  ;;  %v5857_v11 = vld [vmem:[%s7568_s1 + $0x60] sm:$0xff] }
 0x21d   :  { %5818 = vrcp.f32 %v2333_v40  ;;  %v7250_v53 = vpop.f32.mrb[106].mxu0  ;;  %v5875_v40 = vld [vmem:[%s7568_s1 + $0x190] sm:$0xff] }
 0x21e   :  { %v5813_v49 = vpop.eup %5812  ;;  %v5452_v15 = vpop.f32.mrb[107].mxu0 }
 0x21f   :  { %v5815_v60 = vpop.eup %5814  ;;  %v2334_v61 = vadd.f32 1.0, %v5813_v49 }
 0x220   :  { %v2346_v62 = vmul.f32 %v5815_v60, %v2311_v23  ;;  %v5862_v23 = vld [vmem:[%s7568_s1 + $0xb0] sm:$0xff]  ;;  %v5876_v60 = vld [vmem:[%s7568_s1 + $0x198] sm:$0xff] }
 0x221   :  { %5820 = vrcp.f32 %v2334_v61  ;;  %v7258_v51 = vpop.f32.mrb[108].mxu0 }
 0x222   :  { %v5764_v47 = vpack.c.bf16 %v2346_v62, %v2345_v44  ;;  %v5455_v49 = vpop.f32.mrb[109].mxu0  ;;  %v5877_v62 = vld [vmem:[%s7568_s1 + $0x1a0] sm:$0xff] }
 0x223   :  { %v5817_v48 = vpop.eup %5816 }
 0x224   :  { %5765 = vmatpush3.bf16.msra.mxu1 %v5764_v47  ;;  %v2347_v3 = vmul.f32 %v5817_v48, %v2312_v38  ;;  %v5867_v38 = vld [vmem:[%s7568_s1 + $0x100] sm:$0xff] }
 0x225   :  { %5766 = vmatprep.subr.bf16.mxu1 %v5945_v17 }
 0x227   :  { %v5819_v10 = vpop.eup %5818 }
 0x228   :  { %v2348_v18 = vmul.f32 %v5819_v10, %v2313_v39  ;;  %v5870_v39 = vld [vmem:[%s7568_s1 + $0x140] sm:$0xff]  ;;  %v5878_v10 = vld [vmem:[%s7568_s1 + $0x1a8] sm:$0xff] }
 0x22a   :  { %v5767_v46 = vpack.c.bf16 %v2348_v18, %v2347_v3 }
 0x22b   :  { %v5821_v0 = vpop.eup %5820 }
 0x22c   :  { %5768 = vmatpush3.bf16.msra.mxu1 %v5767_v46  ;;  %v2349_v16 = vmul.f32 %v5821_v0, %v2314_v45  ;;  %v5873_v45 = vld [vmem:[%s7568_s1 + $0x158] sm:$0xff]  ;;  %v5879_v46 = vld [vmem:[%s7568_s1 + $0x1b0] sm:$0xff] }
 0x22d   :  { %5417 = vmatprep.subr.mxu1 %v7590_v41 }
 0x230   :  { %5418 = vmatpush3.msra.mxu1 %v2349_v16 }
 0x231   :  { %5420 = vmatmul.mubr.msk.f32.vlgmr.msra.gmra.mrb[92].mxu1 %vm2423_vm3, %v7074_v25  ;;  %5422 = vmatprep.subr.mxu1 %v7590_v41 }
 0x232   :  { %5423 = vmatpush3.msk.msra.mxu1 %vm147_vm0, %v6860_v1  ;;  %5424 = vmatprep.mubr.msk.f32.mxu1 %vm5927_vm2, %v7590_v41  ;;  %v5851_v1 = vld [vmem:[%s7568_s1 + $0x30] sm:$0xff] }
 0x233   :  { %5456 = vmatprep.subr.mxu1 %v7590_v41 }
 0x235   :  { %5425 = vmatmul.mubr.msk.f32.vlgmr.msra.gmra.mrb[94].mxu1 %vm131_vm1, %v5850_v12  ;;  %v5880_v12 = vld [vmem:[%s7568_s1 + $0x1e0] sm:$0xff] }
 0x236   :  { %5427 = vmatprep.mubr.msk.f32.mxu1 %vm5927_vm2, %v7590_v41  ;;  %5457 = vmatpush3.msk.msra.mxu1 %vm147_vm0, %v2702_v32  ;;  %v3890_v32 = vpop.permute.xlu1 %3889 }
 0x237   :  { %5490 = vmatprep.subr.mxu1 %v7590_v41 }
 0x238   :  { %v7270_v61 = vpop.f32.mrb[110].mxu0 }
 0x239   :  { %5428 = vmatmul.mubr.msk.f32.gmra.mrb[96].mxu1 %vm131_vm1, %v5851_v1  ;;  %v5477_v44 = vpop.f32.mrb[111].mxu0 }
 0x23a   :  { %5430 = vmatprep.mubr.msk.f32.mxu1 %vm5927_vm2, %v7590_v41  ;;  %v5892_v44 = vld [vmem:[%s7568_s1 + $0x290] sm:$0xff] }
 0x23d   :  { %5431 = vmatmul.mubr.msk.f32.gmra.mrb[98].mxu1 %vm131_vm1, %v5852_v27  ;;  %v7278_v47 = vpop.f32.mrb[112].mxu0 }
 0x23e   :  { %5433 = vmatprep.mubr.msk.f32.mxu1 %vm5927_vm2, %v7590_v41  ;;  %v5480_v48 = vpop.f32.mrb[113].mxu0 }
 0x241   :  { %5434 = vmatmul.mubr.msk.f32.gmra.mrb[100].mxu1 %vm131_vm1, %v5853_v21  ;;  %v7284_v3 = vpop.f32.mrb[114].mxu0  ;;  %v5881_v21 = vld [vmem:[%s7568_s1 + $0x1e8] sm:$0xff] }
 0x242   :  { %5436 = vmatprep.mubr.msk.f32.mxu1 %vm5927_vm2, %v7590_v41  ;;  %v5483_v18 = vpop.f32.mrb[115].mxu0 }
 0x245   :  { %5437 = vmatmul.mubr.msk.f32.gmra.mrb[102].mxu1 %vm131_vm1, %v5854_v37  ;;  %v7292_v0 = vpop.f32.mrb[116].mxu0 }
 0x246   :  { %5458 = vmatprep.mubr.msk.f32.mxu1 %vm5927_vm2, %v7590_v41  ;;  %v5486_v16 = vpop.f32.mrb[117].mxu0 }
 0x247   :  { %v5894_v16 = vld [vmem:[%s7568_s1 + $0x2a0] sm:$0xff] }
 0x249   :  { %5459 = vmatmul.mubr.msk.f32.vlgmr.msra.gmra.mrb[104].mxu1 %vm131_vm1, %v5855_v30  ;;  %v7300_v1 = vpop.f32.mrb[118].mxu0  ;;  %v5882_v30 = vld [vmem:[%s7568_s1 + $0x1f0] sm:$0xff] }
 0x24a   :  { %5461 = vmatprep.mubr.msk.f32.mxu1 %vm5927_vm2, %v7590_v41  ;;  %5491 = vmatpush3.msk.msra.mxu1 %vm147_vm0, %v2900_v9  ;;  %v5489_v27 = vpop.f32.mrb[119].mxu0 }
 0x24b   :  { %5524 = vmatprep.subr.mxu1 %v7590_v41  ;;  %v5895_v27 = vld [vmem:[%s7568_s1 + $0x2d0] sm:$0xff] }
 0x24d   :  { %5462 = vmatmul.mubr.msk.f32.gmra.mrb[106].mxu1 %vm131_vm1, %v5856_v20  ;;  %v7310_v37 = vpop.f32.mrb[120].mxu0 }
 0x24e   :  { %5464 = vmatprep.mubr.msk.f32.mxu1 %vm5927_vm2, %v7590_v41  ;;  %v5511_v9 = vpop.f32.mrb[121].mxu0 }
 0x251   :  { %5465 = vmatmul.mubr.msk.f32.gmra.mrb[108].mxu1 %vm131_vm1, %v5857_v11  ;;  %v7318_v20 = vpop.f32.mrb[122].mxu0 }
 0x252   :  { %5467 = vmatprep.mubr.msk.f32.mxu1 %vm5927_vm2, %v7590_v41  ;;  %v5514_v11 = vpop.f32.mrb[123].mxu0 }
 0x255   :  { %5468 = vmatmul.mubr.msk.f32.gmra.mrb[110].mxu1 %vm131_vm1, %v5858_v2  ;;  %v5883_v2 = vld [vmem:[%s7568_s1 + $0x1f8] sm:$0xff] }
 0x256   :  { %5470 = vmatprep.mubr.msk.f32.mxu1 %vm5927_vm2, %v7590_v41 }
 0x259   :  { %5471 = vmatmul.mubr.msk.f32.gmra.mrb[112].mxu1 %vm131_vm1, %v5859_v50  ;;  %v7326_v50 = vpop.f32.mrb[124].mxu0 }
 0x25a   :  { %5492 = vmatprep.mubr.msk.f32.mxu1 %vm5927_vm2, %v7590_v41 }
 0x25d   :  { %5493 = vmatmul.mubr.msk.f32.vlgmr.msra.gmra.mrb[114].mxu1 %vm131_vm1, %v5860_v63  ;;  %v5884_v63 = vld [vmem:[%s7568_s1 + $0x200] sm:$0xff] }
 0x25e   :  { %5495 = vmatprep.mubr.msk.f32.mxu1 %vm5927_vm2, %v7590_v41  ;;  %5525 = vmatpush3.msk.msra.mxu1 %vm147_vm0, %v3098_v6  ;;  %v5517_v6 = vpop.f32.mrb[125].mxu0 }
 0x25f   :  { %5558 = vmatprep.subr.mxu1 %v7590_v41  ;;  %v5897_v6 = vld [vmem:[%s7568_s1 + $0x2e0] sm:$0xff] }
 0x261   :  { %5496 = vmatmul.mubr.msk.f32.gmra.mrb[116].mxu1 %vm131_vm1, %v5861_v14  ;;  %v7334_v14 = vpop.f32.mrb[126].mxu0 }
 0x262   :  { %5498 = vmatprep.mubr.msk.f32.mxu1 %vm5927_vm2, %v7590_v41 }
 0x265   :  { %5499 = vmatmul.mubr.msk.f32.gmra.mrb[118].mxu1 %vm131_vm1, %v5862_v23  ;;  %v5520_v23 = vpop.f32.mrb[127].mxu0 }
 0x266   :  { %5501 = vmatprep.mubr.msk.f32.mxu1 %vm5927_vm2, %v7590_v41 }
 0x269   :  { %5502 = vmatmul.mubr.msk.f32.gmra.mrb[120].mxu1 %vm131_vm1, %v5863_v5  ;;  %v4088_v5 = vpop.permute.xlu1 %4087 }
 0x26a   :  { %5504 = vmatprep.mubr.msk.f32.mxu1 %vm5927_vm2, %v7590_v41  ;;  %v7198_v4 = vpop.f32.mrb[90].mxu1 }
 0x26b   :  { %v5408_v24 = vpop.f32.mrb[91].mxu1 }
 0x26d   :  { %5505 = vmatmul.mubr.msk.f32.gmra.mrb[122].mxu1 %vm131_vm1, %v5864_v55  ;;  %v5885_v55 = vld [vmem:[%s7568_s1 + $0x230] sm:$0xff]  ;;  %v4286_v57 = vpop.permute.xlu1 %4285 }
 0x26e   :  { %5526 = vmatprep.mubr.msk.f32.mxu1 %vm5927_vm2, %v7590_v41 }
 0x271   :  { %5527 = vmatmul.mubr.msk.f32.vlgmr.msra.gmra.mrb[124].mxu1 %vm131_vm1, %v5865_v22 }
 0x272   :  { %5529 = vmatprep.mubr.msk.f32.mxu1 %vm5927_vm2, %v7590_v41  ;;  %5559 = vmatpush3.msk.msra.mxu1 %vm147_vm0, %v3296_v52  ;;  %v7342_v52 = vpop.f32.mrb[128].mxu0 }
 0x273   :  { %5592 = vmatprep.subr.mxu1 %v7590_v41  ;;  %v5523_v22 = vpop.f32.mrb[129].mxu0 }
 0x275   :  { %5530 = vmatmul.mubr.msk.f32.gmra.mrb[126].mxu1 %vm131_vm1, %v5866_v13  ;;  %v5886_v13 = vld [vmem:[%s7568_s1 + $0x238] sm:$0xff] }
 0x276   :  { %5532 = vmatprep.mubr.msk.f32.mxu1 %vm5927_vm2, %v7590_v41 }
 0x279   :  { %5533 = vmatmul.mubr.msk.f32.gmra.mrb[128].mxu1 %vm131_vm1, %v5867_v38  ;;  %v7352_v38 = vpop.f32.mrb[130].mxu0 }
 0x27a   :  { %5535 = vmatprep.mubr.msk.f32.mxu1 %vm5927_vm2, %v7590_v41  ;;  %v5545_v24 = vpop.f32.mrb[131].mxu0 }
 0x27d   :  { %5536 = vmatmul.mubr.msk.f32.gmra.mrb[130].mxu1 %vm131_vm1, %v5868_v54  ;;  %v5887_v54 = vld [vmem:[%s7568_s1 + $0x240] sm:$0xff] }
 0x27e   :  { %5538 = vmatprep.mubr.msk.f32.mxu1 %vm5927_vm2, %v7590_v41 }
 0x281   :  { %5539 = vmatmul.mubr.msk.f32.gmra.mrb[132].mxu1 %vm131_vm1, %v5869_v35  ;;  %v7360_v35 = vpop.f32.mrb[132].mxu0 }
 0x282   :  { %5560 = vmatprep.mubr.msk.f32.mxu1 %vm5927_vm2, %v7590_v41 }
 0x285   :  { %5561 = vmatmul.mubr.msk.f32.vlgmr.msra.gmra.mrb[134].mxu1 %vm131_vm1, %v5870_v39  ;;  %v5888_v39 = vld [vmem:[%s7568_s1 + $0x248] sm:$0xff] }
 0x286   :  { %5563 = vmatprep.mubr.msk.f32.mxu1 %vm5927_vm2, %v7590_v41  ;;  %5593 = vmatpush3.msk.msra.mxu1 %vm147_vm0, %v3494_v7  ;;  %v5548_v7 = vpop.f32.mrb[133].mxu0 }
 0x287   :  { %5626 = vmatprep.subr.mxu1 %v7590_v41 }
 0x289   :  { %5564 = vmatmul.mubr.msk.f32.gmra.mrb[136].mxu1 %vm131_vm1, %v5871_v56  ;;  %v7368_v56 = vpop.f32.mrb[134].mxu0 }
 0x28a   :  { %5566 = vmatprep.mubr.msk.f32.mxu1 %vm5927_vm2, %v7590_v41  ;;  %v5551_v29 = vpop.f32.mrb[135].mxu0 }
 0x28b   :  { %v7376_v42 = vpop.f32.mrb[136].mxu0 }
 0x28d   :  { %5567 = vmatmul.mubr.msk.f32.gmra.mrb[138].mxu1 %vm131_vm1, %v5872_v8  ;;  %v5889_v8 = vld [vmem:[%s7568_s1 + $0x250] sm:$0xff] }
 0x28e   :  { %5569 = vmatprep.mubr.msk.f32.mxu1 %vm5927_vm2, %v7590_v41 }
 0x291   :  { %5570 = vmatmul.mubr.msk.f32.gmra.mrb[140].mxu1 %vm131_vm1, %v5873_v45  ;;  %v5554_v45 = vpop.f32.mrb[137].mxu0 }
 0x292   :  { %5572 = vmatprep.mubr.msk.f32.mxu1 %vm5927_vm2, %v7590_v41  ;;  %v7384_v15 = vpop.f32.mrb[138].mxu0 }
 0x295   :  { %5573 = vmatmul.mubr.msk.f32.gmra.mrb[142].mxu1 %vm131_vm1, %v5874_v59  ;;  %v5890_v59 = vld [vmem:[%s7568_s1 + $0x280] sm:$0xff] }
 0x296   :  { %5594 = vmatprep.mubr.msk.f32.mxu1 %vm5927_vm2, %v7590_v41 }
 0x299   :  { %5595 = vmatmul.mubr.msk.f32.vlgmr.msra.gmra.mrb[144].mxu1 %vm131_vm1, %v5875_v40  ;;  %v5891_v40 = vld [vmem:[%s7568_s1 + $0x288] sm:$0xff] }
 0x29a   :  { %5597 = vmatprep.mubr.msk.f32.mxu1 %vm5927_vm2, %v7590_v41  ;;  %5627 = vmatpush3.msk.msra.mxu1 %vm147_vm0, %v3692_v28  ;;  %v5557_v28 = vpop.f32.mrb[139].mxu0 }
 0x29b   :  { %5660 = vmatprep.subr.mxu1 %v7590_v41  ;;  %v7393_v49 = vpop.f32.mrb[140].mxu0 }
 0x29d   :  { %5598 = vmatmul.mubr.msk.f32.gmra.mrb[146].mxu1 %vm131_vm1, %v5876_v60  ;;  %v5579_v60 = vpop.f32.mrb[141].mxu0 }
 0x29e   :  { %5600 = vmatprep.mubr.msk.f32.mxu1 %vm5927_vm2, %v7590_v41 }
 0x2a1   :  { %5601 = vmatmul.mubr.msk.f32.gmra.mrb[148].mxu1 %vm131_vm1, %v5877_v62  ;;  %v7401_v62 = vpop.f32.mrb[142].mxu0 }
 0x2a2   :  { %5603 = vmatprep.mubr.msk.f32.mxu1 %vm5927_vm2, %v7590_v41  ;;  %v5582_v48 = vpop.f32.mrb[143].mxu0 }
 0x2a3   :  { %v7409_v18 = vpop.f32.mrb[144].mxu0 }
 0x2a5   :  { %5604 = vmatmul.mubr.msk.f32.gmra.mrb[150].mxu1 %vm131_vm1, %v5878_v10  ;;  %v5893_v10 = vld [vmem:[%s7568_s1 + $0x298] sm:$0xff] }
 0x2a6   :  { %5606 = vmatprep.mubr.msk.f32.mxu1 %vm5927_vm2, %v7590_v41 }
 0x2a9   :  { %5607 = vmatmul.mubr.msk.f32.gmra.mrb[152].mxu1 %vm131_vm1, %v5879_v46  ;;  %v5585_v46 = vpop.f32.mrb[145].mxu0 }
 0x2aa   :  { %5628 = vmatprep.mubr.msk.f32.mxu1 %vm5927_vm2, %v7590_v41 }
 0x2ad   :  { %5629 = vmatmul.mubr.msk.f32.vlgmr.msra.gmra.mrb[154].mxu1 %vm131_vm1, %v5880_v12 }
 0x2ae   :  { %5631 = vmatprep.mubr.msk.f32.mxu1 %vm5927_vm2, %v7590_v41  ;;  %5661 = vmatpush3.msk.msra.mxu1 %vm147_vm0, %v3890_v32  ;;  %v7417_v32 = vpop.f32.mrb[146].mxu0 }
 0x2af   :  { %5694 = vmatprep.subr.mxu1 %v7590_v41  ;;  %v5588_v12 = vpop.f32.mrb[147].mxu0 }
 0x2b1   :  { %5632 = vmatmul.mubr.msk.f32.gmra.mrb[156].mxu1 %vm131_vm1, %v5881_v21  ;;  %v7425_v21 = vpop.f32.mrb[148].mxu0 }
 0x2b2   :  { %5634 = vmatprep.mubr.msk.f32.mxu1 %vm5927_vm2, %v7590_v41  ;;  %v5591_v9 = vpop.f32.mrb[149].mxu0 }
 0x2b3   :  { %v7433_v11 = vpop.f32.mrb[150].mxu0 }
 0x2b5   :  { %5635 = vmatmul.mubr.msk.f32.gmra.mrb[158].mxu1 %vm131_vm1, %v5882_v30  ;;  %v5896_v30 = vld [vmem:[%s7568_s1 + $0x2d8] sm:$0xff] }
 0x2b6   :  { %5637 = vmatprep.mubr.msk.f32.mxu1 %vm5927_vm2, %v7590_v41 }
 0x2b9   :  { %5638 = vmatmul.mubr.msk.f32.gmra.mrb[160].mxu1 %vm131_vm1, %v5883_v2  ;;  %v5613_v2 = vpop.f32.mrb[151].mxu0 }
 0x2ba   :  { %5640 = vmatprep.mubr.msk.f32.mxu1 %vm5927_vm2, %v7590_v41 }
 0x2bd   :  { %5641 = vmatmul.mubr.msk.f32.gmra.mrb[162].mxu1 %vm131_vm1, %v5884_v63  ;;  %v7441_v63 = vpop.f32.mrb[152].mxu0 }
 0x2be   :  { %5662 = vmatprep.mubr.msk.f32.mxu1 %vm5927_vm2, %v7590_v41  ;;  %v5616_v23 = vpop.f32.mrb[153].mxu0 }
 0x2c1   :  { %5663 = vmatmul.mubr.msk.f32.vlgmr.msra.gmra.mrb[164].mxu1 %vm131_vm1, %v5885_v55  ;;  %v7449_v55 = vpop.f32.mrb[154].mxu0 }
 0x2c2   :  { %5665 = vmatprep.mubr.msk.f32.mxu1 %vm5927_vm2, %v7590_v41  ;;  %5695 = vmatpush3.msk.msra.mxu1 %vm147_vm0, %v4088_v5  ;;  %v5898_v5 = vld [vmem:[%s7568_s1 + $0x2e8] sm:$0xff]  ;;  %v5619_v22 = vpop.f32.mrb[155].mxu0 }
 0x2c3   :  { %5728 = vmatprep.subr.mxu1 %v7590_v41  ;;  %v7457_v24 = vpop.f32.mrb[156].mxu0 }
 0x2c5   :  { %5666 = vmatmul.mubr.msk.f32.gmra.mrb[166].mxu1 %vm131_vm1, %v5886_v13  ;;  %v5899_v13 = vld [vmem:[%s7568_s1 + $0x2f0] sm:$0xff]  ;;  %s5946_s1 = smov [#allocation2]  }
 0x2c6   :  { %5668 = vmatprep.mubr.msk.f32.mxu1 %vm5927_vm2, %v7590_v41  ;;  %s4579_s8 = sshll.u32 %s5946_s1, 4  ;;  %s4580_s8 = int_to_ptr.vmem [resolvable:$true] %s4579_s8 }
 0x2c7   :  { %s5900_s10 = scalar_lea.vmem %s4580_s8, 256  ;;  %p5905_p1 = scmp.lt.s32.totalorder %s4580_s8, %s4580_s8 }
 0x2c8   :  { %p5901_p0 = scmp.ne.s32.totalorder %s4580_s8, %s5900_s10  ;;  %p5906_p2 = scmp.lt.s32.totalorder %s5900_s10, %s5900_s10 }
 0x2c9   :  { %5669 = vmatmul.mubr.msk.f32.gmra.mrb[168].mxu1 %vm131_vm1, %v5887_v54  ;;  %v5622_v54 = vpop.f32.mrb[157].mxu0 }
 0x2ca   :  { %5671 = vmatprep.mubr.msk.f32.mxu1 %vm5927_vm2, %v7590_v41  ;;  %v7459_v7 = vpop.f32.mrb[158].mxu0  ;;  %p5907_p3 = por %p5906_p2, %p5905_p1 }
 0x2cc   :  { %p5908_p4 = pnand %p5907_p3, %p5901_p0 }
 0x2cd   :  { %5672 = vmatmul.mubr.msk.f32.gmra.mrb[170].mxu1 %vm131_vm1, %v5888_v39  ;;  %v5625_v39 = vpop.f32.mrb[159].mxu0 }
 0x2ce   :  { %5674 = vmatprep.mubr.msk.f32.mxu1 %vm5927_vm2, %v7590_v41  ;;  %v7461_v29 = vpop.f32.mrb[160].mxu0 }
 0x2d1   :  { %5675 = vmatmul.mubr.msk.f32.gmra.mrb[172].mxu1 %vm131_vm1, %v5889_v8  ;;  %v5647_v8 = vpop.f32.mrb[161].mxu0 }
 0x2d2   :  { %5696 = vmatprep.mubr.msk.f32.mxu1 %vm5927_vm2, %v7590_v41  ;;  %v7464_v28 = vpop.f32.mrb[162].mxu0 }
 0x2d3   :  { %v5650_v60 = vpop.f32.mrb[163].mxu0 }
 0x2d4   :  { %v7470_v12 = vpop.f32.mrb[164].mxu0 }
 0x2d5   :  { %5697 = vmatmul.mubr.msk.f32.vlgmr.msra.gmra.mrb[174].mxu1 %vm131_vm1, %v5890_v59 }
 0x2d6   :  { %5699 = vmatprep.mubr.msk.f32.mxu1 %vm5927_vm2, %v7590_v41  ;;  %5729 = vmatpush3.msk.msra.mxu1 %vm147_vm0, %v4286_v57 }
 0x2d9   :  { %5700 = vmatmul.mubr.msk.f32.gmra.mrb[176].mxu1 %vm131_vm1, %v5891_v40  ;;  %v7466_v40 = vpop.permute.xlu0 %2499 }
 0x2da   :  { %5702 = vmatprep.mubr.msk.f32.mxu1 %vm5927_vm2, %v7590_v41 }
 0x2dd   :  { %5703 = vmatmul.mubr.msk.f32.gmra.mrb[178].mxu1 %vm131_vm1, %v5892_v44 }
 0x2de   :  { %5705 = vmatprep.mubr.msk.f32.mxu1 %vm5927_vm2, %v7590_v41 }
 0x2e1   :  { %5706 = vmatmul.mubr.msk.f32.gmra.mrb[180].mxu1 %vm131_vm1, %v5893_v10 }
 0x2e2   :  { %5708 = vmatprep.mubr.msk.f32.mxu1 %vm5927_vm2, %v7590_v41 }
 0x2e5   :  { %5709 = vmatmul.mubr.msk.f32.gmra.mrb[182].mxu1 %vm131_vm1, %v5894_v16 }
 0x2e6   :  { %5730 = vmatprep.mubr.msk.f32.mxu1 %vm5927_vm2, %v7590_v41 }
 0x2e9   :  { %5731 = vmatmul.mubr.msk.f32.vlgmr.msra.gmra.mrb[184].mxu1 %vm131_vm1, %v5895_v27  ;;  %v5653_v27 = vpop.f32.mrb[165].mxu0 }
 0x2ea   :  { %5733 = vmatprep.mubr.msk.f32.mxu1 %vm5927_vm2, %v7590_v41  ;;  %v7473_v2 = vpop.f32.mrb[166].mxu0 }
 0x2ed   :  { %5734 = vmatmul.mubr.msk.f32.gmra.mrb[186].mxu1 %vm131_vm1, %v5896_v30 }
 0x2ee   :  { %5736 = vmatprep.mubr.msk.f32.mxu1 %vm5927_vm2, %v7590_v41 }
 0x2f1   :  { %5737 = vmatmul.mubr.msk.f32.gmra.mrb[188].mxu1 %vm131_vm1, %v5897_v6  ;;  %v5656_v6 = vpop.f32.mrb[167].mxu0 }
 0x2f2   :  { %5739 = vmatprep.mubr.msk.f32.mxu1 %vm5927_vm2, %v7590_v41 }
 0x2f5   :  { %5740 = vmatmul.mubr.msk.f32.gmra.mrb[190].mxu1 %vm131_vm1, %v5898_v5 }
 0x2f6   :  { %5742 = vmatprep.mubr.msk.f32.mxu1 %vm5927_vm2, %v7590_v41 }
 0x2f9   :  { %5743 = vmatmul.mubr.msk.f32.gmra.mrb[192].mxu1 %vm131_vm1, %v5899_v13  ;;  %v7476_v13 = vpop.f32.mrb[168].mxu0 }
 0x2fa   :  { %v5659_v54 = vpop.f32.mrb[169].mxu0 }
 0x304   :  { %v2493_v45 = vpop.f32.mrb[92].mxu1 }
 0x305   :  { %v2494_v57 = vadd.f32 %v2493_v45, %v7198_v4  ;;  %v5421_v59 = vpop.f32.mrb[93].mxu1 }
 0x307   :  { %v2502_v44 = vadd.f32 %v7466_v40, %v2494_v57  ;;  %v7479_v57 = vpop.f32.mrb[170].mxu0 }
 0x308   :  { %v2585_v48 = vpop.f32.mrb[94].mxu1  ;;  %v5681_v60 = vpop.f32.mrb[171].mxu0 }
 0x309   :  { %v4712_v10 = vmul.f32 -1.442695, %v2502_v44  ;;  %v5426_v46 = vpop.f32.mrb[95].mxu1  ;;  %v2678_v16 = vadd.f32 %v7226_v33, %v2585_v48 }
 0x30a   :  { %v7482_v46 = vpop.f32.mrb[172].mxu0 }
 0x30b   :  { %5822 = vpow2.f32 %v4712_v10 }
 0x30c   :  { %v2590_v9 = vpop.f32.mrb[96].mxu1 }
 0x30d   :  { %v5429_v30 = vpop.f32.mrb[97].mxu1  ;;  %v2683_v4 = vadd.f32 %v7234_v26, %v2590_v9 }
 0x310   :  { %v2595_v23 = vpop.f32.mrb[98].mxu1 }
 0x311   :  { %v5432_v5 = vpop.f32.mrb[99].mxu1  ;;  %v2688_v22 = vadd.f32 %v7242_v43, %v2595_v23  ;;  %v5684_v43 = vpop.f32.mrb[173].mxu0 }
 0x312   :  { %v7484_v6 = vpop.f32.mrb[174].mxu0 }
 0x313   :  { %v5687_v23 = vpop.f32.mrb[175].mxu0 }
 0x314   :  { %v2600_v39 = vpop.f32.mrb[100].mxu1 }
 0x315   :  { %v5823_v33 = vpop.eup %5822  ;;  %v5435_v8 = vpop.f32.mrb[101].mxu1  ;;  %v2693_v45 = vadd.f32 %v7250_v53, %v2600_v39 }
 0x316   :  { %v2506_v59 = vadd.f32 1.0, %v5823_v33  ;;  %v7487_v33 = vpop.f32.mrb[176].mxu0 }
 0x318   :  { %5824 = vrcp.f32 %v2506_v59  ;;  %v2605_v26 = vpop.f32.mrb[102].mxu1  ;;  %v5690_v59 = vpop.f32.mrb[177].mxu0 }
 0x319   :  { %v5438_v48 = vpop.f32.mrb[103].mxu1  ;;  %v2698_v10 = vadd.f32 %v7258_v51, %v2605_v26  ;;  %v7491_v43 = vpop.f32.mrb[178].mxu0 }
 0x31c   :  { %v2771_v27 = vpop.f32.mrb[104].mxu1 }
 0x31d   :  { %v2795_v9 = vadd.f32 %v2771_v27, %v2678_v16  ;;  %v5460_v30 = vpop.f32.mrb[105].mxu1  ;;  %v5693_v27 = vpop.f32.mrb[179].mxu0 }
 0x31e   :  { %v7494_v23 = vpop.f32.mrb[180].mxu0 }
 0x31f   :  { %v2894_v53 = vadd.f32 %v7270_v61, %v2795_v9 }
 0x320   :  { %v2776_v5 = vpop.f32.mrb[106].mxu1 }
 0x321   :  { %v2796_v54 = vadd.f32 %v2776_v5, %v2683_v4  ;;  %v5463_v39 = vpop.f32.mrb[107].mxu1  ;;  %v5715_v5 = vpop.f32.mrb[181].mxu0 }
 0x322   :  { %v5825_v8 = vpop.eup %5824 }
 0x323   :  { %v2509_v51 = vmul.f32 %v5825_v8, %v2502_v44  ;;  %v2895_v60 = vadd.f32 %v7278_v47, %v2796_v54  ;;  %v7497_v8 = vpop.f32.mrb[182].mxu0 }
 0x324   :  { %v2781_v26 = vpop.f32.mrb[108].mxu1 }
 0x325   :  { %2511 = vst.msk [vmem:[#allocation2] sm:$0xff] %vm2510_vm4, %v2509_v51  ;;  %v2797_v16 = vadd.f32 %v2781_v26, %v2688_v22  ;;  %v5466_v48 = vpop.f32.mrb[109].mxu1  ;;  %v5718_v22 = vpop.f32.mrb[183].mxu0 }
 0x327   :  { %v2896_v61 = vadd.f32 %v7284_v3, %v2797_v16  ;;  %v7500_v3 = vpop.f32.mrb[184].mxu0 }
 0x328   :  { %v2786_v4 = vpop.f32.mrb[110].mxu1 }
 0x329   :  { %v2798_v9 = vadd.f32 %v2786_v4, %v2693_v45  ;;  %v5469_v30 = vpop.f32.mrb[111].mxu1  ;;  %v5721_v45 = vpop.f32.mrb[185].mxu0 }
 0x32b   :  { %v2897_v44 = vadd.f32 %v7292_v0, %v2798_v9  ;;  %v7503_v0 = vpop.f32.mrb[186].mxu0 }
 0x32c   :  { %v2791_v39 = vpop.f32.mrb[112].mxu1 }
 0x32d   :  { %v2799_v47 = vadd.f32 %v2791_v39, %v2698_v10  ;;  %v5472_v54 = vpop.f32.mrb[113].mxu1  ;;  %v5724_v10 = vpop.f32.mrb[187].mxu0 }
 0x32f   :  { %v2898_v59 = vadd.f32 %v7300_v1, %v2799_v47  ;;  %v7506_v1 = vpop.f32.mrb[188].mxu0 }
 0x330   :  { %v2969_v51 = vpop.f32.mrb[114].mxu1 }
 0x331   :  { %v2993_v26 = vadd.f32 %v2969_v51, %v2894_v53  ;;  %v5494_v48 = vpop.f32.mrb[115].mxu1  ;;  %v5727_v53 = vpop.f32.mrb[189].mxu0 }
 0x333   :  { %v3092_v16 = vadd.f32 %v7310_v37, %v2993_v26 }
 0x334   :  { %v2974_v27 = vpop.f32.mrb[116].mxu1 }
 0x335   :  { %v2994_v4 = vadd.f32 %v2974_v27, %v2895_v60  ;;  %v5497_v30 = vpop.f32.mrb[117].mxu1 }
 0x337   :  { %v3093_v9 = vadd.f32 %v7318_v20, %v2994_v4 }
 0x338   :  { %v2979_v5 = vpop.f32.mrb[118].mxu1 }
 0x339   :  { %v2995_v39 = vadd.f32 %v2979_v5, %v2896_v61  ;;  %v5500_v54 = vpop.f32.mrb[119].mxu1 }
 0x33b   :  { %v3094_v47 = vadd.f32 %v7326_v50, %v2995_v39 }
 0x33c   :  { %v2984_v22 = vpop.f32.mrb[120].mxu1 }
 0x33d   :  { %v2996_v51 = vadd.f32 %v2984_v22, %v2897_v44  ;;  %v5503_v48 = vpop.f32.mrb[121].mxu1 }
 0x33f   :  { %v3095_v37 = vadd.f32 %v7334_v14, %v2996_v51 }
 0x340   :  { %v2989_v60 = vpop.f32.mrb[122].mxu1 }
 0x341   :  { %v2997_v26 = vadd.f32 %v2989_v60, %v2898_v59  ;;  %v5506_v45 = vpop.f32.mrb[123].mxu1 }
 0x343   :  { %v3096_v27 = vadd.f32 %v7342_v52, %v2997_v26 }
 0x344   :  { %v3167_v30 = vpop.f32.mrb[124].mxu1 }
 0x345   :  { %v3191_v20 = vadd.f32 %v3167_v30, %v3092_v16  ;;  %v5528_v4 = vpop.f32.mrb[125].mxu1 }
 0x347   :  { %v3290_v61 = vadd.f32 %v7352_v38, %v3191_v20 }
 0x348   :  { %v3172_v10 = vpop.f32.mrb[126].mxu1 }
 0x349   :  { %v3192_v5 = vadd.f32 %v3172_v10, %v3093_v9  ;;  %v5531_v54 = vpop.f32.mrb[127].mxu1 }
 0x34b   :  { %v3291_v50 = vadd.f32 %v7360_v35, %v3192_v5 }
 0x34c   :  { %v3177_v39 = vpop.f32.mrb[128].mxu1 }
 0x34d   :  { %v3193_v44 = vadd.f32 %v3177_v39, %v3094_v47  ;;  %v5534_v53 = vpop.f32.mrb[129].mxu1 }
 0x34f   :  { %v3292_v14 = vadd.f32 %v7368_v56, %v3193_v44 }
 0x350   :  { %v3182_v22 = vpop.f32.mrb[130].mxu1 }
 0x351   :  { %v3194_v59 = vadd.f32 %v3182_v22, %v3095_v37  ;;  %v5537_v51 = vpop.f32.mrb[131].mxu1 }
 0x353   :  { %v3293_v52 = vadd.f32 %v7376_v42, %v3194_v59 }
 0x354   :  { %v3187_v48 = vpop.f32.mrb[132].mxu1 }
 0x355   :  { %v3195_v16 = vadd.f32 %v3187_v48, %v3096_v27  ;;  %v5540_v60 = vpop.f32.mrb[133].mxu1 }
 0x357   :  { %v3294_v38 = vadd.f32 %v7384_v15, %v3195_v16 }
 0x358   :  { %v3365_v26 = vpop.f32.mrb[134].mxu1 }
 0x359   :  { %v3389_v9 = vadd.f32 %v3365_v26, %v3290_v61  ;;  %v5562_v45 = vpop.f32.mrb[135].mxu1 }
 0x35b   :  { %v3488_v35 = vadd.f32 %v7393_v49, %v3389_v9 }
 0x35c   :  { %v3370_v30 = vpop.f32.mrb[136].mxu1 }
 0x35d   :  { %v3390_v47 = vadd.f32 %v3370_v30, %v3291_v50  ;;  %v5565_v20 = vpop.f32.mrb[137].mxu1 }
 0x35f   :  { %v3489_v56 = vadd.f32 %v7401_v62, %v3390_v47 }
 0x360   :  { %v3375_v4 = vpop.f32.mrb[138].mxu1 }
 0x361   :  { %v3391_v37 = vadd.f32 %v3375_v4, %v3292_v14  ;;  %v5568_v10 = vpop.f32.mrb[139].mxu1  ;;  %v7522_v14 = vpop.f32.mrb[190].mxu0 }
 0x362   :  { %v5749_v48 = vpop.f32.mrb[191].mxu0 }
 0x363   :  { %v3490_v42 = vadd.f32 %v7409_v18, %v3391_v37 }
 0x364   :  { %v3380_v5 = vpop.f32.mrb[140].mxu1 }
 0x365   :  { %v3392_v27 = vadd.f32 %v3380_v5, %v3293_v52  ;;  %v5571_v54 = vpop.f32.mrb[141].mxu1 }
 0x367   :  { %v3491_v15 = vadd.f32 %v7417_v32, %v3392_v27 }
 0x368   :  { %v3385_v39 = vpop.f32.mrb[142].mxu1 }
 0x369   :  { %v3393_v61 = vadd.f32 %v3385_v39, %v3294_v38  ;;  %v5574_v44 = vpop.f32.mrb[143].mxu1 }
 0x36b   :  { %v3492_v49 = vadd.f32 %v7425_v21, %v3393_v61 }
 0x36c   :  { %v3563_v53 = vpop.f32.mrb[144].mxu1 }
 0x36d   :  { %v3587_v50 = vadd.f32 %v3563_v53, %v3488_v35  ;;  %v5596_v22 = vpop.f32.mrb[145].mxu1 }
 0x36f   :  { %v3686_v62 = vadd.f32 %v7433_v11, %v3587_v50 }
 0x370   :  { %v3568_v59 = vpop.f32.mrb[146].mxu1 }
 0x371   :  { %v3588_v51 = vadd.f32 %v3568_v59, %v3489_v56  ;;  %v5599_v18 = vpop.f32.mrb[147].mxu1 }
 0x373   :  { %v3687_v52 = vadd.f32 %v7441_v63, %v3588_v51 }
 0x374   :  { %v3573_v16 = vpop.f32.mrb[148].mxu1 }
 0x375   :  { %v3589_v32 = vadd.f32 %v3573_v16, %v3490_v42  ;;  %v5602_v60 = vpop.f32.mrb[149].mxu1 }
 0x377   :  { %v3688_v38 = vadd.f32 %v7449_v55, %v3589_v32 }
 0x378   :  { %v3578_v26 = vpop.f32.mrb[150].mxu1 }
 0x379   :  { %v3590_v21 = vadd.f32 %v3578_v26, %v3491_v15  ;;  %v5605_v9 = vpop.f32.mrb[151].mxu1 }
 0x37b   :  { %v3689_v45 = vadd.f32 %v7457_v24, %v3590_v21 }
 0x37c   :  { %v3583_v35 = vpop.f32.mrb[152].mxu1 }
 0x37d   :  { %v3591_v11 = vadd.f32 %v3583_v35, %v3492_v49  ;;  %v5608_v30 = vpop.f32.mrb[153].mxu1 }
 0x37f   :  { %v3690_v47 = vadd.f32 %v7459_v7, %v3591_v11 }
 0x380   :  { %v3761_v20 = vpop.f32.mrb[154].mxu1 }
 0x381   :  { %v3785_v56 = vadd.f32 %v3761_v20, %v3686_v62  ;;  %v5630_v4 = vpop.f32.mrb[155].mxu1 }
 0x383   :  { %v3884_v63 = vadd.f32 %v7461_v29, %v3785_v56 }
 0x384   :  { %v3766_v37 = vpop.f32.mrb[156].mxu1 }
 0x385   :  { %v3786_v10 = vadd.f32 %v3766_v37, %v3687_v52  ;;  %v5633_v42 = vpop.f32.mrb[157].mxu1 }
 0x387   :  { %v3885_v55 = vadd.f32 %v7464_v28, %v3786_v10 }
 0x388   :  { %v3771_v5 = vpop.f32.mrb[158].mxu1 }
 0x389   :  { %v3787_v27 = vadd.f32 %v3771_v5, %v3688_v38  ;;  %v5636_v54 = vpop.f32.mrb[159].mxu1 }
 0x38b   :  { %v3886_v24 = vadd.f32 %v7470_v12, %v3787_v27 }
 0x38c   :  { %v3776_v15 = vpop.f32.mrb[160].mxu1 }
 0x38d   :  { %v3788_v39 = vadd.f32 %v3776_v15, %v3689_v45  ;;  %v5639_v61 = vpop.f32.mrb[161].mxu1 }
 0x38f   :  { %v3887_v7 = vadd.f32 %v7473_v2, %v3788_v39 }
 0x390   :  { %v3781_v44 = vpop.f32.mrb[162].mxu1 }
 0x391   :  { %v3789_v49 = vadd.f32 %v3781_v44, %v3690_v47  ;;  %v5642_v53 = vpop.f32.mrb[163].mxu1 }
 0x393   :  { %v3888_v29 = vadd.f32 %v7476_v13, %v3789_v49 }
 0x394   :  { %v3959_v50 = vpop.f32.mrb[164].mxu1 }
 0x395   :  { %v3983_v22 = vadd.f32 %v3959_v50, %v3884_v63  ;;  %v5664_v62 = vpop.f32.mrb[165].mxu1 }
 0x397   :  { %v4082_v28 = vadd.f32 %v7479_v57, %v3983_v22 }
 0x398   :  { %v3964_v59 = vpop.f32.mrb[166].mxu1 }
 0x399   :  { %v3984_v51 = vadd.f32 %v3964_v59, %v3885_v55  ;;  %v5667_v18 = vpop.f32.mrb[167].mxu1 }
 0x39b   :  { %v4083_v12 = vadd.f32 %v7482_v46, %v3984_v51 }
 0x39c   :  { %v3969_v48 = vpop.f32.mrb[168].mxu1 }
 0x39d   :  { %v3985_v52 = vadd.f32 %v3969_v48, %v3886_v24  ;;  %v5670_v16 = vpop.f32.mrb[169].mxu1 }
 0x39f   :  { %v4084_v2 = vadd.f32 %v7484_v6, %v3985_v52 }
 0x3a0   :  { %v3974_v32 = vpop.f32.mrb[170].mxu1 }
 0x3a1   :  { %v3986_v60 = vadd.f32 %v3974_v32, %v3887_v7  ;;  %v5673_v38 = vpop.f32.mrb[171].mxu1 }
 0x3a3   :  { %v4085_v13 = vadd.f32 %v7487_v33, %v3986_v60 }
 0x3a4   :  { %v3979_v26 = vpop.f32.mrb[172].mxu1 }
 0x3a5   :  { %v3987_v21 = vadd.f32 %v3979_v26, %v3888_v29  ;;  %v5676_v9 = vpop.f32.mrb[173].mxu1 }
 0x3a7   :  { %v4086_v57 = vadd.f32 %v7491_v43, %v3987_v21 }
 0x3a8   :  { %v4157_v45 = vpop.f32.mrb[174].mxu1 }
 0x3a9   :  { %v4181_v35 = vadd.f32 %v4157_v45, %v4082_v28  ;;  %v5698_v11 = vpop.f32.mrb[175].mxu1 }
 0x3ab   :  { %v4280_v46 = vadd.f32 %v7494_v23, %v4181_v35 }
 0x3ac   :  { %v4162_v30 = vpop.f32.mrb[176].mxu1 }
 0x3ad   :  { %v4182_v47 = vadd.f32 %v4162_v30, %v4083_v12  ;;  %v5701_v20 = vpop.f32.mrb[177].mxu1 }
 0x3af   :  { %v4281_v6 = vadd.f32 %v7497_v8, %v4182_v47 }
 0x3b0   :  { %v4167_v56 = vpop.f32.mrb[178].mxu1 }
 0x3b1   :  { %v4183_v4 = vadd.f32 %v4167_v56, %v4084_v2  ;;  %v5704_v63 = vpop.f32.mrb[179].mxu1 }
 0x3b3   :  { %v4282_v33 = vadd.f32 %v7500_v3, %v4183_v4 }
 0x3b4   :  { %v4172_v37 = vpop.f32.mrb[180].mxu1 }
 0x3b5   :  { %v4184_v10 = vadd.f32 %v4172_v37, %v4085_v13  ;;  %v5707_v42 = vpop.f32.mrb[181].mxu1 }
 0x3b7   :  { %v4283_v43 = vadd.f32 %v7503_v0, %v4184_v10 }
 0x3b8   :  { %v4177_v55 = vpop.f32.mrb[182].mxu1 }
 0x3b9   :  { %v4185_v5 = vadd.f32 %v4177_v55, %v4086_v57  ;;  %v5710_v27 = vpop.f32.mrb[183].mxu1 }
 0x3bb   :  { %v4284_v23 = vadd.f32 %v7506_v1, %v4185_v5 }
 0x3bc   :  { %v4355_v54 = vpop.f32.mrb[184].mxu1 }
 0x3bd   :  { %v4379_v24 = vadd.f32 %v4355_v54, %v4280_v46  ;;  %v5732_v15 = vpop.f32.mrb[185].mxu1 }
 0x3bf   :  { %v4384_v8 = vadd.f32 %v4379_v24, %v7594_v34 }
 0x3c0   :  { %v4360_v39 = vpop.f32.mrb[186].mxu1 }
 0x3c1   :  { %v4828_v61 = vmul.f32 -1.442695, %v4384_v8  ;;  %v4380_v7 = vadd.f32 %v4360_v39, %v4281_v6  ;;  %v5735_v44 = vpop.f32.mrb[187].mxu1 }
 0x3c3   :  { %5826 = vpow2.f32 %v4828_v61  ;;  %v4385_v3 = vadd.f32 %v4380_v7, %v7043_v31 }
 0x3c4   :  { %v4365_v49 = vpop.f32.mrb[188].mxu1 }
 0x3c5   :  { %v4829_v53 = vmul.f32 -1.442695, %v4385_v3  ;;  %v4381_v0 = vadd.f32 %v4365_v49, %v4282_v33  ;;  %v5738_v29 = vpop.f32.mrb[189].mxu1 }
 0x3c7   :  { %5828 = vpow2.f32 %v4829_v53  ;;  %v4386_v50 = vadd.f32 %v4381_v0, %v7052_v36 }
 0x3c8   :  { %v4370_v1 = vpop.f32.mrb[190].mxu1 }
 0x3c9   :  { %v4830_v22 = vmul.f32 -1.442695, %v4386_v50  ;;  %v4382_v62 = vadd.f32 %v4370_v1, %v4283_v43  ;;  %v5741_v28 = vpop.f32.mrb[191].mxu1 }
 0x3cb   :  { %5830 = vpow2.f32 %v4830_v22  ;;  %v4387_v34 = vadd.f32 %v4382_v62, %v6858_v19 }
 0x3cc   :  { %v4375_v59 = vpop.f32.mrb[192].mxu1 }
 0x3cd   :  { %v5827_v51 = vpop.eup %5826  ;;  %v4831_v18 = vmul.f32 -1.442695, %v4387_v34  ;;  %v4383_v12 = vadd.f32 %v4375_v59, %v4284_v23  ;;  %v5744_v48 = vpop.f32.mrb[193].mxu1 }
 0x3ce   :  { %v4404_v31 = vadd.f32 1.0, %v5827_v51 }
 0x3cf   :  { %5832 = vpow2.f32 %v4831_v18  ;;  %v4388_v52 = vadd.f32 %v4383_v12, %v7064_v58 }
 0x3d0   :  { %5834 = vrcp.f32 %v4404_v31 }
 0x3d1   :  { %v5829_v16 = vpop.eup %5828  ;;  %v4832_v2 = vmul.f32 -1.442695, %v4388_v52 }
 0x3d2   :  { %v4405_v36 = vadd.f32 1.0, %v5829_v16 }
 0x3d3   :  { %5836 = vpow2.f32 %v4832_v2 }
 0x3d4   :  { %5838 = vrcp.f32 %v4405_v36 }
 0x3d5   :  { %v5831_v32 = vpop.eup %5830 }
 0x3d6   :  { %v4406_v60 = vadd.f32 1.0, %v5831_v32 }
 0x3d8   :  { %5840 = vrcp.f32 %v4406_v60 }
 0x3d9   :  { %v5833_v38 = vpop.eup %5832 }
 0x3da   :  { %v4407_v19 = vadd.f32 1.0, %v5833_v38  ;;  %v5835_v13 = vpop.eup %5834 }
 0x3db   :  { %v4419_v57 = vmul.f32 %v5835_v13, %v4384_v8 }
 0x3dc   :  { %5842 = vrcp.f32 %v4407_v19 }
 0x3dd   :  { %v5837_v26 = vpop.eup %5836 }
 0x3de   :  { %v5839_v21 = vpop.eup %5838  ;;  %v4408_v9 = vadd.f32 1.0, %v5837_v26 }
 0x3df   :  { %v4420_v45 = vmul.f32 %v5839_v21, %v4385_v3 }
 0x3e0   :  { %5844 = vrcp.f32 %v4408_v9 }
 0x3e1   :  { %v5770_v58 = vpack.c.bf16 %v4420_v45, %v4419_v57 }
 0x3e2   :  { %v5841_v35 = vpop.eup %5840 }
 0x3e3   :  { %5771 = vmatpush3.bf16.msra.mxu0 %v5770_v58  ;;  %v4421_v46 = vmul.f32 %v5841_v35, %v4386_v50 }
 0x3e4   :  { %5772 = vmatprep.subr.bf16.mxu0 %v5945_v17 }
 0x3e6   :  { %v5843_v11 = vpop.eup %5842 }
 0x3e7   :  { %v4422_v30 = vmul.f32 %v5843_v11, %v4387_v34 }
 0x3e9   :  { %v5773_v47 = vpack.c.bf16 %v4422_v30, %v4421_v46 }
 0x3ea   :  { %v5845_v20 = vpop.eup %5844 }
 0x3eb   :  { %5774 = vmatpush3.bf16.msra.mxu0 %v5773_v47  ;;  %v4423_v6 = vmul.f32 %v5845_v20, %v4388_v52 }
 0x3ec   :  { %5758 = vmatprep.subr.mxu0 %v7590_v41 }
 0x3ef   :  { %5759 = vmatpush3.msra.mxu0 %v4423_v6 }
 0x3f0   :  { %5761 = vmatmul.mubr.msk.f32.vlgmr.msra.gmra.mrb[192].mxu0 %vm2423_vm3, %v7074_v25 }
 0x4c3   :  { %v4560_v56 = vpop.f32.mrb[192].mxu0 }
 0x4c4   :  { %v4561_v4 = vadd.f32 %v4560_v56, %v7522_v14  ;;  %v5762_v63 = vpop.f32.mrb[193].mxu0 }
 0x4c6   :  { %v4564_v33 = vadd.f32 %v4561_v4, %v7466_v40 }
 0x4c8   :  { %v4836_v17 = vmul.f32 -1.442695, %v4564_v33 }
 0x4ca   :  { %5846 = vpow2.f32 %v4836_v17 }
 0x4d4   :  { %v5847_v37 = vpop.eup %5846 }
 0x4d5   :  { %v4568_v10 = vadd.f32 1.0, %v5847_v37 }
 0x4d7   :  { %5848 = vrcp.f32 %v4568_v10 }
 0x4e1   :  { %v5849_v42 = vpop.eup %5848 }
 0x4e2   :  { %v4571_v41 = vmul.f32 %v5849_v42, %v4564_v33 }
 0x4e4   :  { %4573 = vst.msk [vmem:[#allocation2 + $0x8] sm:$0xff] %vm2510_vm4, %v4571_v41 }
 0x4e5   :  { %5911 = shalt.err (!%p5908_p4)
}
 0x4e6   :  { %s5912_s16 = scalar_lea.hbm %s7573_s6, 256 }
 0x4e7   :  { %p5913_p5 = scmp.ne.s32.totalorder %s7573_s6, %s5912_s16  ;;  %p5916_p6 = scmp.lt.u32.totalorder %s5912_s16, %s7573_s6 }
 0x4e9   :  { %p5918_p7 = pnand %p5916_p6, %p5913_p5 }
 0x4eb   :  { %5921 = shalt.err (!%p5918_p7)
}
 0x4ec   :  { %s5947_s25 = smov 128   ;;  %s5948_s26 = smov 8  }
 0x4ed   :  { %4585 = dma.vmem_to_hbm [thread:$0]  %s4580_s8, 256, %s7573_s6, [#allocation3], %s5947_s25, %s5947_s25, %s5948_s26  }
 0x4ee   :  { %5922 = dma.done.wait [#allocation3], 256  }
 0x4ef   :  { %5923 = vsyncadd [#allocation3], 4294967040 }
 0x4f0   :  { %4589 = vsyncpa [#allocation3], 1 }

</bundles_post_ra>
